<compile_context>
chip_gen: v6e
topology: v6e:2x2x1
jax: 0.10.0
libtpu: 0.0.40
codegen_flags: <defaults>
</compile_context>

<pallas_src>
import math

import jax
import jax.numpy as jnp
from jax import lax
from jax.experimental import pallas as pl
from jax.experimental.pallas import tpu as pltpu

# Small, TPU-friendly config (same semantics as GPTConfig; head dim 64 like
# real GPT-2).
B, T, C = 2, 128, 128
NH = 2
HD = C // NH                 # 64
F4 = 4 * C                   # 512
EPS = 1e-5                   # nn.LayerNorm default eps
_GELU_C = math.sqrt(2.0 / math.pi)
_SCALE = 1.0 / math.sqrt(HD)
_NEG = -1e30


def _layernorm(x, g, b):
    # One fused cross-lane reduction pass over [x, x*x].
    s = jnp.mean(jnp.stack([x, x * x]), axis=-1, keepdims=True)   # (2, T, 1)
    mu, ms = s[0], s[1]
    var = ms - mu * mu
    return (x - mu) * lax.rsqrt(var + EPS) * g + b


def _gelu_tanh(x):
    return 0.5 * x * (1.0 + jnp.tanh(_GELU_C * (x + 0.044715 * x * x * x)))


def block_kernel(x_ref, ln1g_ref, ln1b_ref,
                 wqkv_ref, bqkv_ref, wo_ref, bo_ref,
                 ln2g_ref, ln2b_ref,
                 wfc_ref, bfc_ref, wpr_ref, bpr_ref,
                 out_ref):
    # ---- attn(ln_1(x)) ----
    h = _layernorm(x_ref[0], ln1g_ref[0], ln1b_ref[0]).astype(jnp.bfloat16)

    # One lane-dense (T, 3C) matmul; 1/sqrt(HD) already folded into q columns.
    qkv = (jnp.dot(h, wqkv_ref[...], preferred_element_type=jnp.float32)
           + bqkv_ref[0]).astype(jnp.bfloat16)                        # (T, 3C)

    head_out = []
    for hh in range(NH):        # static unroll; slices only feed the MXU
        q = qkv[:, hh * HD:(hh + 1) * HD]                             # (T, HD)
        k = qkv[:, C + hh * HD:C + (hh + 1) * HD]
        v = qkv[:, 2 * C + hh * HD:2 * C + (hh + 1) * HD]

        s = lax.dot_general(q, k, (((1,), (1,)), ((), ())),
                            preferred_element_type=jnp.float32)       # (T, T)
        rows = lax.broadcasted_iota(jnp.int32, (T, T), 0)
        cols = lax.broadcasted_iota(jnp.int32, (T, T), 1)
        s = jnp.where(rows >= cols, s, _NEG)

        m = jnp.max(s, axis=-1, keepdims=True)
        p = jnp.exp(s - m)
        p = p * pl.reciprocal(jnp.sum(p, axis=-1, keepdims=True), approx=True)

        head_out.append(jnp.dot(p.astype(jnp.bfloat16), v,
                                preferred_element_type=jnp.float32
                                ).astype(jnp.bfloat16))               # (T, HD)

    y = jnp.concatenate(head_out, axis=-1)                            # (T, C) bf16
    attn = jnp.dot(y, wo_ref[...], preferred_element_type=jnp.float32)

    # First residual, staged through the output VMEM tile so the f32 (T, C)
    # residual is not held in vregs across the MLP matmuls.
    out_ref[0] = x_ref[0] + attn + bo_ref[0]

    # ---- x + mlp(ln_2(x)) ----
    h2 = _layernorm(out_ref[0], ln2g_ref[0], ln2b_ref[0]).astype(jnp.bfloat16)
    f = jnp.dot(h2, wfc_ref[...], preferred_element_type=jnp.float32) + bfc_ref[0]
    f = _gelu_tanh(f).astype(jnp.bfloat16)
    f = jnp.dot(f, wpr_ref[...], preferred_element_type=jnp.float32) + bpr_ref[0]
    out_ref[0] = out_ref[0] + f


def prepare_kernel_params(params):
    """One-time transform of module-layout f32 params into kernel layout."""
    (ln1g, ln1b, wqkv, bqkv, wo, bo, ln2g, ln2b, wfc, bfc, wpr, bpr) = params
    # Fold the 1/sqrt(HD) attention scale into the q columns of the fused
    # qkv weight/bias so the kernel never scales q.
    col_scale = jnp.concatenate(
        [jnp.full((1, C), _SCALE, jnp.float32), jnp.ones((1, 2 * C), jnp.float32)],
        axis=-1)
    return (ln1g, ln1b,
            (wqkv * col_scale).astype(jnp.bfloat16),      # (C, 3C) bf16
            (bqkv * col_scale).astype(jnp.float32),       # (1, 3C) f32
            wo.astype(jnp.bfloat16), bo,
            ln2g, ln2b,
            wfc.astype(jnp.bfloat16), bfc,
            wpr.astype(jnp.bfloat16), bpr)


def gpt2_block(x, kparams):
    (ln1g, ln1b, wqkv, bqkv, wo, bo, ln2g, ln2b, wfc, bfc, wpr, bpr) = kparams

    def rep(a):
        # Constant across the grid: every step reads block (0, ..., 0).
        nd = a.ndim
        return pl.BlockSpec(a.shape, lambda b, _n=nd: (0,) * _n)

    consts = (ln1g, ln1b, wqkv, bqkv, wo, bo, ln2g, ln2b, wfc, bfc, wpr, bpr)
    in_specs = ([pl.BlockSpec((1, T, C), lambda b: (b, 0, 0))]
                + [rep(a) for a in consts])

    return pl.pallas_call(
        block_kernel,
        out_shape=jax.ShapeDtypeStruct((B, T, C), jnp.float32),
        grid_spec=pltpu.PrefetchScalarGridSpec(
            num_scalar_prefetch=0,
            grid=(B,),
            in_specs=in_specs,
            out_specs=pl.BlockSpec((1, T, C), lambda b: (b, 0, 0))),
        compiler_params=pltpu.CompilerParams(
            dimension_semantics=("parallel",),
            vmem_limit_bytes=32 * 1024 * 1024),
    )(x, *consts)


def reference_block(x, params):
    (ln1g, ln1b, wqkv, bqkv, wo, bo, ln2g, ln2b, wfc, bfc, wpr, bpr) = params

    def ln(t, g, b):
        mu = t.mean(-1, keepdims=True)
        var = ((t - mu) ** 2).mean(-1, keepdims=True)
        return (t - mu) / jnp.sqrt(var + EPS) * g[0] + b[0]

    h = ln(x, ln1g, ln1b)
    qkv = h @ wqkv + bqkv[0]
    q, k, v = jnp.split(qkv, 3, axis=-1)

    def heads(t):
        return t.reshape(B, T, NH, HD).transpose(0, 2, 1, 3)

    q, k, v = heads(q), heads(k), heads(v)
    s = jnp.einsum("bhqd,bhkd->bhqk", q, k) / math.sqrt(HD)
    mask = jnp.tril(jnp.ones((T, T), dtype=bool))
    s = jnp.where(mask, s, _NEG)
    p = jax.nn.softmax(s, axis=-1)
    y = jnp.einsum("bhqk,bhkd->bhqd", p, v).transpose(0, 2, 1, 3).reshape(B, T, C)
    y = y @ wo + bo[0]
    x = x + y

    h2 = ln(x, ln2g, ln2b)
    f = h2 @ wfc + bfc[0]
    f = _gelu_tanh(f)
    f = f @ wpr + bpr[0]
    return x + f


def make_params(key):
    ks = jax.random.split(key, 10)
    std = 0.02
    ln1g = 1.0 + 0.1 * jax.random.normal(ks[0], (1, C), jnp.float32)
    ln1b = 0.1 * jax.random.normal(ks[1], (1, C), jnp.float32)
    wqkv = std * jax.random.normal(ks[2], (C, 3 * C), jnp.float32)
    bqkv = std * jax.random.normal(ks[3], (1, 3 * C), jnp.float32)
    wo = std * jax.random.normal(ks[4], (C, C), jnp.float32)
    bo = std * jax.random.normal(ks[5], (1, C), jnp.float32)
    ln2g = 1.0 + 0.1 * jax.random.normal(ks[6], (1, C), jnp.float32)
    ln2b = 0.1 * jax.random.normal(ks[7], (1, C), jnp.float32)
    wfc = std * jax.random.normal(ks[8], (C, F4), jnp.float32)
    bfc = std * jax.random.normal(ks[9], (1, F4), jnp.float32)
    wpr = std * jax.random.normal(ks[0], (F4, C), jnp.float32)
    bpr = std * jax.random.normal(ks[1], (1, C), jnp.float32)
    return (ln1g, ln1b, wqkv, bqkv, wo, bo, ln2g, ln2b, wfc, bfc, wpr, bpr)


if __name__ == "__main__":
    key = jax.random.PRNGKey(0)
    kx, kp = jax.random.split(key)
    x = jax.random.normal(kx, (B, T, C), jnp.float32)
    params = make_params(kp)
    kparams = prepare_kernel_params(params)

    out = gpt2_block(x, kparams)
    out = jax.block_until_ready(out)

    ref = reference_block(x, params)
    assert out.shape == (B, T, C)
    err = float(jnp.max(jnp.abs(out - ref)))
    # bf16 MXU operands + approx reciprocal => slightly looser than pure f32.
    assert jnp.allclose(out, ref, atol=2e-2, rtol=2e-2), err
    print("KERNEL_OK")
</pallas_src>

<mosaic_0001>
module attributes {stable_mosaic.version = 11 : i64} {
  func.func @block_kernel(%arg0: i32, %arg1: memref<1x128x128xf32, #tpu.memory_space<vmem>>, %arg2: memref<1x128xf32, #tpu.memory_space<vmem>>, %arg3: memref<1x128xf32, #tpu.memory_space<vmem>>, %arg4: memref<128x384xbf16, #tpu.memory_space<vmem>>, %arg5: memref<1x384xf32, #tpu.memory_space<vmem>>, %arg6: memref<128x128xbf16, #tpu.memory_space<vmem>>, %arg7: memref<1x128xf32, #tpu.memory_space<vmem>>, %arg8: memref<1x128xf32, #tpu.memory_space<vmem>>, %arg9: memref<1x128xf32, #tpu.memory_space<vmem>>, %arg10: memref<128x512xbf16, #tpu.memory_space<vmem>>, %arg11: memref<1x512xf32, #tpu.memory_space<vmem>>, %arg12: memref<512x128xbf16, #tpu.memory_space<vmem>>, %arg13: memref<1x128xf32, #tpu.memory_space<vmem>>, %arg14: memref<1x128x128xf32, #tpu.memory_space<vmem>>) attributes {dimension_semantics = [#tpu.dimension_semantics<parallel>], iteration_bounds = array<i64: 2>, scalar_prefetch = 0 : i64, scratch_operands = 0 : i64, tpu.core_type = #tpu.core_type<tc>, window_params = [{transform_indices = @transform_0, window_bounds = array<i64: 1, 128, 128>}, {pipeline_mode = #tpu.pipeline_mode<synchronous>, transform_indices = @transform_1, window_bounds = array<i64: 1, 128>}, {pipeline_mode = #tpu.pipeline_mode<synchronous>, transform_indices = @transform_2, window_bounds = array<i64: 1, 128>}, {pipeline_mode = #tpu.pipeline_mode<synchronous>, transform_indices = @transform_3, window_bounds = array<i64: 128, 384>}, {pipeline_mode = #tpu.pipeline_mode<synchronous>, transform_indices = @transform_4, window_bounds = array<i64: 1, 384>}, {pipeline_mode = #tpu.pipeline_mode<synchronous>, transform_indices = @transform_5, window_bounds = array<i64: 128, 128>}, {pipeline_mode = #tpu.pipeline_mode<synchronous>, transform_indices = @transform_6, window_bounds = array<i64: 1, 128>}, {pipeline_mode = #tpu.pipeline_mode<synchronous>, transform_indices = @transform_7, window_bounds = array<i64: 1, 128>}, {pipeline_mode = #tpu.pipeline_mode<synchronous>, transform_indices = @transform_8, window_bounds = array<i64: 1, 128>}, {pipeline_mode = #tpu.pipeline_mode<synchronous>, transform_indices = @transform_9, window_bounds = array<i64: 128, 512>}, {pipeline_mode = #tpu.pipeline_mode<synchronous>, transform_indices = @transform_10, window_bounds = array<i64: 1, 512>}, {pipeline_mode = #tpu.pipeline_mode<synchronous>, transform_indices = @transform_11, window_bounds = array<i64: 512, 128>}, {pipeline_mode = #tpu.pipeline_mode<synchronous>, transform_indices = @transform_12, window_bounds = array<i64: 1, 128>}, {transform_indices = @transform_13, window_bounds = array<i64: 1, 128, 128>}]} {
    %c0 = arith.constant 0 : index
    %c0_0 = arith.constant 0 : index
    %c0_1 = arith.constant 0 : index
    %0 = vector.load %arg1[%c0, %c0_0, %c0_1] : memref<1x128x128xf32, #tpu.memory_space<vmem>>, vector<1x128x128xf32>
    %1 = vector.shape_cast %0 : vector<1x128x128xf32> to vector<128x128xf32>
    %c0_2 = arith.constant 0 : index
    %c0_3 = arith.constant 0 : index
    %2 = vector.load %arg2[%c0_2, %c0_3] : memref<1x128xf32, #tpu.memory_space<vmem>>, vector<1x128xf32>
    %3 = vector.shape_cast %2 : vector<1x128xf32> to vector<128xf32>
    %c0_4 = arith.constant 0 : index
    %c0_5 = arith.constant 0 : index
    %4 = vector.load %arg3[%c0_4, %c0_5] : memref<1x128xf32, #tpu.memory_space<vmem>>, vector<1x128xf32>
    %5 = vector.shape_cast %4 : vector<1x128xf32> to vector<128xf32>
    %6 = arith.mulf %1, %1 : vector<128x128xf32>
    %7 = vector.shape_cast %1 : vector<128x128xf32> to vector<1x128x128xf32>
    %8 = vector.shape_cast %6 : vector<128x128xf32> to vector<1x128x128xf32>
    %9 = tpu.concatenate %7, %8 in 0 : vector<1x128x128xf32>, vector<1x128x128xf32> -> vector<2x128x128xf32>
    %cst = arith.constant dense<0.000000e+00> : vector<2x128xf32>
    %10 = vector.multi_reduction <add>, %9, %cst [2] : vector<2x128x128xf32> to vector<2x128xf32>
    %11 = vector.shape_cast %10 : vector<2x128xf32> to vector<2x128x1xf32>
    %cst_6 = arith.constant 1.280000e+02 : f32
    %12 = vector.broadcast %cst_6 : f32 to vector<2x128x1xf32>
    %13 = arith.divf %11, %12 : vector<2x128x1xf32>
    %14 = vector.extract_strided_slice %13 {offsets = [0, 0, 0], sizes = [1, 128, 1], strides = [1, 1, 1]} : vector<2x128x1xf32> to vector<1x128x1xf32>
    %15 = vector.shape_cast %14 : vector<1x128x1xf32> to vector<128x1xf32>
    %16 = vector.extract_strided_slice %13 {offsets = [1, 0, 0], sizes = [1, 128, 1], strides = [1, 1, 1]} : vector<2x128x1xf32> to vector<1x128x1xf32>
    %17 = vector.shape_cast %16 : vector<1x128x1xf32> to vector<128x1xf32>
    %18 = arith.mulf %15, %15 : vector<128x1xf32>
    %19 = arith.subf %17, %18 : vector<128x1xf32>
    %20 = vector.broadcast %15 : vector<128x1xf32> to vector<128x128xf32>
    %21 = arith.subf %1, %20 : vector<128x128xf32>
    %cst_7 = arith.constant 9.99999974E-6 : f32
    %22 = vector.broadcast %cst_7 : f32 to vector<128x1xf32>
    %23 = arith.addf %19, %22 : vector<128x1xf32>
    %24 = math.rsqrt %23 : vector<128x1xf32>
    %25 = vector.broadcast %24 : vector<128x1xf32> to vector<128x128xf32>
    %26 = arith.mulf %21, %25 : vector<128x128xf32>
    %27 = vector.shape_cast %3 : vector<128xf32> to vector<1x128xf32>
    %28 = vector.broadcast %27 : vector<1x128xf32> to vector<128x128xf32>
    %29 = arith.mulf %26, %28 : vector<128x128xf32>
    %30 = vector.shape_cast %5 : vector<128xf32> to vector<1x128xf32>
    %31 = vector.broadcast %30 : vector<1x128xf32> to vector<128x128xf32>
    %32 = arith.addf %29, %31 : vector<128x128xf32>
    %33 = arith.truncf %32 : vector<128x128xf32> to vector<128x128xbf16>
    %c0_8 = arith.constant 0 : index
    %c0_9 = arith.constant 0 : index
    %34 = vector.load %arg4[%c0_8, %c0_9] : memref<128x384xbf16, #tpu.memory_space<vmem>>, vector<128x384xbf16>
    %cst_10 = arith.constant dense<0.000000e+00> : vector<128x384xf32>
    %35 = tpu.matmul %33, %34, %cst_10 {dimension_numbers = #tpu.dot_dimension_numbers<[1], [0], [0], [1], [0, 0, 1, 1], [], []>} : vector<128x128xbf16>, vector<128x384xbf16>, vector<128x384xf32> -> vector<128x384xf32>
    %c0_11 = arith.constant 0 : index
    %c0_12 = arith.constant 0 : index
    %36 = vector.load %arg5[%c0_11, %c0_12] : memref<1x384xf32, #tpu.memory_space<vmem>>, vector<1x384xf32>
    %37 = vector.shape_cast %36 : vector<1x384xf32> to vector<384xf32>
    %38 = vector.shape_cast %37 : vector<384xf32> to vector<1x384xf32>
    %39 = vector.broadcast %38 : vector<1x384xf32> to vector<128x384xf32>
    %40 = arith.addf %35, %39 : vector<128x384xf32>
    %41 = arith.truncf %40 : vector<128x384xf32> to vector<128x384xbf16>
    %42 = vector.extract_strided_slice %41 {offsets = [0, 0], sizes = [128, 64], strides = [1, 1]} : vector<128x384xbf16> to vector<128x64xbf16>
    %43 = vector.extract_strided_slice %41 {offsets = [0, 128], sizes = [128, 64], strides = [1, 1]} : vector<128x384xbf16> to vector<128x64xbf16>
    %44 = vector.extract_strided_slice %41 {offsets = [0, 256], sizes = [128, 64], strides = [1, 1]} : vector<128x384xbf16> to vector<128x64xbf16>
    %cst_13 = arith.constant dense<0.000000e+00> : vector<128x128xf32>
    %45 = tpu.matmul %42, %43, %cst_13 {dimension_numbers = #tpu.dot_dimension_numbers<[1], [1], [0], [0], [0, 0, 1, 0], [], []>} : vector<128x64xbf16>, vector<128x64xbf16>, vector<128x128xf32> -> vector<128x128xf32>
    %46 = tpu.iota {dimensions = array<i32: 0>} : vector<128x128xi32>
    %47 = tpu.iota {dimensions = array<i32: 1>} : vector<128x128xi32>
    %48 = arith.cmpi sge, %46, %47 : vector<128x128xi32>
    %cst_14 = arith.constant -1.000000e+30 : f32
    %49 = vector.broadcast %cst_14 : f32 to vector<128x128xf32>
    %50 = arith.select %48, %45, %49 : vector<128x128xi1>, vector<128x128xf32>
    %cst_15 = arith.constant dense<0xFF800000> : vector<128xf32>
    %51 = vector.multi_reduction <maximumf>, %50, %cst_15 [1] : vector<128x128xf32> to vector<128xf32>
    %52 = vector.shape_cast %51 : vector<128xf32> to vector<128x1xf32>
    %53 = vector.broadcast %52 : vector<128x1xf32> to vector<128x128xf32>
    %54 = arith.subf %50, %53 : vector<128x128xf32>
    %55 = math.exp %54 : vector<128x128xf32>
    %cst_16 = arith.constant dense<0.000000e+00> : vector<128xf32>
    %56 = vector.multi_reduction <add>, %55, %cst_16 [1] : vector<128x128xf32> to vector<128xf32>
    %57 = vector.shape_cast %56 : vector<128xf32> to vector<128x1xf32>
    %58 = tpu.reciprocal %57 {approx = true} : vector<128x1xf32> -> vector<128x1xf32>
    %59 = vector.broadcast %58 : vector<128x1xf32> to vector<128x128xf32>
    %60 = arith.mulf %55, %59 : vector<128x128xf32>
    %61 = arith.truncf %60 : vector<128x128xf32> to vector<128x128xbf16>
    %cst_17 = arith.constant dense<0.000000e+00> : vector<128x64xf32>
    %62 = tpu.matmul %61, %44, %cst_17 {dimension_numbers = #tpu.dot_dimension_numbers<[1], [0], [0], [1], [0, 0, 1, 1], [], []>} : vector<128x128xbf16>, vector<128x64xbf16>, vector<128x64xf32> -> vector<128x64xf32>
    %63 = arith.truncf %62 : vector<128x64xf32> to vector<128x64xbf16>
    %64 = vector.extract_strided_slice %41 {offsets = [0, 64], sizes = [128, 64], strides = [1, 1]} : vector<128x384xbf16> to vector<128x64xbf16>
    %65 = vector.extract_strided_slice %41 {offsets = [0, 192], sizes = [128, 64], strides = [1, 1]} : vector<128x384xbf16> to vector<128x64xbf16>
    %66 = vector.extract_strided_slice %41 {offsets = [0, 320], sizes = [128, 64], strides = [1, 1]} : vector<128x384xbf16> to vector<128x64xbf16>
    %cst_18 = arith.constant dense<0.000000e+00> : vector<128x128xf32>
    %67 = tpu.matmul %64, %65, %cst_18 {dimension_numbers = #tpu.dot_dimension_numbers<[1], [1], [0], [0], [0, 0, 1, 0], [], []>} : vector<128x64xbf16>, vector<128x64xbf16>, vector<128x128xf32> -> vector<128x128xf32>
    %68 = tpu.iota {dimensions = array<i32: 0>} : vector<128x128xi32>
    %69 = tpu.iota {dimensions = array<i32: 1>} : vector<128x128xi32>
    %70 = arith.cmpi sge, %68, %69 : vector<128x128xi32>
    %cst_19 = arith.constant -1.000000e+30 : f32
    %71 = vector.broadcast %cst_19 : f32 to vector<128x128xf32>
    %72 = arith.select %70, %67, %71 : vector<128x128xi1>, vector<128x128xf32>
    %cst_20 = arith.constant dense<0xFF800000> : vector<128xf32>
    %73 = vector.multi_reduction <maximumf>, %72, %cst_20 [1] : vector<128x128xf32> to vector<128xf32>
    %74 = vector.shape_cast %73 : vector<128xf32> to vector<128x1xf32>
    %75 = vector.broadcast %74 : vector<128x1xf32> to vector<128x128xf32>
    %76 = arith.subf %72, %75 : vector<128x128xf32>
    %77 = math.exp %76 : vector<128x128xf32>
    %cst_21 = arith.constant dense<0.000000e+00> : vector<128xf32>
    %78 = vector.multi_reduction <add>, %77, %cst_21 [1] : vector<128x128xf32> to vector<128xf32>
    %79 = vector.shape_cast %78 : vector<128xf32> to vector<128x1xf32>
    %80 = tpu.reciprocal %79 {approx = true} : vector<128x1xf32> -> vector<128x1xf32>
    %81 = vector.broadcast %80 : vector<128x1xf32> to vector<128x128xf32>
    %82 = arith.mulf %77, %81 : vector<128x128xf32>
    %83 = arith.truncf %82 : vector<128x128xf32> to vector<128x128xbf16>
    %cst_22 = arith.constant dense<0.000000e+00> : vector<128x64xf32>
    %84 = tpu.matmul %83, %66, %cst_22 {dimension_numbers = #tpu.dot_dimension_numbers<[1], [0], [0], [1], [0, 0, 1, 1], [], []>} : vector<128x128xbf16>, vector<128x64xbf16>, vector<128x64xf32> -> vector<128x64xf32>
    %85 = arith.truncf %84 : vector<128x64xf32> to vector<128x64xbf16>
    %86 = tpu.concatenate %63, %85 in 1 : vector<128x64xbf16>, vector<128x64xbf16> -> vector<128x128xbf16>
    %c0_23 = arith.constant 0 : index
    %c0_24 = arith.constant 0 : index
    %87 = vector.load %arg6[%c0_23, %c0_24] : memref<128x128xbf16, #tpu.memory_space<vmem>>, vector<128x128xbf16>
    %cst_25 = arith.constant dense<0.000000e+00> : vector<128x128xf32>
    %88 = tpu.matmul %86, %87, %cst_25 {dimension_numbers = #tpu.dot_dimension_numbers<[1], [0], [0], [1], [0, 0, 1, 1], [], []>} : vector<128x128xbf16>, vector<128x128xbf16>, vector<128x128xf32> -> vector<128x128xf32>
    %c0_26 = arith.constant 0 : index
    %c0_27 = arith.constant 0 : index
    %c0_28 = arith.constant 0 : index
    %89 = vector.load %arg1[%c0_26, %c0_27, %c0_28] : memref<1x128x128xf32, #tpu.memory_space<vmem>>, vector<1x128x128xf32>
    %90 = vector.shape_cast %89 : vector<1x128x128xf32> to vector<128x128xf32>
    %91 = arith.addf %90, %88 : vector<128x128xf32>
    %c0_29 = arith.constant 0 : index
    %c0_30 = arith.constant 0 : index
    %92 = vector.load %arg7[%c0_29, %c0_30] : memref<1x128xf32, #tpu.memory_space<vmem>>, vector<1x128xf32>
    %93 = vector.shape_cast %92 : vector<1x128xf32> to vector<128xf32>
    %94 = vector.shape_cast %93 : vector<128xf32> to vector<1x128xf32>
    %95 = vector.broadcast %94 : vector<1x128xf32> to vector<128x128xf32>
    %96 = arith.addf %91, %95 : vector<128x128xf32>
    %c0_31 = arith.constant 0 : index
    %c0_32 = arith.constant 0 : index
    %c0_33 = arith.constant 0 : index
    %97 = vector.load %arg14[%c0_31, %c0_32, %c0_33] : memref<1x128x128xf32, #tpu.memory_space<vmem>>, vector<1x128x128xf32>
    %98 = vector.shape_cast %97 : vector<1x128x128xf32> to vector<128x128xf32>
    %99 = vector.shape_cast %96 : vector<128x128xf32> to vector<1x128x128xf32>
    tpu.vector_store %arg14[%c0_31, %c0_32, %c0_33], %99 {strides = array<i32>} : memref<1x128x128xf32, #tpu.memory_space<vmem>>, vector<1x128x128xf32>,
    %c0_34 = arith.constant 0 : index
    %c0_35 = arith.constant 0 : index
    %c0_36 = arith.constant 0 : index
    %100 = vector.load %arg14[%c0_34, %c0_35, %c0_36] : memref<1x128x128xf32, #tpu.memory_space<vmem>>, vector<1x128x128xf32>
    %101 = vector.shape_cast %100 : vector<1x128x128xf32> to vector<128x128xf32>
    %c0_37 = arith.constant 0 : index
    %c0_38 = arith.constant 0 : index
    %102 = vector.load %arg8[%c0_37, %c0_38] : memref<1x128xf32, #tpu.memory_space<vmem>>, vector<1x128xf32>
    %103 = vector.shape_cast %102 : vector<1x128xf32> to vector<128xf32>
    %c0_39 = arith.constant 0 : index
    %c0_40 = arith.constant 0 : index
    %104 = vector.load %arg9[%c0_39, %c0_40] : memref<1x128xf32, #tpu.memory_space<vmem>>, vector<1x128xf32>
    %105 = vector.shape_cast %104 : vector<1x128xf32> to vector<128xf32>
    %106 = arith.mulf %101, %101 : vector<128x128xf32>
    %107 = vector.shape_cast %101 : vector<128x128xf32> to vector<1x128x128xf32>
    %108 = vector.shape_cast %106 : vector<128x128xf32> to vector<1x128x128xf32>
    %109 = tpu.concatenate %107, %108 in 0 : vector<1x128x128xf32>, vector<1x128x128xf32> -> vector<2x128x128xf32>
    %cst_41 = arith.constant dense<0.000000e+00> : vector<2x128xf32>
    %110 = vector.multi_reduction <add>, %109, %cst_41 [2] : vector<2x128x128xf32> to vector<2x128xf32>
    %111 = vector.shape_cast %110 : vector<2x128xf32> to vector<2x128x1xf32>
    %cst_42 = arith.constant 1.280000e+02 : f32
    %112 = vector.broadcast %cst_42 : f32 to vector<2x128x1xf32>
    %113 = arith.divf %111, %112 : vector<2x128x1xf32>
    %114 = vector.extract_strided_slice %113 {offsets = [0, 0, 0], sizes = [1, 128, 1], strides = [1, 1, 1]} : vector<2x128x1xf32> to vector<1x128x1xf32>
    %115 = vector.shape_cast %114 : vector<1x128x1xf32> to vector<128x1xf32>
    %116 = vector.extract_strided_slice %113 {offsets = [1, 0, 0], sizes = [1, 128, 1], strides = [1, 1, 1]} : vector<2x128x1xf32> to vector<1x128x1xf32>
    %117 = vector.shape_cast %116 : vector<1x128x1xf32> to vector<128x1xf32>
    %118 = arith.mulf %115, %115 : vector<128x1xf32>
    %119 = arith.subf %117, %118 : vector<128x1xf32>
    %120 = vector.broadcast %115 : vector<128x1xf32> to vector<128x128xf32>
    %121 = arith.subf %101, %120 : vector<128x128xf32>
    %cst_43 = arith.constant 9.99999974E-6 : f32
    %122 = vector.broadcast %cst_43 : f32 to vector<128x1xf32>
    %123 = arith.addf %119, %122 : vector<128x1xf32>
    %124 = math.rsqrt %123 : vector<128x1xf32>
    %125 = vector.broadcast %124 : vector<128x1xf32> to vector<128x128xf32>
    %126 = arith.mulf %121, %125 : vector<128x128xf32>
    %127 = vector.shape_cast %103 : vector<128xf32> to vector<1x128xf32>
    %128 = vector.broadcast %127 : vector<1x128xf32> to vector<128x128xf32>
    %129 = arith.mulf %126, %128 : vector<128x128xf32>
    %130 = vector.shape_cast %105 : vector<128xf32> to vector<1x128xf32>
    %131 = vector.broadcast %130 : vector<1x128xf32> to vector<128x128xf32>
    %132 = arith.addf %129, %131 : vector<128x128xf32>
    %133 = arith.truncf %132 : vector<128x128xf32> to vector<128x128xbf16>
    %c0_44 = arith.constant 0 : index
    %c0_45 = arith.constant 0 : index
    %134 = vector.load %arg10[%c0_44, %c0_45] : memref<128x512xbf16, #tpu.memory_space<vmem>>, vector<128x512xbf16>
    %cst_46 = arith.constant dense<0.000000e+00> : vector<128x512xf32>
    %135 = tpu.matmul %133, %134, %cst_46 {dimension_numbers = #tpu.dot_dimension_numbers<[1], [0], [0], [1], [0, 0, 1, 1], [], []>} : vector<128x128xbf16>, vector<128x512xbf16>, vector<128x512xf32> -> vector<128x512xf32>
    %c0_47 = arith.constant 0 : index
    %c0_48 = arith.constant 0 : index
    %136 = vector.load %arg11[%c0_47, %c0_48] : memref<1x512xf32, #tpu.memory_space<vmem>>, vector<1x512xf32>
    %137 = vector.shape_cast %136 : vector<1x512xf32> to vector<512xf32>
    %138 = vector.shape_cast %137 : vector<512xf32> to vector<1x512xf32>
    %139 = vector.broadcast %138 : vector<1x512xf32> to vector<128x512xf32>
    %140 = arith.addf %135, %139 : vector<128x512xf32>
    %cst_49 = arith.constant 5.000000e-01 : f32
    %141 = vector.broadcast %cst_49 : f32 to vector<128x512xf32>
    %142 = arith.mulf %141, %140 : vector<128x512xf32>
    %cst_50 = arith.constant 4.471500e-02 : f32
    %143 = vector.broadcast %cst_50 : f32 to vector<128x512xf32>
    %144 = arith.mulf %143, %140 : vector<128x512xf32>
    %145 = arith.mulf %144, %140 : vector<128x512xf32>
    %146 = arith.mulf %145, %140 : vector<128x512xf32>
    %147 = arith.addf %140, %146 : vector<128x512xf32>
    %cst_51 = arith.constant 0.797884583 : f32
    %148 = vector.broadcast %cst_51 : f32 to vector<128x512xf32>
    %149 = arith.mulf %148, %147 : vector<128x512xf32>
    %150 = math.tanh %149 : vector<128x512xf32>
    %cst_52 = arith.constant 1.000000e+00 : f32
    %151 = vector.broadcast %cst_52 : f32 to vector<128x512xf32>
    %152 = arith.addf %151, %150 : vector<128x512xf32>
    %153 = arith.mulf %142, %152 : vector<128x512xf32>
    %154 = arith.truncf %153 : vector<128x512xf32> to vector<128x512xbf16>
    %c0_53 = arith.constant 0 : index
    %c0_54 = arith.constant 0 : index
    %155 = vector.load %arg12[%c0_53, %c0_54] : memref<512x128xbf16, #tpu.memory_space<vmem>>, vector<512x128xbf16>
    %cst_55 = arith.constant dense<0.000000e+00> : vector<128x128xf32>
    %156 = tpu.matmul %154, %155, %cst_55 {dimension_numbers = #tpu.dot_dimension_numbers<[1], [0], [0], [1], [0, 0, 1, 1], [], []>} : vector<128x512xbf16>, vector<512x128xbf16>, vector<128x128xf32> -> vector<128x128xf32>
    %c0_56 = arith.constant 0 : index
    %c0_57 = arith.constant 0 : index
    %157 = vector.load %arg13[%c0_56, %c0_57] : memref<1x128xf32, #tpu.memory_space<vmem>>, vector<1x128xf32>
    %158 = vector.shape_cast %157 : vector<1x128xf32> to vector<128xf32>
    %159 = vector.shape_cast %158 : vector<128xf32> to vector<1x128xf32>
    %160 = vector.broadcast %159 : vector<1x128xf32> to vector<128x128xf32>
    %161 = arith.addf %156, %160 : vector<128x128xf32>
    %c0_58 = arith.constant 0 : index
    %c0_59 = arith.constant 0 : index
    %c0_60 = arith.constant 0 : index
    %162 = vector.load %arg14[%c0_58, %c0_59, %c0_60] : memref<1x128x128xf32, #tpu.memory_space<vmem>>, vector<1x128x128xf32>
    %163 = vector.shape_cast %162 : vector<1x128x128xf32> to vector<128x128xf32>
    %164 = arith.addf %163, %161 : vector<128x128xf32>
    %c0_61 = arith.constant 0 : index
    %c0_62 = arith.constant 0 : index
    %c0_63 = arith.constant 0 : index
    %165 = vector.load %arg14[%c0_61, %c0_62, %c0_63] : memref<1x128x128xf32, #tpu.memory_space<vmem>>, vector<1x128x128xf32>
    %166 = vector.shape_cast %165 : vector<1x128x128xf32> to vector<128x128xf32>
    %167 = vector.shape_cast %164 : vector<128x128xf32> to vector<1x128x128xf32>
    tpu.vector_store %arg14[%c0_61, %c0_62, %c0_63], %167 {strides = array<i32>} : memref<1x128x128xf32, #tpu.memory_space<vmem>>, vector<1x128x128xf32>,
    return
  }
  func.func @transform_0(%arg0: i32) -> (i32, i32, i32) {
    %c0_i32 = arith.constant 0 : i32
    %c0_i32_0 = arith.constant 0 : i32
    %c0_i32_1 = arith.constant 0 : i32
    return %arg0, %c0_i32, %c0_i32_0 : i32, i32, i32
  }
  func.func @transform_1(%arg0: i32) -> (i32, i32) {
    %c0_i32 = arith.constant 0 : i32
    %c0_i32_0 = arith.constant 0 : i32
    %c0_i32_1 = arith.constant 0 : i32
    return %c0_i32, %c0_i32_0 : i32, i32
  }
  func.func @transform_2(%arg0: i32) -> (i32, i32) {
    %c0_i32 = arith.constant 0 : i32
    %c0_i32_0 = arith.constant 0 : i32
    %c0_i32_1 = arith.constant 0 : i32
    return %c0_i32, %c0_i32_0 : i32, i32
  }
  func.func @transform_3(%arg0: i32) -> (i32, i32) {
    %c0_i32 = arith.constant 0 : i32
    %c0_i32_0 = arith.constant 0 : i32
    %c0_i32_1 = arith.constant 0 : i32
    return %c0_i32, %c0_i32_0 : i32, i32
  }
  func.func @transform_4(%arg0: i32) -> (i32, i32) {
    %c0_i32 = arith.constant 0 : i32
    %c0_i32_0 = arith.constant 0 : i32
    %c0_i32_1 = arith.constant 0 : i32
    return %c0_i32, %c0_i32_0 : i32, i32
  }
  func.func @transform_5(%arg0: i32) -> (i32, i32) {
    %c0_i32 = arith.constant 0 : i32
    %c0_i32_0 = arith.constant 0 : i32
    %c0_i32_1 = arith.constant 0 : i32
    return %c0_i32, %c0_i32_0 : i32, i32
  }
  func.func @transform_6(%arg0: i32) -> (i32, i32) {
    %c0_i32 = arith.constant 0 : i32
    %c0_i32_0 = arith.constant 0 : i32
    %c0_i32_1 = arith.constant 0 : i32
    return %c0_i32, %c0_i32_0 : i32, i32
  }
  func.func @transform_7(%arg0: i32) -> (i32, i32) {
    %c0_i32 = arith.constant 0 : i32
    %c0_i32_0 = arith.constant 0 : i32
    %c0_i32_1 = arith.constant 0 : i32
    return %c0_i32, %c0_i32_0 : i32, i32
  }
  func.func @transform_8(%arg0: i32) -> (i32, i32) {
    %c0_i32 = arith.constant 0 : i32
    %c0_i32_0 = arith.constant 0 : i32
    %c0_i32_1 = arith.constant 0 : i32
    return %c0_i32, %c0_i32_0 : i32, i32
  }
  func.func @transform_9(%arg0: i32) -> (i32, i32) {
    %c0_i32 = arith.constant 0 : i32
    %c0_i32_0 = arith.constant 0 : i32
    %c0_i32_1 = arith.constant 0 : i32
    return %c0_i32, %c0_i32_0 : i32, i32
  }
  func.func @transform_10(%arg0: i32) -> (i32, i32) {
    %c0_i32 = arith.constant 0 : i32
    %c0_i32_0 = arith.constant 0 : i32
    %c0_i32_1 = arith.constant 0 : i32
    return %c0_i32, %c0_i32_0 : i32, i32
  }
  func.func @transform_11(%arg0: i32) -> (i32, i32) {
    %c0_i32 = arith.constant 0 : i32
    %c0_i32_0 = arith.constant 0 : i32
    %c0_i32_1 = arith.constant 0 : i32
    return %c0_i32, %c0_i32_0 : i32, i32
  }
  func.func @transform_12(%arg0: i32) -> (i32, i32) {
    %c0_i32 = arith.constant 0 : i32
    %c0_i32_0 = arith.constant 0 : i32
    %c0_i32_1 = arith.constant 0 : i32
    return %c0_i32, %c0_i32_0 : i32, i32
  }
  func.func @transform_13(%arg0: i32) -> (i32, i32, i32) {
    %c0_i32 = arith.constant 0 : i32
    %c0_i32_0 = arith.constant 0 : i32
    %c0_i32_1 = arith.constant 0 : i32
    return %arg0, %c0_i32, %c0_i32_0 : i32, i32, i32
  }
}

</mosaic_0001>

<bundles_post_ra>
// kernel: tpu_custom_call.1
= control target key start
LH: loop header
LB: loop body
LE: loop exit
PB: predicated region body
PF: predicated region fallthrough
CT: control target
= control target key end

     0   :  { %s8378_s0 = inlined_call_operand.hbm [shape: f32[2,128,128], index: 0, kind: input, shape index: {}]   ;;  %s8379_s1 = inlined_call_operand.hbm [shape: f32[1,128], index: 1, kind: input, shape index: {}]   ;;  %s8380_s2 = inlined_call_operand.hbm [shape: f32[1,128], index: 2, kind: input, shape index: {}]   ;;  %s8381_s3 = inlined_call_operand.hbm [shape: bf16[128,384], index: 3, kind: input, shape index: {}]   ;;  %s8382_s4 = inlined_call_operand.vmem [shape: f32[1,384], index: 4, kind: input, shape index: {}]   ;;  %s8383_s5 = inlined_call_operand.hbm [shape: bf16[128,128], index: 5, kind: input, shape index: {}]   ;;  %s8384_s6 = inlined_call_operand.vmem [shape: f32[1,128], index: 6, kind: input, shape index: {}]   ;;  %s8385_s7 = inlined_call_operand.vmem [shape: f32[1,128], index: 7, kind: input, shape index: {}]   ;;  %s8386_s8 = inlined_call_operand.vmem [shape: f32[1,128], index: 8, kind: input, shape index: {}]   ;;  %s8387_s9 = inlined_call_operand.hbm [shape: bf16[128,512], index: 9, kind: input, shape index: {}]   ;;  %s8388_s10 = inlined_call_operand.vmem [shape: f32[1,512], index: 10, kind: input, shape index: {}]   ;;  %s8389_s11 = inlined_call_operand.hbm [shape: bf16[512,128], index: 11, kind: input, shape index: {}]   ;;  %s8390_s12 = inlined_call_operand.vmem [shape: f32[1,128], index: 12, kind: input, shape index: {}]   ;;  %s8391_s13 = inlined_call_operand.hbm [shape: f32[2,128,128], index: 13, kind: output, shape index: {}]  }
   0x1   :  { %8453 = sst [smem:[#allocation61_spill]] %s8379_s1 }
   0x2   :  { %8454 = sst [smem:[#allocation62_spill]] %s8380_s2 }
   0x3   :  { %8455 = sst [smem:[#allocation63_spill]] %s8381_s3 }
   0x4   :  { %8456 = sst [smem:[#allocation64_spill]] %s8383_s5 }
   0x5   :  { %8457 = sst [smem:[#allocation65_spill]] %s8387_s9 }
   0x6   :  { %8458 = sst [smem:[#allocation66_spill]] %s8389_s11 }
   0x7   :  { %18 = vsyncpa [#allocation3], 0 }
   0x8   :  { %20 = vsyncpa [#allocation3 + $0x1], 0 }
   0x9   :  { %21 = vsyncpa [#allocation6], 0 }
   0xa   :  { %22 = vsyncpa [#allocation9], 0 }
   0xb   :  { %23 = vsyncpa [#allocation12], 0 }
   0xc   :  { %24 = vsyncpa [#allocation4], 0 }
   0xd   :  { %26 = vsyncpa [#allocation4 + $0x1], 0  ;;  %s5937_s25 = smov 0   ;;  %s5939_s26 = smov 0  }
   0xe   :  { %s5941_s27 = smov 0   ;;  %s5943_s28 = smov 0  }
   0xf LB: > { %s5847_s29 = smov [#allocation5]   ;;  %s5958_s14 = sadd.s32 4294967295, %s5845_s28   ;;  %s5845_s28 = sphi %s5943_s28, %s8606_s28   ;;  %s5841_s27 = sphi %s5941_s27, %s8605_s27   ;;  %s5837_s26 = sphi %s5939_s26, %s8604_s26   ;;  %s5833_s25 = sphi %s5937_s25, %s8603_s25  }
  0x10   : > { %s354_s30 = sshll.u32 %s5847_s29, 4  ;;  %p4417_p0 = scmp.ge.s32.totalorder %s5845_s28, 1  ;;  %s355_s30 = int_to_ptr.vmem [resolvable:$true] %s354_s30 }
  0x11   : > { %p8392_p1 = scmp.eq.s32.totalorder %s5958_s14, 0  ;;  %p341_p2 = scmp.lt.s32.totalorder %s5845_s28, 3 }
  0x12   : > { %s5848_s16 = smov [#allocation8]   ;;  %s5849_s19 = smov [#allocation11]  }
  0x13   : > { %p5963_p3 = pnand %p4417_p0, %p341_p2  ;;  %s375_s17 = sshll.u32 %s5848_s16, 4  ;;  %s5970_s17 = int_to_ptr.vmem [resolvable:$true] %s375_s17 }
  0x14   : > { %s413_s20 = sshll.u32 %s5849_s19, 4  ;;  %s5596_s22 = scalar_lea.vmem %s355_s30, 16  ;;  %s5978_s20 = int_to_ptr.vmem [resolvable:$true] %s413_s20 }
  0x15   : > { %s8459_s15 = scalar_select %p5963_p3, 1, 0 }
  0x16   : > { %p5038_p5 = pneg %p5963_p3  ;;  %p5597_p8 = scmp.ne.s32.totalorder %s355_s30, %s5596_s22 }
  0x17   : > { %s5603_s23 = scalar_lea.vmem %s355_s30, 32  ;;  %p5604_p11 = scmp.lt.s32.totalorder %s355_s30, %s355_s30 }
  0x18   : > { %p5974_p6 = pnand %p5038_p5, %p8392_p1  ;;  %p5605_p12 = scmp.lt.s32.totalorder %s5603_s23, %s5596_s22 }
  0x1a   : > { %p5982_p7 = pneg %p5974_p6  ;;  %p5606_p13 = por %p5605_p12, %p5604_p11 }
  0x1c   : > { %p5599_p9 = pnand %p5597_p8, %p5982_p7 }
  0x1e   : > { %p5600_p10 = pneg %p5599_p9 }
  0x20   : > { %p5607_p0 = pnand %p5606_p13, %p5600_p10 }
  0x22   : > { %5610 = shalt.err (!%p5607_p0)
}
  0x23   : > { %s8462_s1 = sld [smem:[#allocation61_spill]]  ;;  %s5622_s16 = scalar_lea.vmem %s5970_s17, 3072 }
  0x24   : > { %p5623_p2 = scmp.ne.s32.totalorder %s5970_s17, %s5622_s16  ;;  %p5630_p9 = scmp.lt.s32.totalorder %s5970_s17, %s5970_s17 }
  0x25   : > { %p5631_p11 = scmp.lt.s32.totalorder %s5622_s16, %s5622_s16 }
  0x26   : > { %p5625_p5 = pnand %p5623_p2, %p5982_p7 }
  0x27   : > { %p5632_p10 = por %p5631_p11, %p5630_p9 }
  0x28   : > { %p5626_p8 = pneg %p5625_p5 }
  0x29   : > { %5041 = dma.hbm_to_vmem [thread:$0]  (!%p5974_p6), %s8462_s1, 16, %s355_s30, [#allocation6]  }
  0x2a   : > { %p5633_p12 = pnand %p5632_p10, %p5626_p8 }
  0x2c   : > { %5636 = shalt.err (!%p5633_p12)
}
  0x2d   : > { %s5850_s19 = smov 192   ;;  %s5851_s22 = smov 12  }
  0x2e   : > { %s8463_s3 = sld [smem:[#allocation63_spill]]  ;;  %s5648_s24 = scalar_lea.vmem %s5978_s20, 4096 }
  0x2f   : > { %p5649_p13 = scmp.ne.s32.totalorder %s5978_s20, %s5648_s24  ;;  %p5656_p5 = scmp.lt.s32.totalorder %s5978_s20, %s5978_s20 }
  0x30   : > { %p5657_p8 = scmp.lt.s32.totalorder %s5648_s24, %s5648_s24 }
  0x31   : > { %p5651_p0 = pnand %p5649_p13, %p5982_p7 }
  0x32   : > { %p5658_p9 = por %p5657_p8, %p5656_p5 }
  0x33   : > { %p5652_p2 = pneg %p5651_p0 }
  0x34   : > { %5047 = dma.hbm_to_vmem [thread:$0]  (!%p5974_p6), %s8463_s3, 3072, %s5970_s17, [#allocation9], %s5850_s19, %s5850_s19, %s5851_s22  }
  0x35   : > { %p5659_p11 = pnand %p5658_p9, %p5652_p2 }
  0x37   : > { %5662 = shalt.err (!%p5659_p11)
}
  0x38   : > { %s5852_s29 = smov 256   ;;  %s5853_s16 = smov 16  }
  0x39   : > { %s8464_s9 = sld [smem:[#allocation65_spill]]  ;;  %s5854_s17 = smov [#allocation7]  }
  0x3a   : > { %s365_s19 = sshll.u32 %s5854_s17, 4  ;;  %s5855_s22 = smov [#allocation10]   ;;  %s366_s19 = int_to_ptr.vmem [resolvable:$true] %s365_s19 }
  0x3b   : > { %s391_s23 = sshll.u32 %s5855_s22, 4  ;;  %s5674_s3 = scalar_lea.vmem %s366_s19, 16  ;;  %s392_s23 = int_to_ptr.vmem [resolvable:$true] %s391_s23 }
  0x3c   : > { %p5675_p10 = scmp.ne.s32.totalorder %s366_s19, %s5674_s3  ;;  %s5681_s24 = scalar_lea.vmem %s366_s19, 32 }
  0x3d   : > { %p5682_p0 = scmp.lt.s32.totalorder %s366_s19, %s366_s19  ;;  %p5683_p2 = scmp.lt.s32.totalorder %s5681_s24, %s5674_s3 }
  0x3e   : > { %p5677_p12 = pnand %p5675_p10, %p5982_p7 }
  0x3f   : > { %5053 = dma.hbm_to_vmem [thread:$0]  (!%p5974_p6), %s8464_s9, 4096, %s5978_s20, [#allocation12], %s5852_s29, %s5852_s29, %s5853_s16  }
  0x40   : > { %p5678_p13 = pneg %p5677_p12  ;;  %p5684_p5 = por %p5683_p2, %p5682_p0 }
  0x42   : > { %p5685_p8 = pnand %p5684_p5, %p5678_p13 }
  0x44   : > { %5688 = shalt.err (!%p5685_p8)
}
  0x45   : > { %s8465_s2 = sld [smem:[#allocation62_spill]]  ;;  %s5700_s29 = scalar_lea.vmem %s392_s23, 1024 }
  0x46   : > { %p5701_p9 = scmp.ne.s32.totalorder %s392_s23, %s5700_s29  ;;  %p5708_p12 = scmp.lt.s32.totalorder %s392_s23, %s392_s23 }
  0x47   : > { %p5709_p4 = scmp.lt.s32.totalorder %s5700_s29, %s5700_s29 }
  0x48   : > { %p5703_p11 = pnand %p5701_p9, %p5982_p7 }
  0x49   : > { %p5710_p1 = por %p5709_p4, %p5708_p12 }
  0x4a   : > { %p5704_p10 = pneg %p5703_p11 }
  0x4b   : > { %5044 = dma.hbm_to_vmem [thread:$0]  (!%p5974_p6), %s8465_s2, 16, %s366_s19, [#allocation6]  }
  0x4c   : > { %p5711_p3 = pnand %p5710_p1, %p5704_p10 }
  0x4e   : > { %5714 = shalt.err (!%p5711_p3)
}
  0x4f   : > { %s5856_s3 = smov 64   ;;  %s5857_s16 = smov 4  }
  0x50   : > { %s8466_s5 = sld [smem:[#allocation64_spill]]  ;;  %s5858_s19 = smov [#allocation13]  }
  0x51   : > { %s429_s22 = sshll.u32 %s5858_s19, 4  ;;  %s430_s22 = int_to_ptr.vmem [resolvable:$true] %s429_s22 }
  0x52   : > { %s5726_s24 = scalar_lea.vmem %s430_s22, 4096  ;;  %p5734_p4 = scmp.lt.s32.totalorder %s430_s22, %s430_s22 }
  0x53   : > { %p5727_p13 = scmp.ne.s32.totalorder %s430_s22, %s5726_s24  ;;  %p5735_p1 = scmp.lt.s32.totalorder %s5726_s24, %s5726_s24 }
  0x55   : > { %p5729_p0 = pnand %p5727_p13, %p5982_p7  ;;  %p5736_p3 = por %p5735_p1, %p5734_p4 }
  0x56   : > { %5050 = dma.hbm_to_vmem [thread:$0]  (!%p5974_p6), %s8466_s5, 1024, %s392_s23, [#allocation9], %s5856_s3, %s5856_s3, %s5857_s16  }
  0x57   : > { %p5730_p2 = pneg %p5729_p0 }
  0x59   : > { %p5737_p5 = pnand %p5736_p3, %p5730_p2 }
  0x5b   : > { %5740 = shalt.err (!%p5737_p5)
}
  0x5c   : > { %s8467_s11 = sld [smem:[#allocation66_spill]]  ;;  %s4416_s21 = sadd.s32 4294967294, %s5845_s28  }
  0x5d   : > { %s6040_s18 = sadd.s32 1, %s5845_s28   ;;  %s39_s29 = sadd.s32 1, %s5841_s27 }
  0x5e   : > { %s36_s23 = ssub.s32 %s5845_s28, %s6040_s18  ;;  %p46_p8 = scmp.ne.s32.totalorder %s5841_s27, %s5837_s26 }
  0x5f   : > { %p37_p7 = scmp.eq.s32.totalorder %s36_s23, 0  ;;  %p47_p9 = scmp.eq.s32.totalorder %s5845_s28, 0 }
  0x60   : > { %p52_p11 = scmp.ne.s32.totalorder %s5837_s26, %s5833_s25  ;;  %p8470_p12 = scmp.eq.s32.totalorder %s5958_s14, 0 }
  0x61   : > { %s6051_s30 = scalar_select %p37_p7, %s5841_s27, %s39_s29  }
  0x62   : > { %5056 = dma.hbm_to_vmem [thread:$0]  (!%p5974_p6), %s8467_s11, 4096, %s430_s22, [#allocation12], %s5856_s3, %s5856_s3, %s5857_s16  }
  0x63   : > { %8468 = sst [smem:[#allocation20_spill]] %s6051_s30  ;;  %p6053_p10 = por %p47_p9, %p46_p8 }
  0x64   : > { %p6059_p6 = por %p8470_p12, %p52_p11  ;;  %p328_p13 = scmp.eq.s32.totalorder %s5958_s14, 1 }
  0x65   : > { %p334_p0 = scmp.eq.s32.totalorder %s4416_s21, 1  ;;  %p5071_p2 = scmp.lt.s32.totalorder %s5845_s28, 2 }
  0x66   : > { %s8471_s3 = scalar_select %p6059_p6, 1, 0 }
  0x67   : > { %s446_s16 = sand.u32 1, %s5841_s27   ;;  %p6066_p4 = por %p328_p13, %p46_p8 }
  0x68   : > { %p6070_p1 = por %p334_p0, %p52_p11  ;;  %s4425_s24 = sshll.u32 %s446_s16, 7 }
  0x69   : > { %s8472_s19 = scalar_select %p6066_p4, 1, 0 }
  0x6a   : > { %s8473_s22 = scalar_select %p6070_p1, 1, 0 }
  0x6b   : > { %s4560_s1 = sshll.u32 %s5845_s28, 11  ;;  %s450_s21 = scalar_lea.vmem [#allocation2], %s4425_s24 }
  0x6c   : > { %s6078_s29 = scalar_lea.hbm %s8378_s0, %s4560_s1  ;;  %s457_s2 = sshll.u32 %s450_s21, 4  ;;  %s6080_s2 = int_to_ptr.vmem [resolvable:$true] %s457_s2 }
  0x6d   : > { %p6084_p3 = pnand %p5071_p2, %p6053_p10  ;;  %s6088_s9 = scalar_lea.sflag [#allocation3], %s446_s16 }
  0x6e   : > { %s5741_s11 = scalar_lea.hbm %s6078_s29, 2048  ;;  %s5746_s24 = scalar_lea.hbm %s8378_s0, 4096 }
  0x6f   : > { %p5742_p5 = scmp.ne.s32.totalorder %s6078_s29, %s5741_s11  ;;  %p5743_p7 = pneg %p6084_p3 }
  0x70   : > { %p5747_p11 = scmp.lt.s32.totalorder %s6078_s29, %s8378_s0  ;;  %p5748_p10 = scmp.lt.s32.totalorder %s5746_s24, %s5741_s11 }
  0x71   : > { %p5744_p8 = pnand %p5743_p7, %p5742_p5 }
  0x72   : > { %p5749_p12 = por %p5748_p10, %p5747_p11 }
  0x73   : > { %p5745_p9 = pneg %p5744_p8 }
  0x75   : > { %p5750_p13 = pnand %p5749_p12, %p5745_p9 }
  0x77   : > { %5753 = shalt.err (!%p5750_p13)
}
  0x78   : > { %s5754_s17 = scalar_lea.vmem %s6080_s2, 2048  ;;  %s5859_s16 = smov [#allocation2]  }
  0x79   : > { %p5755_p0 = scmp.ne.s32.totalorder %s6080_s2, %s5754_s17  ;;  %s5759_s30 = sshll.u32 %s5859_s16, 4  ;;  %s5760_s30 = int_to_ptr.vmem [resolvable:$false] %s5759_s30 }
  0x7a   : > { %s5761_s1 = scalar_lea.vmem %s5760_s30, 4096  ;;  %p5762_p8 = scmp.lt.s32.totalorder %s6080_s2, %s5760_s30 }
  0x7b   : > { %p5757_p2 = pnand %p5755_p0, %p5743_p7  ;;  %p5763_p1 = scmp.lt.s32.totalorder %s5761_s1, %s5754_s17 }
  0x7d   : > { %p5758_p5 = pneg %p5757_p2  ;;  %p5764_p4 = por %p5763_p1, %p5762_p8 }
  0x7f   : > { %p5765_p6 = pnand %p5764_p4, %p5758_p5 }
  0x81   : > { %5768 = shalt.err (!%p5765_p6)
}
  0x82   : > { %s5860_s11 = smov 128   ;;  %s5861_s20 = smov 8  }
  0x83   : > { %5060 = dma.hbm_to_vmem [thread:$0]  (!%p6084_p3), %s6078_s29, 2048, %s6080_s2, %s6088_s9, %s5860_s11, %s5860_s11, %s5861_s20  }
  0x84   : > { %p8475_p7 = scmp.ne.s32.totalorder %s8459_s15, 0 }
  0x86   : > { %469 = sbr.rel (%p8475_p7) target bundleno = 3066 (0xbfa), region = 72 }
  0x8b   : > { %s6112_s24 = sand.u32 1, %s5837_s26   ;;  %p8476_p6 = scmp.ne.s32.totalorder %s8471_s3, 0 }
  0x8c   : > { %s4429_s30 = sshll.u32 %s6112_s24, 7  ;;  %s472_s23 = scalar_lea.sflag [#allocation3], %s6112_s24 }
  0x8d   : > { %s6118_s21 = scalar_lea.vmem [#allocation2], %s4429_s30 }
  0x8e   : > { %5812 = dma.done.wait (%p8476_p6), %s472_s23, 2048  }
  0x8f   : > { %5814 = vsyncadd (%p8476_p6), %s472_s23, 4294965248  ;;  %p8477_p4 = scmp.eq.s32.totalorder %s5958_s14, 0 }
  0x91   : > { %5816 = dma.done.wait (%p8477_p4), [#allocation6], 32   ;;  %p8478_p1 = pmov %p8477_p4 }
  0x93   : > { %5818 = vsyncadd (%p8478_p1), [#allocation6], 4294967264  ;;  %p8479_p3 = pmov %p8478_p1 }
  0x94   : > { %p8480_p9 = pmov %p8478_p1 }
  0x95   : > { %5820 = dma.done.wait (%p8479_p3), [#allocation9], 4096  }
  0x96   : > { %5822 = vsyncadd (%p8480_p9), [#allocation9], 4294963200  ;;  %p8481_p11 = pmov %p8478_p1 }
  0x97   : > { %p8482_p10 = pmov %p8478_p1 }
  0x98   : > { %5824 = dma.done.wait (%p8481_p11), [#allocation12], 8192  }
  0x99   : > { %5826 = vsyncadd (%p8482_p10), [#allocation12], 4294959104  ;;  %v6137_v0 = vld [vmem:[%s6118_s21] sm:$0xff]  ;;  %v6140_v1 = vld [vmem:[%s6118_s21 + $0x8] sm:$0xff]  ;;  %v8400_v48 = vmov 0   ;;  %vm1233_vm0 = vcmask 523264  }
  0x9a   : > { %577 = vadd.xlane.f32.xlu0 %v6137_v0  ;;  %v561_v2 = vmul.f32 %v6137_v0, %v6137_v0  ;;  %v562_v3 = vmul.f32 %v6140_v1, %v6140_v1  ;;  %v6149_v4 = vld [vmem:[%s6118_s21 + $0x10] sm:$0xff]  ;;  %v6152_v5 = vld [vmem:[%s6118_s21 + $0x18] sm:$0xff]  ;;  %v6161_v9 = vld [vmem:[%s6118_s21 + $0x20] sm:$0xff]  ;;  %1031 = vmatprep.mubr.bf16.mxu0 %v8400_v48  ;;  %s5863_s9 = smov 64   ;;  %s8281_s2 = scalar_lea.vmem [#allocation14], %s4429_s30 }
  0x9b   : > { %v563_v6 = vmul.f32 %v6149_v4, %v6149_v4  ;;  %v564_v7 = vmul.f32 %v6152_v5, %v6152_v5  ;;  %v5129_v8 = vld [vmem:[#allocation8 + $0xac] ss:$12 sps:$4 sm:$0xff]   ;;  %v5131_v10 = vld [vmem:[#allocation8 + $0xa8] ss:$12 sps:$4 sm:$0xff]   ;;  %v5134_v13 = vld [vmem:[#allocation8 + $0x90] ss:$12 sps:$4 sm:$0xff]   ;;  %v565_v14 = vmul.f32 %v6161_v9, %v6161_v9 }
  0x9c   : > { %609 = vadd.xlane.f32.xlu1 %v561_v2  ;;  %999 = vmatprep.subr.bf16.mxu0 %v5129_v8  ;;  %v6164_v11 = vld [vmem:[%s6118_s21 + $0x28] sm:$0xff]  ;;  %v5132_v12 = vld [vmem:[#allocation8 + $0x94] ss:$12 sps:$4 sm:$0xff]   ;;  %v5137_v17 = vld [vmem:[#allocation8 + $0xb0] ss:$12 sps:$4 sm:$0xff]   ;;  %s4561_s30 = sshll.u32 %s5958_s14, 11 }
  0x9d   : > { %1000 = vmatpush1.bf16.msra.mxu0 %v5131_v10  ;;  %v566_v15 = vmul.f32 %v6164_v11, %v6164_v11  ;;  %v5135_v16 = vld [vmem:[#allocation8 + $0x7c] ss:$12 sps:$4 sm:$0xff]   ;;  %v6173_v18 = vld [vmem:[%s6118_s21 + $0x30] sm:$0xff]  ;;  %v5138_v19 = vld [vmem:[#allocation8 + $0x78] ss:$12 sps:$4 sm:$0xff]   ;;  %4786 = vmatprep.subr.bf16.mxu1 %v5137_v17  ;;  %s4286_s5 = sshll.u32 %s8281_s2, 4  ;;  %s8331_s3 = scalar_lea.hbm %s8391_s13, %s4561_s30  ;;  %s8333_s5 = int_to_ptr.vmem [resolvable:$true] %s4286_s5 }
  0x9e   : > { %579 = vadd.xlane.f32.xlu0 %v6140_v1  ;;  %1001 = vmatprep.subr.bf16.mxu0 %v5132_v12  ;;  %v6176_v20 = vld [vmem:[%s6118_s21 + $0x38] sm:$0xff]  ;;  %v5139_v21 = vld [vmem:[#allocation8 + $0x64] ss:$12 sps:$4 sm:$0xff]   ;;  %v5142_v23 = vld [vmem:[#allocation8 + $0x60] ss:$12 sps:$4 sm:$0xff]   ;;  %v567_v24 = vmul.f32 %v6173_v18, %v6173_v18  ;;  %s4273_s29 = scalar_lea.sflag [#allocation4], %s6112_s24 }
  0x9f   : > { %4787 = vmatpush3.bf16.msra.mxu1 %v5137_v17  ;;  %v5141_v22 = vld [vmem:[#allocation8 + $0x98] ss:$12 sps:$4 sm:$0xff]   ;;  %v568_v25 = vmul.f32 %v6176_v20, %v6176_v20  ;;  %v6185_v26 = vld [vmem:[%s6118_s21 + $0x40] sm:$0xff]  ;;  %v5146_v29 = vld [vmem:[#allocation8 + $0x48] ss:$12 sps:$4 sm:$0xff]   ;;  %s5769_s17 = scalar_lea.vmem %s8333_s5, 2048 }
  0xa0   : > { %611 = vadd.xlane.f32.xlu1 %v562_v3  ;;  %4788 = vmatprep.subr.bf16.mxu1 %v5141_v22  ;;  %v5143_v27 = vld [vmem:[#allocation8 + $0x4c] ss:$12 sps:$4 sm:$0xff]   ;;  %v6188_v30 = vld [vmem:[%s6118_s21 + $0x48] sm:$0xff]  ;;  %v5147_v31 = vld [vmem:[#allocation8 + $0x34] ss:$12 sps:$4 sm:$0xff]   ;;  %v569_v33 = vmul.f32 %v6185_v26, %v6185_v26  ;;  %p5770_p12 = scmp.ne.s32.totalorder %s8333_s5, %s5769_s17  ;;  %p8599_p13 = scmp.ne.s32.totalorder %s8472_s19, 0 }
  0xa1   : > { %1002 = vmatpush1.bf16.msra.mxu0 %v5134_v13  ;;  %v5145_v28 = vld [vmem:[#allocation8 + $0x80] ss:$12 sps:$4 sm:$0xff]   ;;  %v5149_v32 = vld [vmem:[#allocation8 + $0x68] ss:$12 sps:$4 sm:$0xff]   ;;  %v5150_v34 = vld [vmem:[#allocation8 + $0x30] ss:$12 sps:$4 sm:$0xff]   ;;  %v570_v35 = vmul.f32 %v6188_v30, %v6188_v30 }
  0xa2   : > { %581 = vadd.xlane.f32.xlu0 %v6149_v4  ;;  %1003 = vmatprep.subr.bf16.mxu0 %v5135_v16  ;;  %v5151_v36 = vld [vmem:[#allocation8 + $0x1c] ss:$12 sps:$4 sm:$0xff]   ;;  %v6197_v38 = vld [vmem:[%s6118_s21 + $0x50] sm:$0xff]  ;;  %v5154_v39 = vld [vmem:[#allocation8 + $0x18] ss:$12 sps:$4 sm:$0xff]   ;;  %p5771_p0 = pnand %p5770_p12, %p8599_p13  ;;  %s5864_s14 = smov [#allocation14]  }
  0xa3   : > { %4789 = vmatpush3.bf16.msra.mxu1 %v5141_v22  ;;  %v5153_v37 = vld [vmem:[#allocation8 + $0x50] ss:$12 sps:$4 sm:$0xff]   ;;  %v6200_v40 = vld [vmem:[%s6118_s21 + $0x58] sm:$0xff]  ;;  %v571_v43 = vmul.f32 %v6197_v38, %v6197_v38  ;;  %v5158_v44 = vld [vmem:[#allocation8] ss:$12 sps:$4 sm:$0xff]   ;;  %s5773_s16 = sshll.u32 %s5864_s14, 4  ;;  %s5774_s16 = int_to_ptr.vmem [resolvable:$false] %s5773_s16 }
  0xa4   : > { %583 = vadd.xlane.f32.xlu1 %v6152_v5  ;;  %4790 = vmatprep.subr.bf16.mxu1 %v5145_v28  ;;  %v5155_v41 = vld [vmem:[#allocation8 + $0x4] ss:$12 sps:$4 sm:$0xff]   ;;  %v572_v45 = vmul.f32 %v6200_v40, %v6200_v40  ;;  %v6209_v46 = vld [vmem:[%s6118_s21 + $0x60] sm:$0xff]  ;;  %v5160_v50 = vld [vmem:[#allocation8 + $0x8] ss:$12 sps:$4 sm:$0xff]   ;;  %p5772_p2 = pneg %p5771_p0  ;;  %s5775_s1 = scalar_lea.vmem %s5774_s16, 4096 }
  0xa5   : > { %1004 = vmatpush1.bf16.msra.mxu0 %v5138_v19  ;;  %v5157_v42 = vld [vmem:[#allocation8 + $0x38] ss:$12 sps:$4 sm:$0xff]   ;;  %v5159_v47 = vld [vmem:[#allocation8 + $0x20] ss:$12 sps:$4 sm:$0xff]   ;;  %v573_v51 = vmul.f32 %v6209_v46, %v6209_v46  ;;  %p5776_p5 = scmp.lt.s32.totalorder %s8333_s5, %s5774_s16  ;;  %p5777_p8 = scmp.lt.s32.totalorder %s5775_s1, %s5769_s17 }
  0xa6   : > { %613 = vadd.xlane.f32.xlu0 %v563_v6  ;;  %1005 = vmatprep.subr.bf16.mxu0 %v5139_v21  ;;  %v6213_v49 = vld [vmem:[%s6118_s21 + $0x68] sm:$0xff]  ;;  %v6222_v53 = vld [vmem:[%s6118_s21 + $0x70] sm:$0xff]  ;;  %v6225_v54 = vld [vmem:[%s6118_s21 + $0x78] sm:$0xff] }
  0xa7   : > { %4791 = vmatpush3.bf16.msra.mxu1 %v5145_v28  ;;  %v574_v52 = vmul.f32 %v6213_v49, %v6213_v49  ;;  %v575_v55 = vmul.f32 %v6222_v53, %v6222_v53  ;;  %v576_v56 = vmul.f32 %v6225_v54, %v6225_v54  ;;  %p5778_p7 = por %p5777_p8, %p5776_p5 }
  0xa8   : > { %615 = vadd.xlane.f32.xlu1 %v564_v7  ;;  %4792 = vmatprep.subr.bf16.mxu1 %v5149_v32 }
  0xa9   : > { %1006 = vmatpush1.bf16.msra.mxu0 %v5142_v23  ;;  %p5779_p6 = pnand %p5778_p7, %p5772_p2 }
  0xaa   : > { %585 = vadd.xlane.f32.xlu0 %v6161_v9  ;;  %1007 = vmatprep.subr.bf16.mxu0 %v5143_v27 }
  0xab   : > { %4793 = vmatpush3.bf16.msra.mxu1 %v5149_v32 }
  0xac   : > { %587 = vadd.xlane.f32.xlu1 %v6164_v11  ;;  %4794 = vmatprep.subr.bf16.mxu1 %v5153_v37 }
  0xad   : > { %1008 = vmatpush1.bf16.msra.mxu0 %v5146_v29 }
  0xae   : > { %617 = vadd.xlane.f32.xlu0 %v565_v14  ;;  %1009 = vmatprep.subr.bf16.mxu0 %v5147_v31 }
  0xaf   : > { %4795 = vmatpush3.bf16.msra.mxu1 %v5153_v37 }
  0xb0   : > { %619 = vadd.xlane.f32.xlu1 %v566_v15  ;;  %4796 = vmatprep.subr.bf16.mxu1 %v5157_v42 }
  0xb1   : > { %1010 = vmatpush1.bf16.msra.mxu0 %v5150_v34 }
  0xb2   : > { %589 = vadd.xlane.f32.xlu0 %v6173_v18  ;;  %1011 = vmatprep.subr.bf16.mxu0 %v5151_v36 }
  0xb3   : > { %4797 = vmatpush3.bf16.msra.mxu1 %v5157_v42 }
  0xb4   : > { %591 = vadd.xlane.f32.xlu1 %v6176_v20  ;;  %4798 = vmatprep.subr.bf16.mxu1 %v5159_v47 }
  0xb5   : > { %1012 = vmatpush1.bf16.msra.mxu0 %v5154_v39 }
  0xb6   : > { %621 = vadd.xlane.f32.xlu0 %v567_v24  ;;  %1013 = vmatprep.subr.bf16.mxu0 %v5155_v41 }
  0xb7   : > { %4799 = vmatpush3.bf16.msra.mxu1 %v5159_v47 }
  0xb8   : > { %623 = vadd.xlane.f32.xlu1 %v568_v25  ;;  %4800 = vmatprep.subr.bf16.mxu1 %v5160_v50 }
  0xb9   : > { %1014 = vmatpush1.bf16.msra.mxu0 %v5158_v44 }
  0xba   : > { %593 = vadd.xlane.f32.xlu0 %v6185_v26 }
  0xbb   : > { %4801 = vmatpush3.bf16.msra.mxu1 %v5160_v50 }
  0xbc   : > { %595 = vadd.xlane.f32.xlu1 %v6188_v30 }
  0xbe   : > { %625 = vadd.xlane.f32.xlu0 %v569_v33 }
  0xc0   : > { %627 = vadd.xlane.f32.xlu1 %v570_v35 }
  0xc2   : > { %597 = vadd.xlane.f32.xlu0 %v6197_v38 }
  0xc4   : > { %599 = vadd.xlane.f32.xlu1 %v6200_v40 }
  0xc6   : > { %629 = vadd.xlane.f32.xlu0 %v571_v43 }
  0xc8   : > { %631 = vadd.xlane.f32.xlu1 %v572_v45 }
  0xca   : > { %601 = vadd.xlane.f32.xlu0 %v6209_v46 }
  0xcc   : > { %603 = vadd.xlane.f32.xlu1 %v6213_v49 }
  0xce   : > { %633 = vadd.xlane.f32.xlu0 %v573_v51 }
  0xd0   : > { %635 = vadd.xlane.f32.xlu1 %v574_v52 }
  0xd2   : > { %605 = vadd.xlane.f32.xlu0 %v6222_v53 }
  0xd4   : > { %607 = vadd.xlane.f32.xlu1 %v6225_v54 }
  0xd6   : > { %637 = vadd.xlane.f32.xlu0 %v575_v55 }
  0xd8   : > { %639 = vadd.xlane.f32.xlu1 %v576_v56  ;;  %v6252_v56 = vld [vmem:[#allocation5] ss:$0 sm:$0xff] }
 0x123   : > { %v578_v57 = vpop.xlane.xlu0 %577 }
 0x124   : > { %v642_v58 = vmul.f32 0.0078125, %v578_v57 }
 0x125   : > { %v610_v59 = vpop.xlane.xlu1 %609 }
 0x126   : > { %v674_v60 = vmul.f32 %v642_v58, %v642_v58  ;;  %v658_v61 = vmul.f32 0.0078125, %v610_v59  ;;  %v706_v41 = vsub.f32 %v6137_v0, %v642_v58 }
 0x127   : > { %v580_v62 = vpop.xlane.xlu0 %579 }
 0x128   : > { %v690_v63 = vsub.f32 %v658_v61, %v674_v60  ;;  %v643_v2 = vmul.f32 0.0078125, %v580_v62 }
 0x129   : > { %v612_v3 = vpop.xlane.xlu1 %611 }
 0x12a   : > { %v722_v6 = vadd.f32 1e-05, %v690_v63  ;;  %v675_v7 = vmul.f32 %v643_v2, %v643_v2  ;;  %v659_v8 = vmul.f32 0.0078125, %v612_v3  ;;  %v707_v59 = vsub.f32 %v6140_v1, %v643_v2 }
 0x12b   : > { %v582_v10 = vpop.xlane.xlu0 %581 }
 0x12c   : > { %5249 = vrsqrt.f32 %v722_v6  ;;  %v691_v12 = vsub.f32 %v659_v8, %v675_v7  ;;  %v6233_v13 = vmul.f32 0.0078125, %v582_v10  ;;  %v6260_v7 = vld [vmem:[#allocation7] ss:$0 sm:$0xff] }
 0x12d   : > { %v584_v14 = vpop.xlane.xlu1 %583 }
 0x12e   : > { %v723_v15 = vadd.f32 1e-05, %v691_v12  ;;  %v676_v16 = vmul.f32 %v6233_v13, %v6233_v13  ;;  %v6237_v17 = vmul.f32 0.0078125, %v584_v14  ;;  %v708_v1 = vsub.f32 %v6149_v4, %v6233_v13 }
 0x12f   : > { %v614_v19 = vpop.xlane.xlu0 %613 }
 0x130   : > { %5251 = vrsqrt.f32 %v723_v15  ;;  %v660_v21 = vmul.f32 0.0078125, %v614_v19  ;;  %v677_v23 = vmul.f32 %v6237_v17, %v6237_v17  ;;  %v709_v4 = vsub.f32 %v6152_v5, %v6237_v17 }
 0x131   : > { %v616_v22 = vpop.xlane.xlu1 %615 }
 0x132   : > { %v692_v24 = vsub.f32 %v660_v21, %v676_v16  ;;  %v661_v25 = vmul.f32 0.0078125, %v616_v22 }
 0x133   : > { %v586_v27 = vpop.xlane.xlu0 %585 }
 0x134   : > { %v724_v28 = vadd.f32 1e-05, %v692_v24  ;;  %v693_v29 = vsub.f32 %v661_v25, %v677_v23  ;;  %v6241_v31 = vmul.f32 0.0078125, %v586_v27 }
 0x135   : > { %v588_v32 = vpop.xlane.xlu1 %587 }
 0x136   : > { %5253 = vrsqrt.f32 %v724_v28  ;;  %v725_v33 = vadd.f32 1e-05, %v693_v29  ;;  %v678_v34 = vmul.f32 %v6241_v31, %v6241_v31  ;;  %v6245_v35 = vmul.f32 0.0078125, %v588_v32 }
 0x137   : > { %v618_v36 = vpop.xlane.xlu0 %617 }
 0x138   : > { %5255 = vrsqrt.f32 %v725_v33  ;;  %v662_v37 = vmul.f32 0.0078125, %v618_v36  ;;  %v679_v43 = vmul.f32 %v6245_v35, %v6245_v35 }
 0x139   : > { %v5250_v39 = vpop.eup %5249  ;;  %v620_v42 = vpop.xlane.xlu1 %619 }
 0x13a   : > { %v694_v44 = vsub.f32 %v662_v37, %v678_v34  ;;  %v663_v45 = vmul.f32 0.0078125, %v620_v42  ;;  %v754_v50 = vmul.f32 %v5250_v39, %v706_v41  ;;  %v710_v41 = vsub.f32 %v6161_v9, %v6241_v31 }
 0x13b   : > { %v590_v47 = vpop.xlane.xlu0 %589  ;;  %v711_v9 = vsub.f32 %v6164_v11, %v6245_v35 }
 0x13c   : > { %v726_v51 = vadd.f32 1e-05, %v694_v44  ;;  %v695_v52 = vsub.f32 %v663_v45, %v679_v43  ;;  %v6250_v55 = vmul.f32 0.0078125, %v590_v47  ;;  %v776_v3 = vmul.f32 %v6252_v56, %v754_v50 }
 0x13d   : > { %v5252_v57 = vpop.eup %5251  ;;  %v592_v60 = vpop.xlane.xlu1 %591 }
 0x13e   : > { %5257 = vrsqrt.f32 %v726_v51  ;;  %v727_v0 = vadd.f32 1e-05, %v695_v52  ;;  %v680_v58 = vmul.f32 %v6250_v55, %v6250_v55  ;;  %v6257_v61 = vmul.f32 0.0078125, %v592_v60 }
 0x13f   : > { %v622_v62 = vpop.xlane.xlu0 %621  ;;  %v755_v63 = vmul.f32 %v5252_v57, %v707_v59  ;;  %v798_v19 = vadd.f32 %v6260_v7, %v776_v3 }
 0x140   : > { %5259 = vrsqrt.f32 %v727_v0  ;;  %v664_v6 = vmul.f32 0.0078125, %v622_v62  ;;  %v681_v2 = vmul.f32 %v6257_v61, %v6257_v61 }
 0x141   : > { %v624_v8 = vpop.xlane.xlu1 %623  ;;  %v777_v10 = vmul.f32 %v6252_v56, %v755_v63 }
 0x142   : > { %v696_v12 = vsub.f32 %v664_v6, %v680_v58  ;;  %v665_v14 = vmul.f32 0.0078125, %v624_v8 }
 0x143   : > { %v5254_v15 = vpop.eup %5253  ;;  %v594_v16 = vpop.xlane.xlu0 %593  ;;  %v799_v21 = vadd.f32 %v6260_v7, %v777_v10 }
 0x144   : > { %v728_v22 = vadd.f32 1e-05, %v696_v12  ;;  %v697_v23 = vsub.f32 %v665_v14, %v681_v2  ;;  %v6269_v24 = vmul.f32 0.0078125, %v594_v16  ;;  %v756_v25 = vmul.f32 %v5254_v15, %v708_v1 }
 0x145   : > { %v5256_v27 = vpop.eup %5255  ;;  %v596_v13 = vpop.xlane.xlu1 %595  ;;  %v814_v28 = vpack.c.bf16 %v799_v21, %v798_v19  ;;  %v712_v2 = vsub.f32 %v6173_v18, %v6250_v55  ;;  %v713_v18 = vsub.f32 %v6176_v20, %v6257_v61 }
 0x146   : > { %5261 = vrsqrt.f32 %v728_v22  ;;  %v729_v29 = vadd.f32 1e-05, %v697_v23  ;;  %v682_v32 = vmul.f32 %v6269_v24, %v6269_v24  ;;  %v6275_v33 = vmul.f32 0.0078125, %v596_v13 }
 0x147   : > { %1032 = vmatmul.mubr.bf16.vlgmr.msra.gmra.mxu0 %v814_v28  ;;  %4802 = vmatprep.mubr.bf16.mxu1 %v814_v28  ;;  %v626_v34 = vpop.xlane.xlu0 %625  ;;  %v757_v36 = vmul.f32 %v5256_v27, %v709_v4  ;;  %v778_v37 = vmul.f32 %v6252_v56, %v756_v25 }
 0x148   : > { %5263 = vrsqrt.f32 %v729_v29  ;;  %v666_v39 = vmul.f32 0.0078125, %v626_v34  ;;  %1041 = vmatprep.mubr.bf16.mxu0 %v8400_v48  ;;  %v683_v42 = vmul.f32 %v6275_v33, %v6275_v33 }
 0x149   : > { %v628_v5 = vpop.xlane.xlu1 %627  ;;  %v779_v17 = vmul.f32 %v6252_v56, %v757_v36  ;;  %v800_v50 = vadd.f32 %v6260_v7, %v778_v37 }
 0x14a   : > { %v698_v43 = vsub.f32 %v666_v39, %v682_v32  ;;  %v667_v44 = vmul.f32 0.0078125, %v628_v5 }
 0x14b   : > { %v5258_v45 = vpop.eup %5257  ;;  %v598_v47 = vpop.xlane.xlu0 %597  ;;  %v801_v51 = vadd.f32 %v6260_v7, %v779_v17  ;;  %v714_v17 = vsub.f32 %v6185_v26, %v6269_v24  ;;  %v715_v26 = vsub.f32 %v6188_v30, %v6275_v33 }
 0x14c   : > { %v730_v52 = vadd.f32 1e-05, %v698_v43  ;;  %v699_v57 = vsub.f32 %v667_v44, %v683_v42  ;;  %v6286_v59 = vmul.f32 0.0078125, %v598_v47  ;;  %v758_v60 = vmul.f32 %v5258_v45, %v710_v41 }
 0x14d   : > { %v5260_v0 = vpop.eup %5259  ;;  %v600_v31 = vpop.xlane.xlu1 %599  ;;  %v815_v58 = vpack.c.bf16 %v801_v51, %v800_v50 }
 0x14e   : > { %5265 = vrsqrt.f32 %v730_v52  ;;  %v731_v62 = vadd.f32 1e-05, %v699_v57  ;;  %v684_v63 = vmul.f32 %v6286_v59, %v6286_v59  ;;  %v6292_v3 = vmul.f32 0.0078125, %v600_v31 }
 0x14f   : > { %1042 = vmatmul.mubr.bf16.gmra.mxu0 %v815_v58  ;;  %4803 = vmatmul.mubr.bf16.vlgmr.msra.gmra.mxu1 %v815_v58  ;;  %v630_v6 = vpop.xlane.xlu0 %629  ;;  %v759_v8 = vmul.f32 %v5260_v0, %v711_v9  ;;  %v780_v10 = vmul.f32 %v6252_v56, %v758_v60  ;;  %v716_v33 = vsub.f32 %v6197_v38, %v6286_v59 }
 0x150   : > { %5267 = vrsqrt.f32 %v731_v62  ;;  %v668_v1 = vmul.f32 0.0078125, %v630_v6  ;;  %1051 = vmatprep.mubr.bf16.mxu0 %v8400_v48  ;;  %v685_v12 = vmul.f32 %v6292_v3, %v6292_v3 }
 0x151   : > { %v632_v11 = vpop.xlane.xlu1 %631  ;;  %v781_v35 = vmul.f32 %v6252_v56, %v759_v8  ;;  %v802_v21 = vadd.f32 %v6260_v7, %v780_v10 }
 0x152   : > { %v700_v14 = vsub.f32 %v668_v1, %v684_v63  ;;  %v669_v15 = vmul.f32 0.0078125, %v632_v11 }
 0x153   : > { %v5262_v16 = vpop.eup %5261  ;;  %v602_v19 = vpop.xlane.xlu0 %601  ;;  %v803_v22 = vadd.f32 %v6260_v7, %v781_v35 }
 0x154   : > { %v732_v23 = vadd.f32 1e-05, %v700_v14  ;;  %v701_v25 = vsub.f32 %v669_v15, %v685_v12  ;;  %v6303_v27 = vmul.f32 0.0078125, %v602_v19  ;;  %v760_v4 = vmul.f32 %v5262_v16, %v712_v2 }
 0x155   : > { %v5264_v13 = vpop.eup %5263  ;;  %v604_v55 = vpop.xlane.xlu1 %603  ;;  %v816_v28 = vpack.c.bf16 %v803_v22, %v802_v21  ;;  %v717_v16 = vsub.f32 %v6200_v40, %v6292_v3 }
 0x156   : > { %5269 = vrsqrt.f32 %v732_v23  ;;  %v733_v29 = vadd.f32 1e-05, %v701_v25  ;;  %v686_v32 = vmul.f32 %v6303_v27, %v6303_v27  ;;  %v6309_v34 = vmul.f32 0.0078125, %v604_v55 }
 0x157   : > { %1052 = vmatmul.mubr.bf16.gmra.mxu0 %v816_v28  ;;  %4806 = vmatprep.mubr.bf16.mxu1 %v816_v28  ;;  %v634_v36 = vpop.xlane.xlu0 %633  ;;  %v761_v37 = vmul.f32 %v5264_v13, %v713_v18  ;;  %v782_v39 = vmul.f32 %v6252_v56, %v760_v4  ;;  %v718_v40 = vsub.f32 %v6209_v46, %v6303_v27 }
 0x158   : > { %5271 = vrsqrt.f32 %v733_v29  ;;  %v670_v5 = vmul.f32 0.0078125, %v634_v36  ;;  %1061 = vmatprep.mubr.bf16.mxu0 %v8400_v48  ;;  %v687_v41 = vmul.f32 %v6309_v34, %v6309_v34  ;;  %v719_v28 = vsub.f32 %v6213_v49, %v6309_v34 }
 0x159   : > { %v636_v20 = vpop.xlane.xlu1 %635  ;;  %v783_v61 = vmul.f32 %v6252_v56, %v761_v37  ;;  %v804_v47 = vadd.f32 %v6260_v7, %v782_v39 }
 0x15a   : > { %v702_v42 = vsub.f32 %v670_v5, %v686_v32  ;;  %v671_v43 = vmul.f32 0.0078125, %v636_v20 }
 0x15b   : > { %v5266_v44 = vpop.eup %5265  ;;  %v606_v45 = vpop.xlane.xlu0 %605  ;;  %v805_v50 = vadd.f32 %v6260_v7, %v783_v61 }
 0x15c   : > { %v734_v51 = vadd.f32 1e-05, %v702_v42  ;;  %v703_v52 = vsub.f32 %v671_v43, %v687_v41  ;;  %v6320_v57 = vmul.f32 0.0078125, %v606_v45  ;;  %v762_v60 = vmul.f32 %v5266_v44, %v714_v17 }
 0x15d   : > { %v5268_v0 = vpop.eup %5267  ;;  %v608_v24 = vpop.xlane.xlu1 %607  ;;  %v817_v9 = vpack.c.bf16 %v805_v50, %v804_v47 }
 0x15e   : > { %5273 = vrsqrt.f32 %v734_v51  ;;  %v735_v31 = vadd.f32 1e-05, %v703_v52  ;;  %v688_v58 = vmul.f32 %v6320_v57, %v6320_v57  ;;  %v657_v62 = vmul.f32 0.0078125, %v608_v24  ;;  %v6364_v52 = vld [vmem:[%s8382_s4] sm:$0x7] }
 0x15f   : > { %1062 = vmatmul.mubr.bf16.gmra.mxu0 %v817_v9  ;;  %4807 = vmatmul.mubr.bf16.gmra.mxu1 %v817_v9  ;;  %v638_v63 = vpop.xlane.xlu0 %637  ;;  %v763_v6 = vmul.f32 %v5268_v0, %v715_v26  ;;  %v784_v8 = vmul.f32 %v6252_v56, %v762_v60  ;;  %v720_v27 = vsub.f32 %v6222_v53, %v6320_v57 }
 0x160   : > { %5275 = vrsqrt.f32 %v735_v31  ;;  %v672_v10 = vmul.f32 0.0078125, %v638_v63  ;;  %1071 = vmatprep.mubr.bf16.mxu0 %v8400_v48  ;;  %v689_v11 = vmul.f32 %v657_v62, %v657_v62  ;;  %v721_v34 = vsub.f32 %v6225_v54, %v657_v62 }
 0x161   : > { %v640_v1 = vpop.xlane.xlu1 %639  ;;  %v785_v30 = vmul.f32 %v6252_v56, %v763_v6  ;;  %v806_v14 = vadd.f32 %v6260_v7, %v784_v8  ;;  %v856_v54 = vlaneseq }
 0x162   : > { %v704_v35 = vsub.f32 %v672_v10, %v688_v58  ;;  %v673_v2 = vmul.f32 0.0078125, %v640_v1 }
 0x163   : > { %v5270_v12 = vpop.eup %5269  ;;  %v807_v15 = vadd.f32 %v6260_v7, %v785_v30  ;;  %v6358_v50 = vshrl.u32 %v856_v54, 7 }
 0x164   : > { %v736_v19 = vadd.f32 1e-05, %v704_v35  ;;  %v705_v21 = vsub.f32 %v673_v2, %v689_v11  ;;  %v764_v22 = vmul.f32 %v5270_v12, %v716_v33 }
 0x165   : > { %v5272_v23 = vpop.eup %5271  ;;  %v818_v25 = vpack.c.bf16 %v807_v15, %v806_v14  ;;  %v8399_v51 = vsub.s32 0, %v6358_v50 }
 0x166   : > { %5277 = vrsqrt.f32 %v736_v19  ;;  %v737_v4 = vadd.f32 1e-05, %v705_v21  ;;  %v765_v13 = vmul.f32 %v5272_v23, %v717_v16  ;;  %v786_v38 = vmul.f32 %v6252_v56, %v764_v22 }
 0x167   : > { %1072 = vmatmul.mubr.bf16.gmra.mxu0 %v818_v25  ;;  %4810 = vmatprep.mubr.bf16.mxu1 %v818_v25 }
 0x168   : > { %5279 = vrsqrt.f32 %v737_v4  ;;  %1081 = vmatprep.mubr.bf16.mxu0 %v8400_v48  ;;  %v787_v59 = vmul.f32 %v6252_v56, %v765_v13  ;;  %v808_v3 = vadd.f32 %v6260_v7, %v786_v38 }
 0x16a   : > { %v809_v18 = vadd.f32 %v6260_v7, %v787_v59 }
 0x16b   : > { %v5274_v55 = vpop.eup %5273 }
 0x16c   : > { %v819_v29 = vpack.c.bf16 %v809_v18, %v808_v3  ;;  %v766_v32 = vmul.f32 %v5274_v55, %v718_v40 }
 0x16d   : > { %v5276_v36 = vpop.eup %5275 }
 0x16e   : > { %4811 = vmatmul.mubr.bf16.gmra.mxu1 %v819_v29  ;;  %v767_v37 = vmul.f32 %v5276_v36, %v719_v28  ;;  %v788_v39 = vmul.f32 %v6252_v56, %v766_v32 }
 0x16f   : > { %1082 = vmatmul.mubr.bf16.gmra.mxu0 %v819_v29 }
 0x170   : > { %1091 = vmatprep.mubr.bf16.mxu0 %v8400_v48  ;;  %v789_v46 = vmul.f32 %v6252_v56, %v767_v37  ;;  %v810_v5 = vadd.f32 %v6260_v7, %v788_v39 }
 0x172   : > { %v811_v20 = vadd.f32 %v6260_v7, %v789_v46 }
 0x173   : > { %v5278_v49 = vpop.eup %5277 }
 0x174   : > { %v820_v61 = vpack.c.bf16 %v811_v20, %v810_v5  ;;  %v768_v17 = vmul.f32 %v5278_v49, %v720_v27 }
 0x175   : > { %v5280_v41 = vpop.eup %5279 }
 0x176   : > { %4814 = vmatprep.mubr.bf16.mxu1 %v820_v61  ;;  %v769_v42 = vmul.f32 %v5280_v41, %v721_v34  ;;  %v790_v43 = vmul.f32 %v6252_v56, %v768_v17 }
 0x177   : > { %1092 = vmatmul.mubr.bf16.gmra.mxu0 %v820_v61 }
 0x178   : > { %1101 = vmatprep.mubr.bf16.mxu0 %v8400_v48  ;;  %v791_v44 = vmul.f32 %v6252_v56, %v769_v42  ;;  %v812_v53 = vadd.f32 %v6260_v7, %v790_v43  ;;  %v6369_v56 = vrot.slane %v6364_v52, %v8399_v51  ;;  %v8397_v43 = vsub.s32 1, %v6358_v50 }
 0x17a   : > { %v813_v45 = vadd.f32 %v6260_v7, %v791_v44 }
 0x17c   : > { %v821_v47 = vpack.c.bf16 %v813_v45, %v812_v53 }
 0x17e   : > { %4815 = vmatmul.mubr.bf16.gmra.mxu1 %v821_v47 }
 0x17f   : > { %1102 = vmatmul.mubr.bf16.gmra.mxu0 %v821_v47 }
 0x207   : > { %v1033_v57 = vpop.f32.mrf.mxu0 }
 0x208   : > { %v1034_v0 = vadd.f32 %v1033_v57, %v6369_v56  ;;  %v6438_v57 = vrot.slane %v6364_v52, %v8397_v43 }
 0x209   : > { %v6371_v7 = vpop.f32.mrf.mxu0 }
 0x20b   : > { %v1037_v60 = vpop.f32.mrf.mxu0 }
 0x20c   : > { %v1038_v26 = vadd.f32 %v1037_v60, %v6369_v56 }
 0x20d   : > { %v6375_v24 = vpop.f32.mrf.mxu0 }
 0x20e   : > { %v6377_v9 = vpack.c.bf16 %v1038_v26, %v1034_v0  ;;  %v8398_v26 = vsub.s32 2, %v6358_v50 }
 0x20f   : > { %v1043_v31 = vpop.f32.mrf.mxu0  ;;  %v6384_v6 = vpop.f32.mrf.mxu1 }
 0x210   : > { %v1044_v58 = vadd.f32 %v1043_v31, %v6369_v56  ;;  %4834 = vmatprep.mubr.msk.bf16.mxu0 %vm1233_vm0, %v6377_v9 }
 0x211   : > { %v6382_v62 = vpop.f32.mrf.mxu0  ;;  %v6391_v33 = vpop.f32.mrf.mxu1 }
 0x213   : > { %v1047_v63 = vpop.f32.mrf.mxu0  ;;  %v6396_v12 = vpop.f32.mrf.mxu1 }
 0x214   : > { %v1048_v8 = vadd.f32 %v1047_v63, %v6369_v56 }
 0x215   : > { %v6387_v10 = vpop.f32.mrf.mxu0  ;;  %v6403_v21 = vpop.f32.mrf.mxu1 }
 0x216   : > { %v6389_v1 = vpack.c.bf16 %v1048_v8, %v1044_v58 }
 0x217   : > { %v1053_v30 = vpop.f32.mrf.mxu0 }
 0x218   : > { %v1054_v11 = vadd.f32 %v1053_v30, %v6369_v56 }
 0x219   : > { %v6394_v35 = vpop.f32.mrf.mxu0 }
 0x21b   : > { %v1057_v2 = vpop.f32.mrf.mxu0 }
 0x21c   : > { %v1058_v14 = vadd.f32 %v1057_v2, %v6369_v56 }
 0x21d   : > { %v6399_v15 = vpop.f32.mrf.mxu0 }
 0x21e   : > { %v6401_v16 = vpack.c.bf16 %v1058_v14, %v1054_v11 }
 0x21f   : > { %v1063_v19 = vpop.f32.mrf.mxu0  ;;  %v6408_v25 = vpop.f32.mrf.mxu1 }
 0x220   : > { %v1064_v22 = vadd.f32 %v1063_v19, %v6369_v56 }
 0x221   : > { %v6406_v23 = vpop.f32.mrf.mxu0  ;;  %v6413_v59 = vpop.f32.mrf.mxu1 }
 0x223   : > { %v1067_v4 = vpop.f32.mrf.mxu0  ;;  %v6420_v28 = vpop.f32.mrf.mxu1 }
 0x224   : > { %v1068_v13 = vadd.f32 %v1067_v4, %v6369_v56 }
 0x225   : > { %v6411_v38 = vpop.f32.mrf.mxu0  ;;  %v6425_v37 = vpop.f32.mrf.mxu1 }
 0x226   : > { %v6415_v40 = vpack.c.bf16 %v1068_v13, %v1064_v22  ;;  %v6450_v22 = vrot.slane %v6364_v52, %v8398_v26 }
 0x227   : > { %v1073_v3 = vpop.f32.mrf.mxu0 }
 0x228   : > { %v1074_v18 = vadd.f32 %v1073_v3, %v6369_v56 }
 0x229   : > { %v6418_v55 = vpop.f32.mrf.mxu0 }
 0x22b   : > { %v1077_v29 = vpop.f32.mrf.mxu0 }
 0x22c   : > { %v1078_v32 = vadd.f32 %v1077_v29, %v6369_v56 }
 0x22d   : > { %v6423_v36 = vpop.f32.mrf.mxu0 }
 0x22e   : > { %v6427_v39 = vpack.c.bf16 %v1078_v32, %v1074_v18  ;;  %v4812_v5 = vpop.f32.mrf.mxu1 }
 0x22f   : > { %v1083_v46 = vpop.f32.mrf.mxu0 }
 0x230   : > { %v1084_v27 = vadd.f32 %v1083_v46, %v6369_v56  ;;  %v1178_v34 = vpop.f32.mrf.mxu1 }
 0x231   : > { %v1085_v20 = vpop.f32.mrf.mxu0 }
 0x232   : > { %v4813_v44 = vpop.f32.mrf.mxu1 }
 0x233   : > { %v1087_v49 = vpop.f32.mrf.mxu0 }
 0x234   : > { %v1088_v61 = vadd.f32 %v1087_v49, %v6369_v56  ;;  %v1181_v60 = vpop.f32.mrf.mxu1 }
 0x235   : > { %v1089_v17 = vpop.f32.mrf.mxu0 }
 0x236   : > { %v6431_v41 = vpack.c.bf16 %v1088_v61, %v1084_v27 }
 0x237   : > { %v1093_v42 = vpop.f32.mrf.mxu0 }
 0x238   : > { %v1094_v53 = vadd.f32 %v1093_v42, %v6369_v56 }
 0x239   : > { %v1095_v45 = vpop.f32.mrf.mxu0 }
 0x23a   : > { %v1096_v58 = vadd.f32 %v1095_v45, %v6438_v57 }
 0x23b   : > { %v1097_v47 = vpop.f32.mrf.mxu0 }
 0x23c   : > { %v1098_v0 = vadd.f32 %v1097_v47, %v6369_v56  ;;  %v1190_v47 = vadd.f32 %v4813_v44, %v6450_v22  ;;  %v1182_v44 = vadd.f32 %v1181_v60, %v6450_v22  ;;  %v1171_v60 = vadd.f32 %v6408_v25, %v6450_v22 }
 0x23d   : > { %v1099_v31 = vpop.f32.mrf.mxu0  ;;  %v1163_v25 = vadd.f32 %v6413_v59, %v6450_v22 }
 0x23e   : > { %v6443_v63 = vpack.c.bf16 %v1098_v0, %v1094_v53  ;;  %v1100_v8 = vadd.f32 %v1099_v31, %v6438_v57  ;;  %v4816_v30 = vpop.f32.mrf.mxu1  ;;  %v1187_v31 = vadd.f32 %v4812_v5, %v6450_v22  ;;  %v1090_v5 = vadd.f32 %v1089_v17, %v6438_v57 }
 0x23f   : > { %v1103_v11 = vpop.f32.mrf.mxu0  ;;  %v1203_v3 = vadd.f32 %v4816_v30, %v6450_v22  ;;  %v1179_v30 = vadd.f32 %v1178_v34, %v6450_v22  ;;  %v1158_v17 = vadd.f32 %v6396_v12, %v6450_v22  ;;  %v1150_v12 = vadd.f32 %v6403_v21, %v6450_v22 }
 0x240   : > { %v1228_v2 = vpack.c.bf16 %v1100_v8, %v1096_v58  ;;  %v1104_v14 = vadd.f32 %v1103_v11, %v6369_v56  ;;  %v1194_v19 = vpop.f32.mrf.mxu1  ;;  %v6474_v8 = vpack.c.bf16 %v1190_v47, %v1187_v31  ;;  %v1174_v11 = vadd.f32 %v6420_v28, %v6450_v22 }
 0x241   : > { %v1105_v4 = vpop.f32.mrf.mxu0  ;;  %v1195_v27 = vadd.f32 %v1194_v19, %v6450_v22  ;;  %v1086_v19 = vadd.f32 %v1085_v20, %v6438_v57  ;;  %v1166_v28 = vadd.f32 %v6425_v37, %v6450_v22  ;;  %v1080_v20 = vadd.f32 %v6423_v36, %v6438_v57 }
 0x242   : > { %1731 = vrot.lane.b32.xlu1 %v1228_v2, %s5863_s9  ;;  %v4817_v13 = vpop.f32.mrf.mxu1  ;;  %v1106_v42 = vadd.f32 %v1105_v4, %v6438_v57  ;;  %v1277_v34 = vsel %vm1233_vm0, %v1228_v2, 0  ;;  %v1076_v37 = vadd.f32 %v6418_v55, %v6438_v57  ;;  %v1070_v55 = vadd.f32 %v6411_v38, %v6438_v57 }
 0x243   : > { %v1107_v18 = vpop.f32.mrf.mxu0  ;;  %v1206_v29 = vadd.f32 %v4817_v13, %v6450_v22  ;;  %v6491_v4 = vpack.c.bf16 %v1090_v5, %v1086_v19  ;;  %v6494_v13 = vpack.c.bf16 %v1174_v11, %v1171_v60  ;;  %v6604_v47 = vadd.s32 24, %v6358_v50 }
 0x244   : > { %v1108_v32 = vadd.f32 %v1107_v18, %v6369_v56  ;;  %v1197_v46 = vpop.f32.mrf.mxu1  ;;  %v6516_v59 = vpack.c.bf16 %v1080_v20, %v1076_v37  ;;  %v6639_v60 = vadd.s32 32, %v6358_v50  ;;  %v6661_v37 = vadd.s32 40, %v6358_v50 }
 0x245   : > { %v6457_v49 = vpack.c.bf16 %v1206_v29, %v1203_v3  ;;  %v1109_v61 = vpop.f32.mrf.mxu0  ;;  %v1198_v52 = vadd.f32 %v1197_v46, %v6450_v22  ;;  %8483 = vst [vmem:[#allocation21_spill] sm:$0xff] %v6494_v13  ;;  %v1155_v3 = vadd.f32 %v6384_v6, %v6450_v22  ;;  %v1274_v36 = vsel %vm1233_vm0, %v6491_v4, 0 }
 0x246   : > { %v6461_v53 = vpack.c.bf16 %v1108_v32, %v1104_v14  ;;  %v1110_v45 = vadd.f32 %v1109_v61, %v6438_v57  ;;  %v6484_v14 = vpack.c.bf16 %v1182_v44, %v1179_v30  ;;  %v1147_v6 = vadd.f32 %v6391_v33, %v6450_v22 }
 0x247   : > { %v6465_v0 = vpack.c.bf16 %v1198_v52, %v1195_v27  ;;  %4850 = vmatprep.subr.bf16.mxu1 %v6457_v49  ;;  %v6520_v18 = vpack.c.bf16 %v1158_v17, %v1155_v3  ;;  %v1066_v32 = vadd.f32 %v6406_v23, %v6438_v57  ;;  %v1271_v46 = vsel %vm1233_vm0, %v6516_v59, 0 }
 0x248   : > { %v1231_v56 = vpack.c.bf16 %v1110_v45, %v1106_v42  ;;  %4851 = vmatpush3.bf16.msra.mxu1 %v6457_v49  ;;  %v6532_v29 = vpack.c.bf16 %v1150_v12, %v1147_v6  ;;  %v1060_v33 = vadd.f32 %v6399_v15, %v6438_v57  ;;  %v1056_v23 = vadd.f32 %v6394_v35, %v6438_v57 }
 0x249   : > { %4852 = vmatprep.subr.bf16.mxu1 %v6465_v0  ;;  %8485 = vst [vmem:[#allocation23_spill] sm:$0xff] %v6520_v18  ;;  %v6538_v21 = vpack.c.bf16 %v1070_v55, %v1066_v32  ;;  %v1050_v27 = vadd.f32 %v6387_v10, %v6438_v57  ;;  %v1046_v61 = vadd.f32 %v6382_v62, %v6438_v57  ;;  %v6620_v44 = vadd.s32 48, %v6358_v50 }
 0x24a   : > { %1733 = vrot.lane.b32.xlu0 %v1231_v56, %s5863_s9  ;;  %4994 = vmatprep.subr.msk.bf16.mxu0 %vm1233_vm0, %v1231_v56  ;;  %v1280_v58 = vsel %vm1233_vm0, %v1231_v56, 0  ;;  %8486 = vst [vmem:[#allocation24_spill] sm:$0xff] %v6532_v29  ;;  %v6549_v38 = vpack.c.bf16 %v1060_v33, %v1056_v23  ;;  %v1040_v15 = vadd.f32 %v6375_v24, %v6438_v57  ;;  %v6596_v24 = vadd.s32 16, %v6358_v50 }
 0x24b   : > { %4819 = vmatpush3.bf16.xpose.msra.mxu0 %v1280_v58  ;;  %v1268_v22 = vsel %vm1233_vm0, %v6538_v21, 0  ;;  %v6559_v52 = vpack.c.bf16 %v1050_v27, %v1046_v61  ;;  %v1036_v42 = vadd.f32 %v6371_v7, %v6438_v57  ;;  %v6599_v57 = vand.u32 127, %v856_v54 }
 0x24c   : > { %4995 = vmatprep.subr.msk.bf16.mxu0 %vm1233_vm0, %v1228_v2  ;;  %4853 = vmatpush3.bf16.msra.mxu1 %v6465_v0  ;;  %v6508_v2 = vpack.c.bf16 %v1166_v28, %v1163_v25  ;;  %v1265_v35 = vsel %vm1233_vm0, %v6549_v38, 0  ;;  %v6617_v54 = vadd.s32 8, %v6358_v50  ;;  %v6664_v3 = vadd.s32 80, %v6358_v50 }
 0x24d   : > { %4854 = vmatprep.subr.bf16.mxu1 %v6474_v8  ;;  %v6569_v45 = vpack.c.bf16 %v1040_v15, %v1036_v42  ;;  %v1262_v62 = vsel %vm1233_vm0, %v6559_v52, 0  ;;  %vm1400_vm1 = vcmp.ge.s32.totalorder %v6596_v24, %v6599_v57  ;;  %vm1398_vm2 = vcmp.ge.s32.totalorder %v6358_v50, %v6599_v57 }
 0x24e   : > { %8484 = vst [vmem:[#allocation22_spill] sm:$0xff] %v6508_v2  ;;  %vm1401_vm3 = vcmp.ge.s32.totalorder %v6604_v47, %v6599_v57  ;;  %vm1399_vm4 = vcmp.ge.s32.totalorder %v6617_v54, %v6599_v57  ;;  %vm1404_vm5 = vcmp.ge.s32.totalorder %v6620_v44, %v6599_v57  ;;  %vm1402_vm6 = vcmp.ge.s32.totalorder %v6639_v60, %v6599_v57 }
 0x24f   : > { %v1259_v10 = vsel %vm1233_vm0, %v6569_v45, 0  ;;  %vm1403_vm8 = vcmp.ge.s32.totalorder %v6661_v37, %v6599_v57  ;;  %vm1408_vm9 = vcmp.ge.s32.totalorder %v6664_v3, %v6599_v57  ;;  %v6683_v32 = vadd.s32 64, %v6358_v50 }
 0x250   : > { %4855 = vmatpush3.bf16.msra.mxu1 %v6474_v8  ;;  %v6705_v61 = vadd.s32 72, %v6358_v50 }
 0x251   : > { %4856 = vmatprep.subr.bf16.mxu1 %v6484_v14  ;;  %vm1406_vm10 = vcmp.ge.s32.totalorder %v6683_v32, %v6599_v57 }
 0x252   : > { %vm1407_vm12 = vcmp.ge.s32.totalorder %v6705_v61, %v6599_v57 }
 0x253   : > { %4821 = vmatpush3.bf16.xpose.msra.mxu0 %v1277_v34  ;;  %v6642_v34 = vadd.s32 56, %v6358_v50 }
 0x254   : > { %4996 = vmatprep.subr.msk.bf16.mxu0 %vm1233_vm0, %v6491_v4  ;;  %4857 = vmatpush3.bf16.msra.mxu1 %v6484_v14 }
 0x255   : > { %4858 = vmatprep.subr.bf16.mxu1 %v6494_v13  ;;  %vm1405_vm7 = vcmp.ge.s32.totalorder %v6642_v34, %v6599_v57  ;;  %v8493_v61 = vld [vmem:[#allocation22_spill] sm:$0xff] }
 0x258   : > { %4859 = vmatpush3.bf16.msra.mxu1 %v6494_v13 }
 0x259   : > { %4860 = vmatprep.subr.bf16.mxu1 %v6508_v2 }
 0x25b   : > { %4823 = vmatpush3.bf16.xpose.msra.mxu0 %v1274_v36 }
 0x25c   : > { %4997 = vmatprep.subr.msk.bf16.mxu0 %vm1233_vm0, %v6516_v59  ;;  %4861 = vmatpush3.bf16.msra.mxu1 %v6508_v2 }
 0x25d   : > { %4862 = vmatprep.subr.bf16.mxu1 %v6520_v18 }
 0x260   : > { %4863 = vmatpush3.bf16.msra.mxu1 %v6520_v18 }
 0x261   : > { %4864 = vmatprep.subr.bf16.mxu1 %v6532_v29 }
 0x263   : > { %4825 = vmatpush3.bf16.xpose.msra.mxu0 %v1271_v46  ;;  %v6686_v46 = vadd.s32 88, %v6358_v50 }
 0x264   : > { %4998 = vmatprep.subr.msk.bf16.mxu0 %vm1233_vm0, %v6538_v21  ;;  %4865 = vmatpush3.bf16.msra.mxu1 %v6532_v29 }
 0x265   : > { %vm1409_vm11 = vcmp.ge.s32.totalorder %v6686_v46, %v6599_v57 }
 0x26b   : > { %4827 = vmatpush3.bf16.xpose.msra.mxu0 %v1268_v22 }
 0x26c   : > { %4999 = vmatprep.subr.msk.bf16.mxu0 %vm1233_vm0, %v6549_v38 }
 0x273   : > { %4829 = vmatpush3.bf16.xpose.msra.mxu0 %v1265_v35  ;;  %v6708_v35 = vadd.s32 112, %v6358_v50 }
 0x274   : > { %5000 = vmatprep.subr.msk.bf16.mxu0 %vm1233_vm0, %v6559_v52 }
 0x275   : > { %vm1412_vm13 = vcmp.ge.s32.totalorder %v6708_v35, %v6599_v57 }
 0x27b   : > { %4831 = vmatpush3.bf16.xpose.msra.mxu0 %v1262_v62 }
 0x27c   : > { %5001 = vmatprep.subr.msk.bf16.mxu0 %vm1233_vm0, %v6569_v45 }
 0x283   : > { %4833 = vmatpush3.bf16.xpose.msra.mxu0 %v1259_v10 }
 0x28a   : > { %4835 = vmatmul.mubr.msk.bf16.vlgmr.msra.gmra.mxu0 %vm1233_vm0, %v6389_v1 }
 0x28b   : > { %4838 = vmatprep.mubr.msk.bf16.mxu0 %vm1233_vm0, %v6401_v16 }
 0x292   : > { %4839 = vmatmul.mubr.msk.bf16.gmra.mxu0 %vm1233_vm0, %v6415_v40 }
 0x293   : > { %4842 = vmatprep.mubr.msk.bf16.mxu0 %vm1233_vm0, %v6427_v39 }
 0x29a   : > { %4843 = vmatmul.mubr.msk.bf16.gmra.mxu0 %vm1233_vm0, %v6431_v41 }
 0x29b   : > { %4846 = vmatprep.mubr.msk.bf16.mxu0 %vm1233_vm0, %v6443_v63 }
 0x2a2   : > { %4847 = vmatmul.mubr.msk.bf16.gmra.mxu0 %vm1233_vm0, %v6461_v53 }
 0x2bc   : > { %v6591_v7 = vpop.permute.xlu0 %1733 }
 0x2bd   : > { %5002 = vmatprep.subr.msk.bf16.mxu1 %vm1233_vm0, %v6591_v7 }
 0x34a   : > { %v4836_v56 = vpop.f32.mrf.mxu0 }
 0x34b   : > { %v6609_v31 = vsel %vm1400_vm1, %v4836_v56, -1e+30  ;;  %v6727_v56 = vadd.s32 96, %v6358_v50 }
 0x34c   : > { %1434 = vmax.xlane.f32.xlu0 %v6609_v31  ;;  %v1316_v58 = vpop.f32.mrf.mxu0 }
 0x34d   : > { %v6625_v5 = vsel %vm1398_vm2, %v1316_v58, -1e+30  ;;  %8487 = vst [vmem:[#allocation25_spill] sm:$0xff] %v6727_v56  ;;  %vm8396_vm14 = vcmp.ge.s32.totalorder %v6727_v56, %v6599_v57 }
 0x34e   : > { %v4837_v30 = vpop.f32.mrf.mxu0 }
 0x34f   : > { %v6630_v11 = vsel %vm1401_vm3, %v4837_v30, -1e+30 }
 0x350   : > { %1430 = vmax.xlane.f32.xlu0 %v6625_v5  ;;  %1436 = vmax.xlane.f32.xlu1 %v6630_v11  ;;  %v1319_v19 = vpop.f32.mrf.mxu0 }
 0x351   : > { %v6647_v25 = vsel %vm1399_vm4, %v1319_v19, -1e+30 }
 0x352   : > { %v4840_v28 = vpop.f32.mrf.mxu0 }
 0x353   : > { %v6652_v20 = vsel %vm1404_vm5, %v4840_v28, -1e+30 }
 0x354   : > { %1432 = vmax.xlane.f32.xlu1 %v6647_v25  ;;  %1442 = vmax.xlane.f32.xlu0 %v6652_v20  ;;  %v1332_v17 = vpop.f32.mrf.mxu0  ;;  %v8491_v32 = vld [vmem:[#allocation25_spill] sm:$0xff] }
 0x355   : > { %v6669_v12 = vsel %vm1402_vm6, %v1332_v17, -1e+30 }
 0x356   : > { %v4841_v36 = vpop.f32.mrf.mxu0 }
 0x357   : > { %v6674_v6 = vsel %vm1405_vm7, %v4841_v36, -1e+30  ;;  %v6754_v36 = vadd.s32 120, %v6358_v50 }
 0x358   : > { %1438 = vmax.xlane.f32.xlu0 %v6669_v12  ;;  %1444 = vmax.xlane.f32.xlu1 %v6674_v6  ;;  %v1335_v55 = vpop.f32.mrf.mxu0 }
 0x359   : > { %v6691_v23 = vsel %vm1403_vm8, %v1335_v55, -1e+30  ;;  %8488 = vst [vmem:[#allocation26_spill] sm:$0xff] %v6754_v36  ;;  %vm1413_vm15 = vcmp.ge.s32.totalorder %v6754_v36, %v6599_v57 }
 0x35a   : > { %v4844_v33 = vpop.f32.mrf.mxu0 }
 0x35b   : > { %v6696_v22 = vsel %vm1408_vm9, %v4844_v33, -1e+30  ;;  %v6759_v33 = vadd.s32 104, %v6358_v50 }
 0x35c   : > { %1440 = vmax.xlane.f32.xlu1 %v6691_v23  ;;  %1450 = vmax.xlane.f32.xlu0 %v6696_v22  ;;  %v1348_v27 = vpop.f32.mrf.mxu0 }
 0x35d   : > { %v6713_v42 = vsel %vm1406_vm10, %v1348_v27, -1e+30  ;;  %8489 = vst [vmem:[#allocation27_spill] sm:$0xff] %v6759_v33 }
 0x35e   : > { %v4845_v15 = vpop.f32.mrf.mxu0 }
 0x35f   : > { %v6718_v62 = vsel %vm1409_vm11, %v4845_v15, -1e+30 }
 0x360   : > { %1446 = vmax.xlane.f32.xlu0 %v6713_v42  ;;  %1452 = vmax.xlane.f32.xlu1 %v6718_v62  ;;  %v1351_v10 = vpop.f32.mrf.mxu0 }
 0x361   : > { %v6732_v30 = vsel %vm1407_vm12, %v1351_v10, -1e+30 }
 0x362   : > { %v4848_v58 = vpop.f32.mrf.mxu0 }
 0x363   : > { %v6737_v19 = vsel %vm1412_vm13, %v4848_v58, -1e+30 }
 0x364   : > { %1448 = vmax.xlane.f32.xlu1 %v6732_v30  ;;  %1458 = vmax.xlane.f32.xlu0 %v6737_v19  ;;  %v1364_v28 = vpop.f32.mrf.mxu0 }
 0x365   : > { %v6746_v17 = vsel %vm8396_vm14, %v1364_v28, -1e+30  ;;  %vm1411_vm14 = vcmp.ge.s32.totalorder %v6759_v33, %v6599_v57 }
 0x366   : > { %v4849_v55 = vpop.f32.mrf.mxu0 }
 0x367   : > { %v6764_v27 = vsel %vm1413_vm15, %v4849_v55, -1e+30 }
 0x368   : > { %1454 = vmax.xlane.f32.xlu0 %v6746_v17  ;;  %v1367_v15 = vpop.f32.mrf.mxu0 }
 0x375   : > { %1727 = vrot.lane.b32.xlu1 %v6516_v59, %s5863_s9  ;;  %v6775_v59 = vpop.permute.xlu1 %1731 }
 0x37e   : > { %1729 = vrot.lane.b32.xlu0 %v6491_v4, %s5863_s9  ;;  %v6772_v4 = vsel %vm1411_vm14, %v1367_v15, -1e+30 }
 0x399   : > { %1460 = vmax.xlane.f32.xlu1 %v6764_v27 }
 0x39d   : > { %1456 = vmax.xlane.f32.xlu1 %v6772_v4 }
 0x3d5   : > { %v1435_v10 = vpop.xlane.xlu0 %1434 }
 0x3d6   : > { %v1464_v58 = vsub.f32 %v6609_v31, %v1435_v10 }
 0x3d8   : > { %v1482_v28 = vmul.f32 1.442695, %v1464_v58 }
 0x3d9   : > { %v1431_v55 = vpop.xlane.xlu0 %1430  ;;  %v1437_v43 = vpop.xlane.xlu1 %1436 }
 0x3da   : > { %5281 = vpow2.f32 %v1482_v28  ;;  %v1462_v26 = vsub.f32 %v6625_v5, %v1431_v55  ;;  %v1465_v51 = vsub.f32 %v6630_v11, %v1437_v43 }
 0x3dc   : > { %v1478_v48 = vmul.f32 1.442695, %v1462_v26  ;;  %v1484_v18 = vmul.f32 1.442695, %v1465_v51 }
 0x3dd   : > { %v1433_v29 = vpop.xlane.xlu1 %1432 }
 0x3de   : > { %5283 = vpow2.f32 %v1478_v48  ;;  %v1463_v15 = vsub.f32 %v6647_v25, %v1433_v29  ;;  %v1443_v48 = vpop.xlane.xlu0 %1442 }
 0x3df   : > { %5285 = vpow2.f32 %v1484_v18  ;;  %v1468_v5 = vsub.f32 %v6652_v20, %v1443_v48 }
 0x3e0   : > { %v1480_v33 = vmul.f32 1.442695, %v1463_v15 }
 0x3e1   : > { %v1445_v18 = vpop.xlane.xlu1 %1444 }
 0x3e2   : > { %5287 = vpow2.f32 %v1480_v33  ;;  %v1439_v43 = vpop.xlane.xlu0 %1438  ;;  %v1490_v33 = vmul.f32 1.442695, %v1468_v5  ;;  %v1469_v2 = vsub.f32 %v6674_v6, %v1445_v18 }
 0x3e3   : > { %v1466_v28 = vsub.f32 %v6669_v12, %v1439_v43 }
 0x3e4   : > { %5289 = vpow2.f32 %v1490_v33  ;;  %v1492_v48 = vmul.f32 1.442695, %v1469_v2 }
 0x3e5   : > { %v1441_v11 = vpop.xlane.xlu1 %1440 }
 0x3e6   : > { %v1451_v26 = vpop.xlane.xlu0 %1450  ;;  %v1467_v58 = vsub.f32 %v6691_v23, %v1441_v11 }
 0x3e7   : > { %v6781_v36 = vpop.eup %5281  ;;  %v1472_v5 = vsub.f32 %v6696_v22, %v1451_v26 }
 0x3e8   : > { %1514 = vadd.xlane.f32.xlu0 %v6781_v36  ;;  %v1488_v15 = vmul.f32 1.442695, %v1467_v58 }
 0x3e9   : > { %v1453_v55 = vpop.xlane.xlu1 %1452  ;;  %v1498_v43 = vmul.f32 1.442695, %v1472_v5  ;;  %v1781_v5 = vsel %vm1233_vm0, %v6591_v7, 0 }
 0x3ea   : > { %v1447_v29 = vpop.xlane.xlu0 %1446  ;;  %5291 = vpow2.f32 %v1488_v15 }
 0x3eb   : > { %v6784_v31 = vpop.eup %5283  ;;  %v1470_v11 = vsub.f32 %v6713_v42, %v1447_v29 }
 0x3ec   : > { %v6786_v10 = vpop.eup %5285  ;;  %1510 = vadd.xlane.f32.xlu0 %v6784_v31 }
 0x3ed   : > { %1516 = vadd.xlane.f32.xlu1 %v6786_v10  ;;  %v1449_v23 = vpop.xlane.xlu1 %1448 }
 0x3ee   : > { %v1459_v25 = vpop.xlane.xlu0 %1458  ;;  %v1471_v42 = vsub.f32 %v6732_v30, %v1449_v23 }
 0x3ef   : > { %v6790_v51 = vpop.eup %5287  ;;  %v1476_v13 = vsub.f32 %v6737_v19, %v1459_v25 }
 0x3f0   : > { %v1496_v33 = vmul.f32 1.442695, %v1471_v42 }
 0x3f1   : > { %1512 = vadd.xlane.f32.xlu1 %v6790_v51  ;;  %v1506_v56 = vmul.f32 1.442695, %v1476_v13  ;;  %v6805_v19 = vpop.permute.xlu1 %1727  ;;  %v6807_v6 = vpop.eup %5289  ;;  %v1494_v13 = vmul.f32 1.442695, %v1470_v11 }
 0x3f2   : > { %v1772_v7 = vsel %vm1233_vm0, %v6805_v19, 0 }
 0x402   : > { %1723 = vrot.lane.b32.xlu1 %v6549_v38, %s5863_s9  ;;  %1725 = vrot.lane.b32.xlu0 %v6538_v21, %s5863_s9  ;;  %v1486_v38 = vmul.f32 1.442695, %v1466_v28  ;;  %v1455_v21 = vpop.xlane.xlu0 %1454 }
 0x403   : > { %v1474_v20 = vsub.f32 %v6746_v17, %v1455_v21  ;;  %v1473_v17 = vsub.f32 %v6718_v62, %v1453_v55 }
 0x404   : > { %5293 = vpow2.f32 %v1486_v38 }
 0x405   : > { %5295 = vpow2.f32 %v1506_v56  ;;  %v1502_v12 = vmul.f32 1.442695, %v1474_v20  ;;  %v6812_v56 = vpop.eup %5291  ;;  %v1500_v26 = vmul.f32 1.442695, %v1473_v17 }
 0x406   : > { %5297 = vpow2.f32 %v1492_v48 }
 0x407   : > { %5299 = vpow2.f32 %v1502_v12 }
 0x408   : > { %5301 = vpow2.f32 %v1498_v43 }
 0x409   : > { %5303 = vpow2.f32 %v1494_v13 }
 0x411   : > { %v6815_v18 = vpop.eup %5293 }
 0x412   : > { %v6819_v62 = vpop.eup %5295 }
 0x413   : > { %v6822_v58 = vpop.eup %5297 }
 0x414   : > { %v6826_v30 = vpop.eup %5299 }
 0x415   : > { %v6828_v55 = vpop.eup %5301 }
 0x416   : > { %v6832_v15 = vpop.eup %5303 }
 0x421   : > { %1522 = vadd.xlane.f32.xlu0 %v6807_v6 }
 0x422   : > { %v1461_v2 = vpop.xlane.xlu1 %1460 }
 0x423   : > { %v1477_v22 = vsub.f32 %v6764_v27, %v1461_v2 }
 0x425   : > { %v1508_v29 = vmul.f32 1.442695, %v1477_v22  ;;  %1520 = vadd.xlane.f32.xlu0 %v6812_v56 }
 0x426   : > { %1518 = vadd.xlane.f32.xlu1 %v6815_v18  ;;  %v1457_v25 = vpop.xlane.xlu1 %1456 }
 0x427   : > { %5305 = vpow2.f32 %v1508_v29  ;;  %v1475_v27 = vsub.f32 %v6772_v4, %v1457_v25 }
 0x428   : > { %5307 = vpow2.f32 %v1500_v26 }
 0x429   : > { %1538 = vadd.xlane.f32.xlu0 %v6819_v62  ;;  %5309 = vpow2.f32 %v1496_v33  ;;  %v1504_v28 = vmul.f32 1.442695, %v1475_v27 }
 0x42a   : > { %1524 = vadd.xlane.f32.xlu1 %v6822_v58 }
 0x42b   : > { %5311 = vpow2.f32 %v1504_v28 }
 0x42d   : > { %1534 = vadd.xlane.f32.xlu0 %v6826_v30 }
 0x42e   : > { %1530 = vadd.xlane.f32.xlu1 %v6828_v55 }
 0x432   : > { %1526 = vadd.xlane.f32.xlu1 %v6832_v15 }
 0x434   : > { %v6835_v4 = vpop.eup %5305 }
 0x435   : > { %v6837_v38 = vpop.eup %5307  ;;  %1540 = vadd.xlane.f32.xlu0 %v6835_v4 }
 0x436   : > { %1532 = vadd.xlane.f32.xlu1 %v6837_v38  ;;  %v6841_v21 = vpop.eup %5309 }
 0x438   : > { %v6844_v20 = vpop.eup %5311 }
 0x43a   : > { %1528 = vadd.xlane.f32.xlu1 %v6841_v21 }
 0x43e   : > { %1536 = vadd.xlane.f32.xlu1 %v6844_v20 }
 0x44b   : > { %1721 = vrot.lane.b32.xlu0 %v6559_v52, %s5863_s9 }
 0x44f   : > { %1719 = vrot.lane.b32.xlu1 %v6569_v45, %s5863_s9  ;;  %1695 = vrot.lane.b32.xlu0 %v6377_v9, %s5863_s9  ;;  %v1730_v9 = vpop.permute.xlu0 %1729 }
 0x453   : > { %1697 = vrot.lane.b32.xlu1 %v6389_v1, %s5863_s9  ;;  %1699 = vrot.lane.b32.xlu0 %v6401_v16, %s5863_s9 }
 0x457   : > { %1701 = vrot.lane.b32.xlu1 %v6415_v40, %s5863_s9  ;;  %1703 = vrot.lane.b32.xlu0 %v6427_v39, %s5863_s9 }
 0x45b   : > { %1705 = vrot.lane.b32.xlu1 %v6431_v41, %s5863_s9  ;;  %1707 = vrot.lane.b32.xlu0 %v6443_v63, %s5863_s9 }
 0x45f   : > { %1709 = vrot.lane.b32.xlu1 %v6461_v53, %s5863_s9  ;;  %2070 = vrot.lane.b32.xlu0 %v6457_v49, %s5863_s9 }
 0x463   : > { %2068 = vrot.lane.b32.xlu1 %v6465_v0, %s5863_s9  ;;  %2066 = vrot.lane.b32.xlu0 %v6474_v8, %s5863_s9 }
 0x467   : > { %2064 = vrot.lane.b32.xlu0 %v6484_v14, %s5863_s9 }
 0x471   : > { %v1515_v1 = vpop.xlane.xlu0 %1514 }
 0x475   : > { %v1511_v16 = vpop.xlane.xlu0 %1510 }
 0x476   : > { %v1517_v40 = vpop.xlane.xlu1 %1516 }
 0x477   : > { %5313 = vrcp.f32 %v1517_v40 }
 0x478   : > { %5315 = vrcp.f32 %v1511_v16 }
 0x479   : > { %5317 = vrcp.f32 %v1515_v1 }
 0x47a   : > { %v1513_v39 = vpop.xlane.xlu1 %1512 }
 0x47b   : > { %5319 = vrcp.f32 %v1513_v39 }
 0x47e   : > { %v1724_v23 = vpop.permute.xlu1 %1723 }
 0x484   : > { %v5314_v41 = vpop.eup %5313 }
 0x485   : > { %v5316_v63 = vpop.eup %5315  ;;  %v1561_v0 = vmul.f32 %v5314_v41, %v6786_v10  ;;  %v1778_v10 = vsel %vm1233_vm0, %v6775_v59, 0 }
 0x486   : > { %v5318_v49 = vpop.eup %5317  ;;  %v1558_v8 = vmul.f32 %v5316_v63, %v6784_v31  ;;  %v1775_v31 = vsel %vm1233_vm0, %v1730_v9, 0 }
 0x487   : > { %v1560_v14 = vmul.f32 %v5318_v49, %v6781_v36  ;;  %v1726_v36 = vpop.permute.xlu0 %1725 }
 0x488   : > { %v5320_v53 = vpop.eup %5319 }
 0x489   : > { %v1559_v52 = vmul.f32 %v5320_v53, %v6790_v51  ;;  %v1575_v48 = vpack.c.bf16 %v1561_v0, %v1560_v14 }
 0x48b   : > { %v1574_v45 = vpack.c.bf16 %v1559_v52, %v1558_v8 }
 0x48d   : > { %4866 = vmatprep.mubr.bf16.mxu1 %v1574_v45 }
 0x48e   : > { %4867 = vmatmul.mubr.bf16.vlgmr.msra.gmra.mxu1 %v1575_v48 }
 0x48f   : > { %4883 = vmatpush3.bf16.xpose.msra.mxu1 %v1781_v5 }
 0x490   : > { %5003 = vmatprep.subr.msk.bf16.mxu1 %vm1233_vm0, %v6775_v59  ;;  %v1769_v59 = vsel %vm1233_vm0, %v1726_v36, 0 }
 0x497   : > { %4885 = vmatpush3.bf16.xpose.msra.mxu1 %v1778_v10 }
 0x498   : > { %5004 = vmatprep.subr.msk.bf16.mxu1 %vm1233_vm0, %v1730_v9 }
 0x49f   : > { %4887 = vmatpush3.bf16.xpose.msra.mxu1 %v1775_v31 }
 0x4a0   : > { %5005 = vmatprep.subr.msk.bf16.mxu1 %vm1233_vm0, %v6805_v19  ;;  %v1766_v19 = vsel %vm1233_vm0, %v1724_v23, 0 }
 0x4a7   : > { %4889 = vmatpush3.bf16.xpose.msra.mxu1 %v1772_v7 }
 0x4a8   : > { %5006 = vmatprep.subr.msk.bf16.mxu1 %vm1233_vm0, %v1726_v36 }
 0x4aa   : > { %v1523_v51 = vpop.xlane.xlu0 %1522 }
 0x4ae   : > { %v1521_v12 = vpop.xlane.xlu0 %1520 }
 0x4af   : > { %4891 = vmatpush3.bf16.xpose.msra.mxu1 %v1769_v59  ;;  %5321 = vrcp.f32 %v1521_v12  ;;  %v1519_v43 = vpop.xlane.xlu1 %1518 }
 0x4b0   : > { %5007 = vmatprep.subr.msk.bf16.mxu1 %vm1233_vm0, %v1724_v23  ;;  %5323 = vrcp.f32 %v1519_v43 }
 0x4b1   : > { %5325 = vrcp.f32 %v1523_v51 }
 0x4b2   : > { %v1539_v13 = vpop.xlane.xlu0 %1538 }
 0x4b3   : > { %v1525_v11 = vpop.xlane.xlu1 %1524 }
 0x4b4   : > { %5327 = vrcp.f32 %v1525_v11 }
 0x4b6   : > { %v1535_v2 = vpop.xlane.xlu0 %1534 }
 0x4b7   : > { %4893 = vmatpush3.bf16.xpose.msra.mxu1 %v1766_v19  ;;  %v1531_v17 = vpop.xlane.xlu1 %1530 }
 0x4bb   : > { %v1527_v22 = vpop.xlane.xlu1 %1526 }
 0x4bc   : > { %v5322_v26 = vpop.eup %5321 }
 0x4bd   : > { %v5324_v42 = vpop.eup %5323  ;;  %v1563_v29 = vmul.f32 %v5322_v26, %v6812_v56 }
 0x4be   : > { %v1541_v25 = vpop.xlane.xlu0 %1540  ;;  %v1562_v33 = vmul.f32 %v5324_v42, %v6815_v18  ;;  %v5326_v27 = vpop.eup %5325 }
 0x4bf   : > { %v1533_v28 = vpop.xlane.xlu1 %1532  ;;  %v1564_v40 = vmul.f32 %v5326_v27, %v6807_v6 }
 0x4c0   : > { %v1576_v9 = vpack.c.bf16 %v1563_v29, %v1562_v33  ;;  %5329 = vrcp.f32 %v1533_v28 }
 0x4c1   : > { %v5328_v1 = vpop.eup %5327  ;;  %5331 = vrcp.f32 %v1527_v22 }
 0x4c2   : > { %4870 = vmatprep.mubr.bf16.mxu1 %v1576_v9  ;;  %v1722_v16 = vpop.permute.xlu0 %1721  ;;  %v1565_v39 = vmul.f32 %v5328_v1, %v6822_v58  ;;  %5333 = vrcp.f32 %v1531_v17 }
 0x4c3   : > { %v1763_v41 = vsel %vm1233_vm0, %v1722_v16, 0  ;;  %v1529_v63 = vpop.xlane.xlu1 %1528  ;;  %5008 = vmatprep.subr.msk.bf16.mxu1 %vm1233_vm0, %v1722_v16 }
 0x4c4   : > { %5335 = vrcp.f32 %v1529_v63  ;;  %4895 = vmatpush3.bf16.xpose.msra.mxu1 %v1763_v41  ;;  %v1577_v56 = vpack.c.bf16 %v1565_v39, %v1564_v40 }
 0x4c5   : > { %5337 = vrcp.f32 %v1535_v2 }
 0x4c6   : > { %4871 = vmatmul.mubr.bf16.gmra.mxu1 %v1577_v56  ;;  %v1696_v18 = vpop.permute.xlu0 %1695 }
 0x4c7   : > { %v1537_v49 = vpop.xlane.xlu1 %1536 }
 0x4c8   : > { %5339 = vrcp.f32 %v1537_v49 }
 0x4c9   : > { %5341 = vrcp.f32 %v1541_v25 }
 0x4ca   : > { %v1700_v53 = vpop.permute.xlu0 %1699  ;;  %5343 = vrcp.f32 %v1539_v13 }
 0x4cb   : > { %v1720_v6 = vpop.permute.xlu1 %1719 }
 0x4cc   : > { %v1760_v58 = vsel %vm1233_vm0, %v1720_v6, 0  ;;  %5009 = vmatprep.subr.msk.bf16.mxu1 %vm1233_vm0, %v1720_v6 }
 0x4cd   : > { %4897 = vmatpush3.bf16.xpose.msra.mxu1 %v1760_v58  ;;  %v5330_v0 = vpop.eup %5329 }
 0x4ce   : > { %v1704_v8 = vpop.permute.xlu0 %1703  ;;  %v5332_v52 = vpop.eup %5331  ;;  %v1569_v5 = vmul.f32 %v5330_v0, %v6837_v38 }
 0x4cf   : > { %v1698_v14 = vpop.permute.xlu1 %1697  ;;  %v5334_v45 = vpop.eup %5333  ;;  %v1566_v31 = vmul.f32 %v5332_v52, %v6832_v15 }
 0x4d0   : > { %v1568_v23 = vmul.f32 %v5334_v45, %v6828_v55 }
 0x4d1   : > { %v5336_v48 = vpop.eup %5335 }
 0x4d2   : > { %v1708_v10 = vpop.permute.xlu0 %1707  ;;  %v1567_v36 = vmul.f32 %v5336_v48, %v6841_v21  ;;  %v5338_v7 = vpop.eup %5337  ;;  %v1579_v43 = vpack.c.bf16 %v1569_v5, %v1568_v23 }
 0x4d3   : > { %v1702_v51 = vpop.permute.xlu1 %1701  ;;  %v1570_v19 = vmul.f32 %v5338_v7, %v6826_v30 }
 0x4d4   : > { %v1578_v59 = vpack.c.bf16 %v1567_v36, %v1566_v31 }
 0x4d5   : > { %v5340_v12 = vpop.eup %5339 }
 0x4d6   : > { %v5342_v11 = vpop.eup %5341  ;;  %4874 = vmatprep.mubr.bf16.mxu1 %v1578_v59  ;;  %v2071_v13 = vpop.permute.xlu0 %2070  ;;  %v1571_v17 = vmul.f32 %v5340_v12, %v6844_v20 }
 0x4d7   : > { %4875 = vmatmul.mubr.bf16.gmra.mxu1 %v1579_v43  ;;  %v1706_v38 = vpop.permute.xlu1 %1705  ;;  %4914 = vmatprep.subr.bf16.mxu0 %v2071_v13  ;;  %v5344_v15 = vpop.eup %5343  ;;  %v1573_v2 = vmul.f32 %v5342_v11, %v6835_v4 }
 0x4d8   : > { %4915 = vmatpush3.bf16.msra.mxu0 %v2071_v13  ;;  %v1580_v21 = vpack.c.bf16 %v1571_v17, %v1570_v19  ;;  %v1572_v22 = vmul.f32 %v5344_v15, %v6819_v62  ;;  %v8490_v62 = vmov 0  }
 0x4da   : > { %4878 = vmatprep.mubr.bf16.mxu1 %v1580_v21  ;;  %v1581_v26 = vpack.c.bf16 %v1573_v2, %v1572_v22  ;;  %v2067_v42 = vpop.permute.xlu0 %2066 }
 0x4db   : > { %v1710_v55 = vpop.permute.xlu1 %1709 }
 0x4de   : > { %v2065_v30 = vpop.permute.xlu0 %2064 }
 0x4df   : > { %4879 = vmatmul.mubr.bf16.gmra.mxu1 %v1581_v26  ;;  %v2069_v29 = vpop.permute.xlu1 %2068 }
 0x4e0   : > { %4898 = vmatprep.mubr.msk.bf16.mxu1 %vm1233_vm0, %v1696_v18  ;;  %4916 = vmatprep.subr.bf16.mxu0 %v2069_v29 }
 0x4e1   : > { %4917 = vmatpush3.bf16.msra.mxu0 %v2069_v29 }
 0x4e2   : > { %4918 = vmatprep.subr.bf16.mxu0 %v2067_v42 }
 0x4e5   : > { %4919 = vmatpush3.bf16.msra.mxu0 %v2067_v42 }
 0x4e6   : > { %4920 = vmatprep.subr.bf16.mxu0 %v2065_v30 }
 0x4e7   : > { %4899 = vmatmul.mubr.msk.bf16.vlgmr.msra.gmra.mxu1 %vm1233_vm0, %v1698_v14 }
 0x4e8   : > { %4902 = vmatprep.mubr.msk.bf16.mxu1 %vm1233_vm0, %v1700_v53 }
 0x4e9   : > { %4921 = vmatpush3.bf16.msra.mxu0 %v2065_v30 }
 0x4ef   : > { %4903 = vmatmul.mubr.msk.bf16.gmra.mxu1 %vm1233_vm0, %v1702_v51 }
 0x4f0   : > { %4906 = vmatprep.mubr.msk.bf16.mxu1 %vm1233_vm0, %v1704_v8 }
 0x4f7   : > { %4907 = vmatmul.mubr.msk.bf16.gmra.mxu1 %vm1233_vm0, %v1706_v38 }
 0x4f8   : > { %4910 = vmatprep.mubr.msk.bf16.mxu1 %vm1233_vm0, %v1708_v10 }
 0x4ff   : > { %4911 = vmatmul.mubr.msk.bf16.gmra.mxu1 %vm1233_vm0, %v1710_v55  ;;  %v8494_v55 = vld [vmem:[#allocation21_spill] sm:$0xff] }
 0x500   : > { %2981 = vmatprep.mubr.bf16.mxu1 %v8490_v62 }
 0x54e   : > { %v6920_v4 = vpop.f32.mrf.mxu1 }
 0x550   : > { %v6922_v20 = vpop.f32.mrf.mxu1 }
 0x552   : > { %v6924_v25 = vpop.f32.mrf.mxu1 }
 0x553   : > { %v1680_v33 = vpack.c.bf16 %v6924_v25, %v6920_v4 }
 0x554   : > { %v6928_v27 = vpop.f32.mrf.mxu1 }
 0x555   : > { %v1679_v28 = vpack.c.bf16 %v6928_v27, %v6922_v20 }
 0x586   : > { %v6932_v9 = vpop.f32.mrf.mxu1 }
 0x588   : > { %v6934_v1 = vpop.f32.mrf.mxu1 }
 0x58a   : > { %v6936_v16 = vpop.f32.mrf.mxu1 }
 0x58b   : > { %v1682_v40 = vpack.c.bf16 %v6936_v16, %v6932_v9 }
 0x58c   : > { %v6940_v39 = vpop.f32.mrf.mxu1 }
 0x58d   : > { %v1681_v41 = vpack.c.bf16 %v6940_v39, %v6934_v1 }
 0x597   : > { %v6944_v63 = vpop.f32.mrf.mxu1 }
 0x599   : > { %v6946_v56 = vpop.f32.mrf.mxu1 }
 0x59b   : > { %v6948_v18 = vpop.f32.mrf.mxu1 }
 0x59c   : > { %v1684_v49 = vpack.c.bf16 %v6948_v18, %v6944_v63 }
 0x59d   : > { %v6952_v53 = vpop.f32.mrf.mxu1 }
 0x59e   : > { %v1683_v6 = vpack.c.bf16 %v6952_v53, %v6946_v56  ;;  %v7165_v56 = vld [vmem:[%s8384_s6] ss:$0 sm:$0xff] }
 0x59f   : > { %v6956_v58 = vpop.f32.mrf.mxu1 }
 0x5a1   : > { %v6958_v0 = vpop.f32.mrf.mxu1 }
 0x5a3   : > { %v6960_v8 = vpop.f32.mrf.mxu1 }
 0x5a4   : > { %v1686_v52 = vpack.c.bf16 %v6960_v8, %v6956_v58 }
 0x5a5   : > { %v6964_v14 = vpop.f32.mrf.mxu1 }
 0x5a6   : > { %v1685_v45 = vpack.c.bf16 %v6964_v14, %v6958_v0  ;;  %v5571_v0 = vld [vmem:[%s6118_s21 + $0x18] sm:$0xff] }
 0x5a7   : > { %v4900_v48 = vpop.f32.mrf.mxu1 }
 0x5a8   : > { %v1882_v5 = vsel %vm1400_vm1, %v4900_v48, -1e+30  ;;  %vm8492_vm1 = vcmp.ge.s32.totalorder %v8491_v32, %v6599_v57 }
 0x5a9   : > { %1900 = vmax.xlane.f32.xlu0 %v1882_v5  ;;  %v1817_v10 = vpop.f32.mrf.mxu1 }
 0x5aa   : > { %v1880_v36 = vsel %vm1398_vm2, %v1817_v10, -1e+30 }
 0x5ab   : > { %v4901_v31 = vpop.f32.mrf.mxu1 }
 0x5ac   : > { %v1883_v24 = vsel %vm1401_vm3, %v4901_v31, -1e+30 }
 0x5ad   : > { %1896 = vmax.xlane.f32.xlu0 %v1880_v36  ;;  %v1820_v7 = vpop.f32.mrf.mxu1 }
 0x5ae   : > { %v1881_v51 = vsel %vm1399_vm4, %v1820_v7, -1e+30 }
 0x5af   : > { %1898 = vmax.xlane.f32.xlu1 %v1881_v51  ;;  %v4904_v23 = vpop.f32.mrf.mxu1 }
 0x5b0   : > { %v1886_v43 = vsel %vm1404_vm5, %v4904_v23, -1e+30 }
 0x5b1   : > { %1902 = vmax.xlane.f32.xlu0 %v1883_v24  ;;  %v1833_v59 = vpop.f32.mrf.mxu1 }
 0x5b2   : > { %v1884_v47 = vsel %vm1402_vm6, %v1833_v59, -1e+30 }
 0x5b3   : > { %v4905_v12 = vpop.f32.mrf.mxu1 }
 0x5b4   : > { %v1887_v11 = vsel %vm1405_vm7, %v4905_v12, -1e+30 }
 0x5b5   : > { %1908 = vmax.xlane.f32.xlu0 %v1886_v43  ;;  %1910 = vmax.xlane.f32.xlu1 %v1887_v11  ;;  %v1836_v54 = vpop.f32.mrf.mxu1 }
 0x5b6   : > { %v1885_v19 = vsel %vm1403_vm8, %v1836_v54, -1e+30 }
 0x5b7   : > { %v4908_v13 = vpop.f32.mrf.mxu1 }
 0x5b8   : > { %v6995_v34 = vsel %vm1408_vm9, %v4908_v13, -1e+30 }
 0x5b9   : > { %1904 = vmax.xlane.f32.xlu0 %v1884_v47  ;;  %1906 = vmax.xlane.f32.xlu1 %v1885_v19  ;;  %v1849_v44 = vpop.f32.mrf.mxu1 }
 0x5ba   : > { %v7007_v37 = vsel %vm1406_vm10, %v1849_v44, -1e+30 }
 0x5bb   : > { %v4909_v17 = vpop.f32.mrf.mxu1 }
 0x5bc   : > { %v7000_v38 = vsel %vm1409_vm11, %v4909_v17, -1e+30 }
 0x5bd   : > { %1916 = vmax.xlane.f32.xlu0 %v6995_v34  ;;  %1918 = vmax.xlane.f32.xlu1 %v7000_v38  ;;  %v1852_v60 = vpop.f32.mrf.mxu1 }
 0x5be   : > { %v7012_v3 = vsel %vm1407_vm12, %v1852_v60, -1e+30 }
 0x5bf   : > { %v4912_v15 = vpop.f32.mrf.mxu1 }
 0x5c0   : > { %v7019_v46 = vsel %vm1412_vm13, %v4912_v15, -1e+30 }
 0x5c1   : > { %1912 = vmax.xlane.f32.xlu0 %v7007_v37  ;;  %1914 = vmax.xlane.f32.xlu1 %v7012_v3  ;;  %v1865_v21 = vpop.f32.mrf.mxu1 }
 0x5c2   : > { %v7025_v2 = vsel %vm8492_vm1, %v1865_v21, -1e+30 }
 0x5c3   : > { %v4913_v22 = vpop.f32.mrf.mxu1 }
 0x5c4   : > { %v7035_v26 = vsel %vm1413_vm15, %v4913_v22, -1e+30 }
 0x5c5   : > { %1924 = vmax.xlane.f32.xlu0 %v7019_v46  ;;  %v1868_v42 = vpop.f32.mrf.mxu1 }
 0x5c6   : > { %v7041_v30 = vsel %vm1411_vm14, %v1868_v42, -1e+30 }
 0x5c9   : > { %1920 = vmax.xlane.f32.xlu0 %v7025_v2 }
 0x5d2   : > { %2060 = vrot.lane.b32.xlu1 %v8493_v61, %s5863_s9 }
 0x5df   : > { %2062 = vrot.lane.b32.xlu0 %v8494_v55, %s5863_s9 }
 0x5f6   : > { %1926 = vmax.xlane.f32.xlu1 %v7035_v26 }
 0x5fa   : > { %1922 = vmax.xlane.f32.xlu1 %v7041_v30 }
 0x632   : > { %v1901_v48 = vpop.xlane.xlu0 %1900 }
 0x633   : > { %v1930_v10 = vsub.f32 %v1882_v5, %v1901_v48 }
 0x635   : > { %v1948_v31 = vmul.f32 1.442695, %v1930_v10 }
 0x636   : > { %v1897_v7 = vpop.xlane.xlu0 %1896 }
 0x637   : > { %5345 = vpow2.f32 %v1948_v31  ;;  %v1928_v23 = vsub.f32 %v1880_v36, %v1897_v7 }
 0x638   : > { %v1899_v59 = vpop.xlane.xlu1 %1898 }
 0x639   : > { %v1944_v12 = vmul.f32 1.442695, %v1928_v23  ;;  %v1929_v54 = vsub.f32 %v1881_v51, %v1899_v59 }
 0x63a   : > { %v1903_v13 = vpop.xlane.xlu0 %1902 }
 0x63b   : > { %5347 = vpow2.f32 %v1944_v12  ;;  %v1931_v44 = vsub.f32 %v1883_v24, %v1903_v13  ;;  %v1946_v60 = vmul.f32 1.442695, %v1929_v54 }
 0x63d   : > { %v1950_v17 = vmul.f32 1.442695, %v1931_v44 }
 0x63e   : > { %v1909_v15 = vpop.xlane.xlu0 %1908  ;;  %v1911_v57 = vpop.xlane.xlu1 %1910 }
 0x63f   : > { %5349 = vpow2.f32 %v1950_v17  ;;  %v1934_v21 = vsub.f32 %v1886_v43, %v1909_v15  ;;  %v1935_v32 = vsub.f32 %v1887_v11, %v1911_v57  ;;  %v8497_v17 = vld [vmem:[#allocation24_spill] sm:$0xff] }
 0x640   : > { %5351 = vpow2.f32 %v1946_v60  ;;  %v8498_v60 = vld [vmem:[#allocation23_spill] sm:$0xff] }
 0x641   : > { %v1956_v61 = vmul.f32 1.442695, %v1934_v21  ;;  %v1958_v5 = vmul.f32 1.442695, %v1935_v32 }
 0x642   : > { %v1905_v55 = vpop.xlane.xlu0 %1904  ;;  %v1907_v22 = vpop.xlane.xlu1 %1906 }
 0x643   : > { %5353 = vpow2.f32 %v1956_v61  ;;  %v1932_v36 = vsub.f32 %v1884_v47, %v1905_v55  ;;  %v1933_v35 = vsub.f32 %v1885_v19, %v1907_v22 }
 0x644   : > { %v7044_v42 = vpop.eup %5345  ;;  %5355 = vpow2.f32 %v1958_v5 }
 0x645   : > { %v1952_v51 = vmul.f32 1.442695, %v1932_v36  ;;  %1980 = vadd.xlane.f32.xlu1 %v7044_v42  ;;  %v1954_v29 = vmul.f32 1.442695, %v1933_v35 }
 0x646   : > { %v1917_v24 = vpop.xlane.xlu0 %1916  ;;  %v1919_v10 = vpop.xlane.xlu1 %1918 }
 0x647   : > { %5357 = vpow2.f32 %v1952_v51  ;;  %v1939_v57 = vsub.f32 %v7000_v38, %v1919_v10  ;;  %v1938_v5 = vsub.f32 %v6995_v34, %v1917_v24 }
 0x648   : > { %v7047_v48 = vpop.eup %5347  ;;  %5359 = vpow2.f32 %v1954_v29 }
 0x649   : > { %1976 = vadd.xlane.f32.xlu1 %v7047_v48  ;;  %v1966_v61 = vmul.f32 1.442695, %v1939_v57  ;;  %v1964_v35 = vmul.f32 1.442695, %v1938_v5 }
 0x64a   : > { %v1913_v43 = vpop.xlane.xlu0 %1912  ;;  %v1915_v7 = vpop.xlane.xlu1 %1914 }
 0x64b   : > { %v1936_v15 = vsub.f32 %v7007_v37, %v1913_v43  ;;  %v1937_v32 = vsub.f32 %v7012_v3, %v1915_v7 }
 0x64c   : > { %v7050_v11 = vpop.eup %5349 }
 0x64d   : > { %1982 = vadd.xlane.f32.xlu1 %v7050_v11  ;;  %v7053_v19 = vpop.eup %5351  ;;  %v1960_v21 = vmul.f32 1.442695, %v1936_v15  ;;  %v1962_v55 = vmul.f32 1.442695, %v1937_v32 }
 0x64e   : > { %v1925_v47 = vpop.xlane.xlu0 %1924  ;;  %v2061_v44 = vpop.permute.xlu1 %2060 }
 0x64f   : > { %5361 = vpow2.f32 %v1960_v21  ;;  %v1942_v51 = vsub.f32 %v7019_v46, %v1925_v47 }
 0x650   : > { %v7055_v31 = vpop.eup %5353  ;;  %5363 = vpow2.f32 %v1966_v61 }
 0x651   : > { %1988 = vadd.xlane.f32.xlu0 %v7055_v31  ;;  %1978 = vadd.xlane.f32.xlu1 %v7053_v19  ;;  %v7059_v59 = vpop.eup %5355  ;;  %5365 = vpow2.f32 %v1962_v55  ;;  %v1972_v10 = vmul.f32 1.442695, %v1942_v51 }
 0x652   : > { %v1921_v23 = vpop.xlane.xlu0 %1920  ;;  %5367 = vpow2.f32 %v1964_v35 }
 0x653   : > { %v1940_v22 = vsub.f32 %v7025_v2, %v1921_v23 }
 0x654   : > { %v7061_v12 = vpop.eup %5357 }
 0x655   : > { %1984 = vadd.xlane.f32.xlu1 %v7061_v12  ;;  %1990 = vadd.xlane.f32.xlu0 %v7059_v59  ;;  %v7065_v13 = vpop.eup %5359  ;;  %v1968_v29 = vmul.f32 1.442695, %v1940_v22 }
 0x656   : > { %v2063_v54 = vpop.permute.xlu0 %2062 }
 0x657   : > { %4922 = vmatprep.subr.bf16.mxu0 %v2063_v54  ;;  %5369 = vpow2.f32 %v1968_v29 }
 0x658   : > { %4923 = vmatpush3.bf16.msra.mxu0 %v2063_v54 }
 0x659   : > { %1986 = vadd.xlane.f32.xlu0 %v7065_v13  ;;  %4924 = vmatprep.subr.bf16.mxu0 %v2061_v44 }
 0x65c   : > { %4925 = vmatpush3.bf16.msra.mxu0 %v2061_v44  ;;  %v7080_v24 = vpop.eup %5361 }
 0x65d   : > { %v7083_v2 = vpop.eup %5363 }
 0x65e   : > { %v7085_v46 = vpop.eup %5365 }
 0x666   : > { %2056 = vrot.lane.b32.xlu1 %v8497_v17, %s5863_s9 }
 0x66f   : > { %2058 = vrot.lane.b32.xlu0 %v8498_v60, %s5863_s9 }
 0x67f   : > { %v1927_v36 = vpop.xlane.xlu1 %1926 }
 0x680   : > { %v1943_v38 = vsub.f32 %v7035_v26, %v1927_v36  ;;  %v7089_v26 = vpop.eup %5367 }
 0x682   : > { %v1974_v34 = vmul.f32 1.442695, %v1943_v38 }
 0x683   : > { %v1923_v37 = vpop.xlane.xlu1 %1922 }
 0x684   : > { %v1941_v3 = vsub.f32 %v7041_v30, %v1923_v37  ;;  %v7092_v30 = vpop.eup %5369 }
 0x686   : > { %v1970_v43 = vmul.f32 1.442695, %v1941_v3 }
 0x688   : > { %5371 = vpow2.f32 %v1970_v43 }
 0x689   : > { %5373 = vpow2.f32 %v1972_v10 }
 0x68a   : > { %1992 = vadd.xlane.f32.xlu1 %v7080_v24  ;;  %5375 = vpow2.f32 %v1974_v34 }
 0x68e   : > { %1998 = vadd.xlane.f32.xlu1 %v7083_v2  ;;  %1994 = vadd.xlane.f32.xlu0 %v7085_v46 }
 0x692   : > { %1996 = vadd.xlane.f32.xlu0 %v7089_v26 }
 0x695   : > { %v7094_v47 = vpop.eup %5371 }
 0x696   : > { %2000 = vadd.xlane.f32.xlu0 %v7092_v30  ;;  %2002 = vadd.xlane.f32.xlu1 %v7094_v47  ;;  %v7098_v7 = vpop.eup %5373 }
 0x697   : > { %v7100_v23 = vpop.eup %5375 }
 0x69a   : > { %2004 = vadd.xlane.f32.xlu0 %v7098_v7  ;;  %2006 = vadd.xlane.f32.xlu1 %v7100_v23 }
 0x6ce   : > { %v1981_v54 = vpop.xlane.xlu1 %1980 }
 0x6d2   : > { %v1977_v44 = vpop.xlane.xlu1 %1976 }
 0x6d6   : > { %v1983_v17 = vpop.xlane.xlu1 %1982 }
 0x6d7   : > { %5377 = vrcp.f32 %v1983_v17 }
 0x6d8   : > { %5379 = vrcp.f32 %v1977_v44 }
 0x6d9   : > { %5381 = vrcp.f32 %v1981_v54 }
 0x6da   : > { %v1989_v60 = vpop.xlane.xlu0 %1988  ;;  %v1979_v15 = vpop.xlane.xlu1 %1978 }
 0x6db   : > { %5383 = vrcp.f32 %v1979_v15 }
 0x6de   : > { %v1991_v57 = vpop.xlane.xlu0 %1990  ;;  %v1985_v21 = vpop.xlane.xlu1 %1984 }
 0x6df   : > { %5385 = vrcp.f32 %v1991_v57 }
 0x6e0   : > { %5387 = vrcp.f32 %v1985_v21 }
 0x6e1   : > { %5389 = vrcp.f32 %v1989_v60 }
 0x6e2   : > { %v1987_v32 = vpop.xlane.xlu0 %1986  ;;  %v2057_v36 = vpop.permute.xlu1 %2056 }
 0x6e3   : > { %5391 = vrcp.f32 %v1987_v32 }
 0x6e4   : > { %v5378_v61 = vpop.eup %5377 }
 0x6e5   : > { %v5380_v55 = vpop.eup %5379  ;;  %v2027_v51 = vmul.f32 %v5378_v61, %v7050_v11 }
 0x6e6   : > { %v2059_v5 = vpop.permute.xlu0 %2058  ;;  %v5382_v22 = vpop.eup %5381  ;;  %v2024_v29 = vmul.f32 %v5380_v55, %v7047_v48 }
 0x6e7   : > { %4926 = vmatprep.subr.bf16.mxu0 %v2059_v5  ;;  %v2026_v38 = vmul.f32 %v5382_v22, %v7044_v42 }
 0x6e8   : > { %4927 = vmatpush3.bf16.msra.mxu0 %v2059_v5  ;;  %v5384_v35 = vpop.eup %5383 }
 0x6e9   : > { %4928 = vmatprep.subr.bf16.mxu0 %v2057_v36  ;;  %v2025_v37 = vmul.f32 %v5384_v35, %v7053_v19  ;;  %v2041_v10 = vpack.c.bf16 %v2027_v51, %v2026_v38 }
 0x6eb   : > { %v2040_v3 = vpack.c.bf16 %v2025_v37, %v2024_v29 }
 0x6ec   : > { %4929 = vmatpush3.bf16.msra.mxu0 %v2057_v36  ;;  %v5386_v43 = vpop.eup %5385 }
 0x6ed   : > { %v5388_v34 = vpop.eup %5387  ;;  %4930 = vmatprep.mubr.bf16.mxu0 %v2040_v3  ;;  %v2031_v11 = vmul.f32 %v5386_v43, %v7059_v59 }
 0x6ee   : > { %v5390_v54 = vpop.eup %5389  ;;  %v2028_v17 = vmul.f32 %v5388_v34, %v7061_v12 }
 0x6ef   : > { %4931 = vmatmul.mubr.bf16.vlgmr.msra.gmra.mxu0 %v2041_v10  ;;  %v2030_v19 = vmul.f32 %v5390_v54, %v7055_v31 }
 0x6f0   : > { %v5392_v44 = vpop.eup %5391 }
 0x6f1   : > { %v2029_v60 = vmul.f32 %v5392_v44, %v7065_v13  ;;  %v2043_v42 = vpack.c.bf16 %v2031_v11, %v2030_v19  ;;  %v5163_v11 = vld [vmem:[#allocation10 + $0x28] sm:$0xff]  }
 0x6f3   : > { %v2042_v48 = vpack.c.bf16 %v2029_v60, %v2028_v17 }
 0x6f5   : > { %4934 = vmatprep.mubr.bf16.mxu0 %v2042_v48  ;;  %v5168_v48 = vld [vmem:[#allocation10] sm:$0xff]  }
 0x6f7   : > { %4935 = vmatmul.mubr.bf16.gmra.mxu0 %v2043_v42 }
 0x713   : > { %v1993_v15 = vpop.xlane.xlu1 %1992 }
 0x714   : > { %5393 = vrcp.f32 %v1993_v15 }
 0x717   : > { %v1995_v57 = vpop.xlane.xlu0 %1994  ;;  %v1999_v21 = vpop.xlane.xlu1 %1998 }
 0x718   : > { %5395 = vrcp.f32 %v1995_v57 }
 0x719   : > { %5397 = vrcp.f32 %v1999_v21 }
 0x71b   : > { %v1997_v32 = vpop.xlane.xlu0 %1996 }
 0x71c   : > { %5399 = vrcp.f32 %v1997_v32 }
 0x71f   : > { %v2001_v61 = vpop.xlane.xlu0 %2000  ;;  %v2003_v12 = vpop.xlane.xlu1 %2002 }
 0x720   : > { %5401 = vrcp.f32 %v2001_v61 }
 0x721   : > { %5403 = vrcp.f32 %v2003_v12  ;;  %v5394_v13 = vpop.eup %5393 }
 0x722   : > { %v2032_v55 = vmul.f32 %v5394_v13, %v7080_v24 }
 0x723   : > { %v2005_v59 = vpop.xlane.xlu0 %2004  ;;  %v2007_v5 = vpop.xlane.xlu1 %2006 }
 0x724   : > { %5405 = vrcp.f32 %v2005_v59 }
 0x725   : > { %v5396_v31 = vpop.eup %5395  ;;  %5407 = vrcp.f32 %v2007_v5 }
 0x726   : > { %v2033_v22 = vmul.f32 %v5396_v31, %v7085_v46  ;;  %v5398_v36 = vpop.eup %5397 }
 0x727   : > { %v2035_v37 = vmul.f32 %v5398_v36, %v7083_v2  ;;  %v5162_v2 = vld [vmem:[#allocation10 + $0x30] sm:$0xff]  }
 0x728   : > { %v2044_v35 = vpack.c.bf16 %v2033_v22, %v2032_v55 }
 0x729   : > { %v5400_v51 = vpop.eup %5399 }
 0x72a   : > { %4938 = vmatprep.mubr.bf16.mxu0 %v2044_v35  ;;  %v2034_v29 = vmul.f32 %v5400_v51, %v7089_v26  ;;  %v5161_v26 = vld [vmem:[#allocation10 + $0x38] sm:$0xff]  }
 0x72b   : > { %4946 = vmatprep.subr.bf16.mxu0 %v5161_v26 }
 0x72c   : > { %v2045_v38 = vpack.c.bf16 %v2035_v37, %v2034_v29  ;;  %4947 = vmatpush3.bf16.msra.mxu0 %v5161_v26 }
 0x72d   : > { %v5402_v3 = vpop.eup %5401  ;;  %4948 = vmatprep.subr.bf16.mxu0 %v5162_v2 }
 0x72e   : > { %v5404_v43 = vpop.eup %5403  ;;  %4939 = vmatmul.mubr.bf16.gmra.mxu0 %v2045_v38  ;;  %v2036_v10 = vmul.f32 %v5402_v3, %v7092_v30  ;;  %v5164_v30 = vld [vmem:[#allocation10 + $0x20] sm:$0xff]  }
 0x72f   : > { %v2037_v34 = vmul.f32 %v5404_v43, %v7094_v47  ;;  %v5165_v47 = vld [vmem:[#allocation10 + $0x18] sm:$0xff]  }
 0x730   : > { %4949 = vmatpush3.bf16.msra.mxu0 %v5162_v2  ;;  %v5572_v2 = vld [vmem:[%s6118_s21 + $0x10] sm:$0xff] }
 0x731   : > { %v5406_v54 = vpop.eup %5405  ;;  %v2046_v24 = vpack.c.bf16 %v2037_v34, %v2036_v10  ;;  %4950 = vmatprep.subr.bf16.mxu0 %v5163_v11 }
 0x732   : > { %v5408_v44 = vpop.eup %5407  ;;  %v2038_v46 = vmul.f32 %v5406_v54, %v7098_v7  ;;  %v5166_v7 = vld [vmem:[#allocation10 + $0x10] sm:$0xff]  }
 0x733   : > { %4942 = vmatprep.mubr.bf16.mxu0 %v2046_v24  ;;  %v2039_v17 = vmul.f32 %v5408_v44, %v7100_v23  ;;  %v5167_v23 = vld [vmem:[#allocation10 + $0x8] sm:$0xff]  }
 0x734   : > { %4951 = vmatpush3.bf16.msra.mxu0 %v5163_v11 }
 0x735   : > { %v2047_v60 = vpack.c.bf16 %v2039_v17, %v2038_v46  ;;  %4952 = vmatprep.subr.bf16.mxu0 %v5164_v30 }
 0x737   : > { %4943 = vmatmul.mubr.bf16.gmra.mxu0 %v2047_v60 }
 0x738   : > { %4953 = vmatpush3.bf16.msra.mxu0 %v5164_v30 }
 0x739   : > { %4954 = vmatprep.subr.bf16.mxu0 %v5165_v47 }
 0x73c   : > { %4955 = vmatpush3.bf16.msra.mxu0 %v5165_v47 }
 0x73d   : > { %4956 = vmatprep.subr.bf16.mxu0 %v5166_v7 }
 0x740   : > { %4957 = vmatpush3.bf16.msra.mxu0 %v5166_v7 }
 0x741   : > { %4958 = vmatprep.subr.bf16.mxu0 %v5167_v23 }
 0x744   : > { %4959 = vmatpush3.bf16.msra.mxu0 %v5167_v23 }
 0x745   : > { %4960 = vmatprep.subr.bf16.mxu0 %v5168_v48 }
 0x748   : > { %4961 = vmatpush3.bf16.msra.mxu0 %v5168_v48 }
 0x7af   : > { %v4932_v19 = vpop.f32.mrf.mxu0 }
 0x7b1   : > { %v2114_v42 = vpop.f32.mrf.mxu0 }
 0x7b3   : > { %v4933_v15 = vpop.f32.mrf.mxu0 }
 0x7b4   : > { %v2178_v57 = vpack.c.bf16 %v4933_v15, %v4932_v19  ;;  %v5573_v15 = vld [vmem:[%s6118_s21 + $0x28] sm:$0xff] }
 0x7b5   : > { %v2117_v21 = vpop.f32.mrf.mxu0 }
 0x7b6   : > { %v2177_v32 = vpack.c.bf16 %v2117_v21, %v2114_v42  ;;  %2195 = vrot.lane.b32.xlu1 %v2178_v57, %s5863_s9 }
 0x7b7   : > { %v4936_v61 = vpop.f32.mrf.mxu0 }
 0x7b8   : > { %2193 = vrot.lane.b32.xlu0 %v2177_v32, %s5863_s9  ;;  %v5171_v32 = vld [vmem:[#allocation11 + $0xe4] ss:$16 sps:$4 sm:$0xff]  }
 0x7b9   : > { %v2130_v12 = vpop.f32.mrf.mxu0  ;;  %2949 = vmatprep.subr.bf16.mxu1 %v5171_v32 }
 0x7bb   : > { %v4937_v13 = vpop.f32.mrf.mxu0 }
 0x7bc   : > { %v2180_v31 = vpack.c.bf16 %v4937_v13, %v4936_v61  ;;  %v5174_v61 = vld [vmem:[#allocation11 + $0xec] ss:$16 sps:$4 sm:$0xff]  }
 0x7bd   : > { %v2133_v59 = vpop.f32.mrf.mxu0  ;;  %3062 = vmatprep.subr.bf16.mxu0 %v5174_v61 }
 0x7be   : > { %v2179_v5 = vpack.c.bf16 %v2133_v59, %v2130_v12  ;;  %v5574_v12 = vld [vmem:[%s6118_s21 + $0x20] sm:$0xff] }
 0x7c0   : > { %2197 = vrot.lane.b32.xlu1 %v2179_v5, %s5863_s9  ;;  %v5169_v5 = vld [vmem:[#allocation11 + $0xe0] ss:$16 sps:$4 sm:$0xff]  }
 0x7c1   : > { %2950 = vmatpush1.bf16.msra.mxu1 %v5169_v5 }
 0x7c4   : > { %2199 = vrot.lane.b32.xlu1 %v2180_v31, %s5863_s9  ;;  %v5172_v31 = vld [vmem:[#allocation11 + $0xe8] ss:$16 sps:$4 sm:$0xff]  }
 0x7ee   : > { %v4940_v55 = vpop.f32.mrf.mxu0 }
 0x7f0   : > { %v2146_v22 = vpop.f32.mrf.mxu0 }
 0x7f2   : > { %v4941_v36 = vpop.f32.mrf.mxu0 }
 0x7f3   : > { %v2182_v35 = vpack.c.bf16 %v4941_v36, %v4940_v55  ;;  %v5177_v55 = vld [vmem:[#allocation11 + $0xc4] ss:$16 sps:$4 sm:$0xff]  }
 0x7f4   : > { %v2149_v51 = vpop.f32.mrf.mxu0  ;;  %2951 = vmatprep.subr.bf16.mxu1 %v5177_v55 }
 0x7f5   : > { %v2181_v29 = vpack.c.bf16 %v2149_v51, %v2146_v22  ;;  %2203 = vrot.lane.b32.xlu1 %v2182_v35, %s5863_s9  ;;  %v5180_v22 = vld [vmem:[#allocation11 + $0xcc] ss:$16 sps:$4 sm:$0xff]   ;;  %v5575_v35 = vld [vmem:[%s6118_s21 + $0x38] sm:$0xff] }
 0x7f7   : > { %v4944_v37 = vpop.f32.mrf.mxu0  ;;  %2201 = vrot.lane.b32.xlu0 %v2181_v29, %s5863_s9 }
 0x7f9   : > { %v2162_v38 = vpop.f32.mrf.mxu0 }
 0x7fb   : > { %v4945_v3 = vpop.f32.mrf.mxu0 }
 0x7fc   : > { %v2184_v43 = vpack.c.bf16 %v4945_v3, %v4944_v37  ;;  %v5175_v37 = vld [vmem:[#allocation11 + $0xc0] ss:$16 sps:$4 sm:$0xff]   ;;  %v5183_v3 = vld [vmem:[#allocation11 + $0xa4] ss:$16 sps:$4 sm:$0xff]  }
 0x7fd   : > { %v2165_v10 = vpop.f32.mrf.mxu0  ;;  %2952 = vmatpush1.bf16.msra.mxu1 %v5175_v37 }
 0x7fe   : > { %v2183_v34 = vpack.c.bf16 %v2165_v10, %v2162_v38  ;;  %2207 = vrot.lane.b32.xlu1 %v2184_v43, %s5863_s9  ;;  %v5178_v38 = vld [vmem:[#allocation11 + $0xc8] ss:$16 sps:$4 sm:$0xff]   ;;  %v5186_v43 = vld [vmem:[#allocation11 + $0xac] ss:$16 sps:$4 sm:$0xff]   ;;  %2953 = vmatprep.subr.bf16.mxu1 %v5183_v3 }
 0x7ff   : > { %v5576_v10 = vld [vmem:[%s6118_s21 + $0x30] sm:$0xff] }
 0x800   : > { %2205 = vrot.lane.b32.xlu0 %v2183_v34, %s5863_s9 }
 0x828   : > { %v2196_v54 = vpop.permute.xlu1 %2195 }
 0x829   : > { %v2215_v46 = vsel %vm1233_vm0, %v1680_v33, %v2196_v54 }
 0x82a   : > { %v2194_v24 = vpop.permute.xlu0 %2193 }
 0x82b   : > { %v2211_v44 = vsel %vm1233_vm0, %v1679_v28, %v2194_v24 }
 0x82c   : > { %4962 = vmatprep.mubr.bf16.mxu0 %v2211_v44  ;;  %v5181_v44 = vld [vmem:[#allocation11 + $0xa0] ss:$16 sps:$4 sm:$0xff]  }
 0x82d   : > { %4963 = vmatmul.mubr.bf16.vlgmr.msra.gmra.mxu0 %v2215_v46  ;;  %v5184_v46 = vld [vmem:[#allocation11 + $0xa8] ss:$16 sps:$4 sm:$0xff]   ;;  %2954 = vmatpush1.bf16.msra.mxu1 %v5181_v44  ;;  %v5583_v44 = vld [vmem:[%s6118_s21 + $0x70] sm:$0xff] }
 0x82e   : > { %3063 = vmatpush1.bf16.msra.mxu0 %v5172_v31  ;;  %v5580_v31 = vld [vmem:[%s6118_s21 + $0x58] sm:$0xff] }
 0x82f   : > { %3064 = vmatprep.subr.bf16.mxu0 %v5180_v22 }
 0x832   : > { %v2198_v17 = vpop.permute.xlu1 %2197  ;;  %3065 = vmatpush1.bf16.msra.mxu0 %v5178_v38 }
 0x833   : > { %v2219_v60 = vsel %vm1233_vm0, %v1681_v41, %v2198_v17  ;;  %v5569_v41 = vld [vmem:[%s6118_s21] sm:$0xff]  ;;  %3066 = vmatprep.subr.bf16.mxu0 %v5186_v43  ;;  %v5189_v17 = vld [vmem:[#allocation11 + $0x84] ss:$16 sps:$4 sm:$0xff]  }
 0x834   : > { %4966 = vmatprep.mubr.bf16.mxu0 %v2219_v60  ;;  %v5192_v60 = vld [vmem:[#allocation11 + $0x8c] ss:$16 sps:$4 sm:$0xff]   ;;  %2955 = vmatprep.subr.bf16.mxu1 %v5189_v17 }
 0x836   : > { %v2200_v26 = vpop.permute.xlu1 %2199  ;;  %3067 = vmatpush1.bf16.msra.mxu0 %v5184_v46 }
 0x837   : > { %v2223_v20 = vsel %vm1233_vm0, %v1682_v40, %v2200_v26  ;;  %3068 = vmatprep.subr.bf16.mxu0 %v5192_v60 }
 0x838   : > { %4967 = vmatmul.mubr.bf16.gmra.mxu0 %v2223_v20 }
 0x867   : > { %v2204_v4 = vpop.permute.xlu1 %2203 }
 0x868   : > { %v2231_v27 = vsel %vm1233_vm0, %v1684_v49, %v2204_v4  ;;  %v5187_v4 = vld [vmem:[#allocation11 + $0x80] ss:$16 sps:$4 sm:$0xff]  }
 0x869   : > { %v2202_v25 = vpop.permute.xlu0 %2201  ;;  %2956 = vmatpush1.bf16.msra.mxu1 %v5187_v4  ;;  %v5584_v4 = vld [vmem:[%s6118_s21 + $0x78] sm:$0xff] }
 0x86a   : > { %v2227_v33 = vsel %vm1233_vm0, %v1683_v6, %v2202_v25  ;;  %v5570_v6 = vld [vmem:[%s6118_s21 + $0x8] sm:$0xff] }
 0x86b   : > { %4970 = vmatprep.mubr.bf16.mxu0 %v2227_v33  ;;  %v5190_v25 = vld [vmem:[#allocation11 + $0x88] ss:$16 sps:$4 sm:$0xff]   ;;  %v5195_v33 = vld [vmem:[#allocation11 + $0x64] ss:$16 sps:$4 sm:$0xff]  }
 0x86c   : > { %4971 = vmatmul.mubr.bf16.gmra.mxu0 %v2231_v27  ;;  %v5198_v27 = vld [vmem:[#allocation11 + $0x6c] ss:$16 sps:$4 sm:$0xff]   ;;  %2957 = vmatprep.subr.bf16.mxu1 %v5195_v33 }
 0x86d   : > { %3069 = vmatpush1.bf16.msra.mxu0 %v5190_v25 }
 0x86e   : > { %3070 = vmatprep.subr.bf16.mxu0 %v5198_v27 }
 0x870   : > { %v2208_v28 = vpop.permute.xlu1 %2207 }
 0x871   : > { %v2239_v16 = vsel %vm1233_vm0, %v1686_v52, %v2208_v28 }
 0x872   : > { %v2206_v9 = vpop.permute.xlu0 %2205 }
 0x873   : > { %v2235_v1 = vsel %vm1233_vm0, %v1685_v45, %v2206_v9  ;;  %v5193_v9 = vld [vmem:[#allocation11 + $0x60] ss:$16 sps:$4 sm:$0xff]  }
 0x874   : > { %4974 = vmatprep.mubr.bf16.mxu0 %v2235_v1  ;;  %v5196_v1 = vld [vmem:[#allocation11 + $0x68] ss:$16 sps:$4 sm:$0xff]   ;;  %2958 = vmatpush1.bf16.msra.mxu1 %v5193_v9 }
 0x875   : > { %4975 = vmatmul.mubr.bf16.gmra.mxu0 %v2239_v16  ;;  %v5201_v16 = vld [vmem:[#allocation11 + $0x44] ss:$16 sps:$4 sm:$0xff]  }
 0x876   : > { %3094 = vmatprep.mubr.bf16.mxu0 %v8490_v62  ;;  %3071 = vmatpush1.bf16.msra.mxu0 %v5196_v1 }
 0x877   : > { %2959 = vmatprep.subr.bf16.mxu1 %v5201_v16 }
 0x8ed   : > { %v4964_v40 = vpop.f32.mrf.mxu0 }
 0x8ee   : > { %v2404_v11 = vadd.f32 %v5572_v2, %v4964_v40  ;;  %v5204_v40 = vld [vmem:[#allocation11 + $0x4c] ss:$16 sps:$4 sm:$0xff]  }
 0x8ef   : > { %v2339_v39 = vpop.f32.mrf.mxu0  ;;  %3072 = vmatprep.subr.bf16.mxu0 %v5204_v40 }
 0x8f0   : > { %v2402_v63 = vadd.f32 %v5569_v41, %v2339_v39  ;;  %v7187_v48 = vadd.f32 %v7165_v56, %v2404_v11  ;;  %v5199_v39 = vld [vmem:[#allocation11 + $0x40] ss:$16 sps:$4 sm:$0xff]   ;;  %v5202_v41 = vld [vmem:[#allocation11 + $0x48] ss:$16 sps:$4 sm:$0xff]  }
 0x8f1   : > { %v4965_v18 = vpop.f32.mrf.mxu0  ;;  %2960 = vmatpush1.bf16.msra.mxu1 %v5199_v39  ;;  %3073 = vmatpush1.bf16.msra.mxu0 %v5202_v41  ;;  %v5577_v11 = vld [vmem:[%s6118_s21 + $0x40] sm:$0xff] }
 0x8f2   : > { %v7168_v49 = vadd.f32 %v7165_v56, %v2402_v63  ;;  %v2405_v8 = vadd.f32 %v5571_v0, %v4965_v18  ;;  %8502 = vst [vmem:[#allocation26_spill] sm:$0xff] %v7187_v48  ;;  %v2477_v59 = vmul.f32 %v7187_v48, %v7187_v48  ;;  %v5207_v63 = vld [vmem:[#allocation11 + $0x24] ss:$16 sps:$4 sm:$0xff]   ;;  %v5210_v18 = vld [vmem:[#allocation11 + $0x2c] ss:$16 sps:$4 sm:$0xff]  }
 0x8f3   : > { %v2342_v53 = vpop.f32.mrf.mxu0  ;;  %2961 = vmatprep.subr.bf16.mxu1 %v5207_v63  ;;  %3074 = vmatprep.subr.bf16.mxu0 %v5210_v18  ;;  %v5216_v0 = vld [vmem:[#allocation11 + $0xc] ss:$16 sps:$4 sm:$0xff]  }
 0x8f4   : > { %8499 = vst [vmem:[#allocation25_spill] sm:$0xff] %v7168_v49  ;;  %v2403_v58 = vadd.f32 %v5570_v6, %v2342_v53  ;;  %2491 = vadd.xlane.f32.xlu0 %v7168_v49  ;;  %v2475_v14 = vmul.f32 %v7168_v49, %v7168_v49  ;;  %v7181_v30 = vadd.f32 %v7165_v56, %v2405_v8  ;;  %v5205_v53 = vld [vmem:[#allocation11 + $0x20] ss:$16 sps:$4 sm:$0xff]   ;;  %v5208_v6 = vld [vmem:[#allocation11 + $0x28] ss:$16 sps:$4 sm:$0xff]  }
 0x8f5   : > { %2962 = vmatpush1.bf16.msra.mxu1 %v5205_v53  ;;  %3075 = vmatpush1.bf16.msra.mxu0 %v5208_v6  ;;  %v5211_v8 = vld [vmem:[#allocation11] ss:$16 sps:$4 sm:$0xff]  }
 0x8f6   : > { %v7174_v52 = vadd.f32 %v7165_v56, %v2403_v58  ;;  %8501 = vst [vmem:[#allocation21_spill] sm:$0xff] %v7181_v30  ;;  %v2478_v42 = vmul.f32 %v7181_v30, %v7181_v30  ;;  %v5213_v58 = vld [vmem:[#allocation11 + $0x4] ss:$16 sps:$4 sm:$0xff]   ;;  %3076 = vmatprep.subr.bf16.mxu0 %v5216_v0 }
 0x8f7   : > { %2963 = vmatprep.subr.bf16.mxu1 %v5213_v58 }
 0x8f8   : > { %8500 = vst [vmem:[#allocation22_spill] sm:$0xff] %v7174_v52  ;;  %v4968_v45 = vpop.f32.mrf.mxu0  ;;  %2523 = vadd.xlane.f32.xlu0 %v2475_v14  ;;  %2493 = vadd.xlane.f32.xlu1 %v7174_v52  ;;  %v2476_v7 = vmul.f32 %v7174_v52, %v7174_v52  ;;  %v5214_v14 = vld [vmem:[#allocation11 + $0x8] ss:$16 sps:$4 sm:$0xff]  }
 0x8f9   : > { %v2408_v34 = vadd.f32 %v5576_v10, %v4968_v45  ;;  %2964 = vmatpush1.bf16.msra.mxu1 %v5211_v8  ;;  %3077 = vmatpush1.bf16.msra.mxu0 %v5214_v14  ;;  %v5582_v10 = vld [vmem:[%s6118_s21 + $0x68] sm:$0xff] }
 0x8fa   : > { %v2355_v47 = vpop.f32.mrf.mxu0 }
 0x8fb   : > { %v2406_v13 = vadd.f32 %v5574_v12, %v2355_v47  ;;  %v7215_v26 = vadd.f32 %v7165_v56, %v2408_v34 }
 0x8fc   : > { %v4969_v23 = vpop.f32.mrf.mxu0  ;;  %2497 = vadd.xlane.f32.xlu1 %v7181_v30  ;;  %2525 = vadd.xlane.f32.xlu0 %v2476_v7 }
 0x8fd   : > { %v7201_v36 = vadd.f32 %v7165_v56, %v2406_v13  ;;  %v2409_v51 = vadd.f32 %v5575_v35, %v4969_v23  ;;  %8506 = vst [vmem:[#allocation28_spill] sm:$0xff] %v7215_v26  ;;  %v2481_v28 = vmul.f32 %v7215_v26, %v7215_v26 }
 0x8fe   : > { %v2358_v19 = vpop.f32.mrf.mxu0 }
 0x8ff   : > { %v2407_v57 = vadd.f32 %v5573_v15, %v2358_v19  ;;  %8504 = vst [vmem:[#allocation24_spill] sm:$0xff] %v7201_v36  ;;  %v7209_v54 = vadd.f32 %v7165_v56, %v2409_v51  ;;  %v2479_v24 = vmul.f32 %v7201_v36, %v7201_v36 }
 0x900   : > { %2529 = vadd.xlane.f32.xlu1 %v2478_v42  ;;  %2495 = vadd.xlane.f32.xlu0 %v7187_v48  ;;  %v5578_v42 = vld [vmem:[%s6118_s21 + $0x48] sm:$0xff] }
 0x901   : > { %v7194_v21 = vadd.f32 %v7165_v56, %v2407_v57  ;;  %8505 = vst [vmem:[#allocation23_spill] sm:$0xff] %v7209_v54  ;;  %v2482_v20 = vmul.f32 %v7209_v54, %v7209_v54  ;;  %v5579_v57 = vld [vmem:[%s6118_s21 + $0x50] sm:$0xff] }
 0x903   : > { %8503 = vst [vmem:[#allocation27_spill] sm:$0xff] %v7194_v21  ;;  %v2480_v29 = vmul.f32 %v7194_v21, %v7194_v21 }
 0x904   : > { %2527 = vadd.xlane.f32.xlu0 %v2477_v59  ;;  %2501 = vadd.xlane.f32.xlu1 %v7194_v21 }
 0x908   : > { %2499 = vadd.xlane.f32.xlu0 %v7201_v36  ;;  %2533 = vadd.xlane.f32.xlu1 %v2480_v29  ;;  %v5581_v29 = vld [vmem:[%s6118_s21 + $0x60] sm:$0xff] }
 0x90c   : > { %2531 = vadd.xlane.f32.xlu0 %v2479_v24  ;;  %2505 = vadd.xlane.f32.xlu1 %v7209_v54 }
 0x910   : > { %2503 = vadd.xlane.f32.xlu0 %v7215_v26  ;;  %2537 = vadd.xlane.f32.xlu1 %v2482_v20 }
 0x914   : > { %2535 = vadd.xlane.f32.xlu0 %v2481_v28 }
 0x92c   : > { %v4972_v45 = vpop.f32.mrf.mxu0 }
 0x92d   : > { %v2412_v32 = vadd.f32 %v5579_v57, %v4972_v45 }
 0x92e   : > { %v2371_v2 = vpop.f32.mrf.mxu0 }
 0x92f   : > { %v2410_v47 = vadd.f32 %v5577_v11, %v2371_v2  ;;  %v7236_v5 = vadd.f32 %v7165_v56, %v2412_v32 }
 0x930   : > { %v4973_v7 = vpop.f32.mrf.mxu0 }
 0x931   : > { %v7224_v23 = vadd.f32 %v7165_v56, %v2410_v47  ;;  %8509 = vst [vmem:[#allocation31_spill] sm:$0xff] %v7236_v5  ;;  %v2413_v55 = vadd.f32 %v5580_v31, %v4973_v7  ;;  %v2485_v38 = vmul.f32 %v7236_v5, %v7236_v5 }
 0x932   : > { %v2374_v19 = vpop.f32.mrf.mxu0 }
 0x933   : > { %8507 = vst [vmem:[#allocation29_spill] sm:$0xff] %v7224_v23  ;;  %v2411_v15 = vadd.f32 %v5578_v42, %v2374_v19  ;;  %2507 = vadd.xlane.f32.xlu0 %v7224_v23  ;;  %v2483_v13 = vmul.f32 %v7224_v23, %v7224_v23  ;;  %v7243_v51 = vadd.f32 %v7165_v56, %v2413_v55 }
 0x935   : > { %v7230_v61 = vadd.f32 %v7165_v56, %v2411_v15  ;;  %v4976_v12 = vpop.f32.mrf.mxu0  ;;  %8510 = vst [vmem:[#allocation32_spill] sm:$0xff] %v7243_v51  ;;  %v2486_v24 = vmul.f32 %v7243_v51, %v7243_v51 }
 0x936   : > { %v2416_v46 = vadd.f32 %v5583_v44, %v4976_v12 }
 0x937   : > { %8508 = vst [vmem:[#allocation30_spill] sm:$0xff] %v7230_v61  ;;  %v2387_v59 = vpop.f32.mrf.mxu0  ;;  %2539 = vadd.xlane.f32.xlu0 %v2483_v13  ;;  %2509 = vadd.xlane.f32.xlu1 %v7230_v61  ;;  %v2484_v22 = vmul.f32 %v7230_v61, %v7230_v61 }
 0x938   : > { %v2414_v37 = vadd.f32 %v5581_v29, %v2387_v59  ;;  %v7264_v20 = vadd.f32 %v7165_v56, %v2416_v46 }
 0x939   : > { %v4977_v35 = vpop.f32.mrf.mxu0 }
 0x93a   : > { %v7250_v43 = vadd.f32 %v7165_v56, %v2414_v37  ;;  %8513 = vst [vmem:[#allocation35_spill] sm:$0xff] %v7264_v20  ;;  %v2417_v25 = vadd.f32 %v5584_v4, %v4977_v35  ;;  %v2489_v28 = vmul.f32 %v7264_v20, %v7264_v20 }
 0x93b   : > { %2511 = vadd.xlane.f32.xlu0 %v7236_v5  ;;  %2541 = vadd.xlane.f32.xlu1 %v2484_v22  ;;  %v2390_v3 = vpop.f32.mrf.mxu0 }
 0x93c   : > { %8511 = vst [vmem:[#allocation33_spill] sm:$0xff] %v7250_v43  ;;  %v2415_v34 = vadd.f32 %v5582_v10, %v2390_v3  ;;  %v2487_v60 = vmul.f32 %v7250_v43, %v7250_v43  ;;  %v7271_v27 = vadd.f32 %v7165_v56, %v2417_v25 }
 0x93e   : > { %v7258_v17 = vadd.f32 %v7165_v56, %v2415_v34  ;;  %8514 = vst [vmem:[#allocation36_spill] sm:$0xff] %v7271_v27  ;;  %v2490_v9 = vmul.f32 %v7271_v27, %v7271_v27 }
 0x93f   : > { %2543 = vadd.xlane.f32.xlu0 %v2485_v38  ;;  %2513 = vadd.xlane.f32.xlu1 %v7243_v51 }
 0x940   : > { %8512 = vst [vmem:[#allocation34_spill] sm:$0xff] %v7258_v17  ;;  %v2488_v33 = vmul.f32 %v7258_v17, %v7258_v17 }
 0x943   : > { %2545 = vadd.xlane.f32.xlu1 %v2486_v24  ;;  %2515 = vadd.xlane.f32.xlu0 %v7250_v43 }
 0x947   : > { %2547 = vadd.xlane.f32.xlu0 %v2487_v60  ;;  %2517 = vadd.xlane.f32.xlu1 %v7258_v17 }
 0x94b   : > { %2519 = vadd.xlane.f32.xlu0 %v7264_v20  ;;  %2549 = vadd.xlane.f32.xlu1 %v2488_v33 }
 0x94f   : > { %2551 = vadd.xlane.f32.xlu0 %v2489_v28  ;;  %2521 = vadd.xlane.f32.xlu1 %v7271_v27 }
 0x953   : > { %2553 = vadd.xlane.f32.xlu1 %v2490_v9 }
 0x97d   : > { %v2492_v1 = vpop.xlane.xlu0 %2491 }
 0x97e   : > { %v2555_v16 = vmul.f32 0.0078125, %v2492_v1 }
 0x980   : > { %v2587_v41 = vmul.f32 %v2555_v16, %v2555_v16  ;;  %v2619_v24 = vsub.f32 %v7168_v49, %v2555_v16 }
 0x981   : > { %v2524_v40 = vpop.xlane.xlu0 %2523  ;;  %v2494_v39 = vpop.xlane.xlu1 %2493 }
 0x982   : > { %v2571_v63 = vmul.f32 0.0078125, %v2524_v40  ;;  %v2556_v18 = vmul.f32 0.0078125, %v2494_v39  ;;  %v7287_v40 = vld [vmem:[%s8385_s7] ss:$0 sm:$0xff] }
 0x984   : > { %v2603_v53 = vsub.f32 %v2571_v63, %v2587_v41  ;;  %v2588_v0 = vmul.f32 %v2556_v18, %v2556_v18  ;;  %v2620_v9 = vsub.f32 %v7174_v52, %v2556_v18 }
 0x985   : > { %v2526_v56 = vpop.xlane.xlu0 %2525  ;;  %v2498_v6 = vpop.xlane.xlu1 %2497 }
 0x986   : > { %v2635_v58 = vadd.f32 1e-05, %v2603_v53  ;;  %v2572_v8 = vmul.f32 0.0078125, %v2526_v56  ;;  %v2558_v14 = vmul.f32 0.0078125, %v2498_v6 }
 0x988   : > { %5409 = vrsqrt.f32 %v2635_v58  ;;  %v2604_v45 = vsub.f32 %v2572_v8, %v2588_v0  ;;  %v2590_v7 = vmul.f32 %v2558_v14, %v2558_v14  ;;  %v2622_v8 = vsub.f32 %v7181_v30, %v2558_v14 }
 0x989   : > { %v2496_v2 = vpop.xlane.xlu0 %2495  ;;  %v2530_v11 = vpop.xlane.xlu1 %2529 }
 0x98a   : > { %v2636_v47 = vadd.f32 1e-05, %v2604_v45  ;;  %v2557_v19 = vmul.f32 0.0078125, %v2496_v2  ;;  %v2574_v42 = vmul.f32 0.0078125, %v2530_v11  ;;  %v7294_v45 = vld [vmem:[%s8386_s8] ss:$0 sm:$0xff] }
 0x98c   : > { %5411 = vrsqrt.f32 %v2636_v47  ;;  %v2606_v15 = vsub.f32 %v2574_v42, %v2590_v7  ;;  %v2589_v12 = vmul.f32 %v2557_v19, %v2557_v19  ;;  %v2621_v14 = vsub.f32 %v7187_v48, %v2557_v19 }
 0x98d   : > { %v2528_v57 = vpop.xlane.xlu0 %2527  ;;  %v2502_v32 = vpop.xlane.xlu1 %2501 }
 0x98e   : > { %v2638_v13 = vadd.f32 1e-05, %v2606_v15  ;;  %v2573_v59 = vmul.f32 0.0078125, %v2528_v57  ;;  %v7278_v31 = vmul.f32 0.0078125, %v2502_v32 }
 0x990   : > { %5413 = vrsqrt.f32 %v2638_v13  ;;  %v2605_v55 = vsub.f32 %v2573_v59, %v2589_v12  ;;  %v2592_v37 = vmul.f32 %v7278_v31, %v7278_v31 }
 0x991   : > { %v2500_v22 = vpop.xlane.xlu0 %2499  ;;  %v2534_v35 = vpop.xlane.xlu1 %2533 }
 0x992   : > { %v2637_v29 = vadd.f32 1e-05, %v2605_v55  ;;  %v2559_v38 = vmul.f32 0.0078125, %v2500_v22  ;;  %v2576_v3 = vmul.f32 0.0078125, %v2534_v35 }
 0x994   : > { %5415 = vrsqrt.f32 %v2637_v29  ;;  %v2608_v10 = vsub.f32 %v2576_v3, %v2592_v37  ;;  %v2591_v60 = vmul.f32 %v2559_v38, %v2559_v38  ;;  %v2624_v37 = vsub.f32 %v7194_v21, %v7278_v31 }
 0x995   : > { %v5410_v34 = vpop.eup %5409  ;;  %v2532_v44 = vpop.xlane.xlu0 %2531 }
 0x996   : > { %v2506_v46 = vpop.xlane.xlu1 %2505  ;;  %v2640_v4 = vadd.f32 1e-05, %v2608_v10  ;;  %v2575_v25 = vmul.f32 0.0078125, %v2532_v44  ;;  %v2667_v28 = vmul.f32 %v5410_v34, %v2619_v24  ;;  %v2623_v44 = vsub.f32 %v7201_v36, %v2559_v38 }
 0x997   : > { %v2562_v33 = vmul.f32 0.0078125, %v2506_v46 }
 0x998   : > { %5417 = vrsqrt.f32 %v2640_v4  ;;  %v2607_v1 = vsub.f32 %v2575_v25, %v2591_v60  ;;  %v2689_v0 = vmul.f32 %v7287_v40, %v2667_v28 }
 0x999   : > { %v5412_v39 = vpop.eup %5411  ;;  %v2594_v41 = vmul.f32 %v2562_v33, %v2562_v33  ;;  %v2504_v63 = vpop.xlane.xlu0 %2503  ;;  %v2626_v25 = vsub.f32 %v7209_v54, %v2562_v33 }
 0x99a   : > { %v2538_v16 = vpop.xlane.xlu1 %2537  ;;  %v2668_v53 = vmul.f32 %v5412_v39, %v2620_v9  ;;  %v2639_v56 = vadd.f32 1e-05, %v2607_v1  ;;  %v2561_v6 = vmul.f32 0.0078125, %v2504_v63  ;;  %v2711_v32 = vadd.f32 %v7294_v45, %v2689_v0 }
 0x99b   : > { %v2578_v58 = vmul.f32 0.0078125, %v2538_v16 }
 0x99c   : > { %5419 = vrsqrt.f32 %v2639_v56  ;;  %v2690_v47 = vmul.f32 %v7287_v40, %v2668_v53  ;;  %v2593_v7 = vmul.f32 %v2561_v6, %v2561_v6 }
 0x99d   : > { %v2610_v18 = vsub.f32 %v2578_v58, %v2594_v41  ;;  %v5414_v2 = vpop.eup %5413  ;;  %v2536_v11 = vpop.xlane.xlu0 %2535  ;;  %v2625_v41 = vsub.f32 %v7215_v26, %v2561_v6 }
 0x99e   : > { %v2577_v15 = vmul.f32 0.0078125, %v2536_v11  ;;  %v2670_v57 = vmul.f32 %v5414_v2, %v2622_v8  ;;  %v2712_v12 = vadd.f32 %v7294_v45, %v2690_v47 }
 0x99f   : > { %v2642_v42 = vadd.f32 1e-05, %v2610_v18 }
 0x9a0   : > { %v2609_v13 = vsub.f32 %v2577_v15, %v2593_v7  ;;  %v2727_v55 = vpack.c.bf16 %v2712_v12, %v2711_v32  ;;  %v2692_v29 = vmul.f32 %v7287_v40, %v2670_v57 }
 0x9a1   : > { %5421 = vrsqrt.f32 %v2642_v42  ;;  %v5416_v59 = vpop.eup %5415 }
 0x9a2   : > { %v2641_v22 = vadd.f32 1e-05, %v2609_v13  ;;  %v2669_v35 = vmul.f32 %v5416_v59, %v2621_v14  ;;  %2982 = vmatmul.mubr.bf16.vlgmr.msra.gmra.mxu1 %v2727_v55  ;;  %3095 = vmatmul.mubr.bf16.vlgmr.msra.gmra.mxu0 %v2727_v55  ;;  %v2714_v34 = vadd.f32 %v7294_v45, %v2692_v29 }
 0x9a3   : > { %2991 = vmatprep.mubr.bf16.mxu1 %v8490_v62  ;;  %3104 = vmatprep.mubr.bf16.mxu0 %v8490_v62 }
 0x9a4   : > { %5423 = vrsqrt.f32 %v2641_v22  ;;  %v2691_v19 = vmul.f32 %v7287_v40, %v2669_v35 }
 0x9a5   : > { %v5418_v3 = vpop.eup %5417 }
 0x9a6   : > { %v2713_v10 = vadd.f32 %v7294_v45, %v2691_v19  ;;  %v2672_v24 = vmul.f32 %v5418_v3, %v2624_v37 }
 0x9a8   : > { %v2728_v46 = vpack.c.bf16 %v2714_v34, %v2713_v10  ;;  %v2694_v31 = vmul.f32 %v7287_v40, %v2672_v24 }
 0x9a9   : > { %v5420_v60 = vpop.eup %5419 }
 0x9aa   : > { %v2671_v4 = vmul.f32 %v5420_v60, %v2623_v44  ;;  %2992 = vmatmul.mubr.bf16.gmra.mxu1 %v2728_v46  ;;  %3105 = vmatmul.mubr.bf16.gmra.mxu0 %v2728_v46  ;;  %v2716_v38 = vadd.f32 %v7294_v45, %v2694_v31 }
 0x9ab   : > { %3001 = vmatprep.mubr.bf16.mxu1 %v8490_v62  ;;  %3114 = vmatprep.mubr.bf16.mxu0 %v8490_v62 }
 0x9ac   : > { %v2693_v28 = vmul.f32 %v7287_v40, %v2671_v4 }
 0x9ae   : > { %v5422_v9 = vpop.eup %5421  ;;  %v2715_v1 = vadd.f32 %v7294_v45, %v2693_v28 }
 0x9af   : > { %v2674_v39 = vmul.f32 %v5422_v9, %v2626_v25 }
 0x9b0   : > { %v2729_v63 = vpack.c.bf16 %v2716_v38, %v2715_v1 }
 0x9b1   : > { %v5424_v16 = vpop.eup %5423  ;;  %v2696_v56 = vmul.f32 %v7287_v40, %v2674_v39 }
 0x9b2   : > { %v2673_v53 = vmul.f32 %v5424_v16, %v2625_v41  ;;  %3002 = vmatmul.mubr.bf16.gmra.mxu1 %v2729_v63  ;;  %3115 = vmatmul.mubr.bf16.gmra.mxu0 %v2729_v63 }
 0x9b3   : > { %3011 = vmatprep.mubr.bf16.mxu1 %v8490_v62  ;;  %3124 = vmatprep.mubr.bf16.mxu0 %v8490_v62  ;;  %v2718_v0 = vadd.f32 %v7294_v45, %v2696_v56 }
 0x9b4   : > { %v2695_v33 = vmul.f32 %v7287_v40, %v2673_v53 }
 0x9b6   : > { %v2717_v58 = vadd.f32 %v7294_v45, %v2695_v33 }
 0x9b8   : > { %v2730_v8 = vpack.c.bf16 %v2718_v0, %v2717_v58 }
 0x9ba   : > { %3012 = vmatmul.mubr.bf16.gmra.mxu1 %v2730_v8  ;;  %3125 = vmatmul.mubr.bf16.gmra.mxu0 %v2730_v8 }
 0x9bb   : > { %3021 = vmatprep.mubr.bf16.mxu1 %v8490_v62  ;;  %3134 = vmatprep.mubr.bf16.mxu0 %v8490_v62 }
 0x9bc   : > { %v2508_v6 = vpop.xlane.xlu0 %2507 }
 0x9bd   : > { %v2563_v18 = vmul.f32 0.0078125, %v2508_v6 }
 0x9bf   : > { %v2595_v47 = vmul.f32 %v2563_v18, %v2563_v18  ;;  %v2627_v16 = vsub.f32 %v7224_v23, %v2563_v18 }
 0x9c0   : > { %v2540_v2 = vpop.xlane.xlu0 %2539  ;;  %v2510_v11 = vpop.xlane.xlu1 %2509 }
 0x9c1   : > { %v2579_v7 = vmul.f32 0.0078125, %v2540_v2  ;;  %v2564_v42 = vmul.f32 0.0078125, %v2510_v11 }
 0x9c3   : > { %v2611_v15 = vsub.f32 %v2579_v7, %v2595_v47  ;;  %v2596_v14 = vmul.f32 %v2564_v42, %v2564_v42  ;;  %v2628_v2 = vsub.f32 %v7230_v61, %v2564_v42 }
 0x9c4   : > { %v2512_v57 = vpop.xlane.xlu0 %2511  ;;  %v2542_v32 = vpop.xlane.xlu1 %2541 }
 0x9c5   : > { %v2643_v12 = vadd.f32 1e-05, %v2611_v15  ;;  %v2565_v13 = vmul.f32 0.0078125, %v2512_v57  ;;  %v2580_v59 = vmul.f32 0.0078125, %v2542_v32 }
 0x9c7   : > { %5425 = vrsqrt.f32 %v2643_v12  ;;  %v2612_v55 = vsub.f32 %v2580_v59, %v2596_v14  ;;  %v2597_v29 = vmul.f32 %v2565_v13, %v2565_v13 }
 0x9c8   : > { %v2544_v22 = vpop.xlane.xlu0 %2543  ;;  %v2514_v35 = vpop.xlane.xlu1 %2513 }
 0x9c9   : > { %v2644_v37 = vadd.f32 1e-05, %v2612_v55  ;;  %v2581_v19 = vmul.f32 0.0078125, %v2544_v22  ;;  %v2566_v3 = vmul.f32 0.0078125, %v2514_v35  ;;  %v2629_v55 = vsub.f32 %v7236_v5, %v2565_v13 }
 0x9cb   : > { %5427 = vrsqrt.f32 %v2644_v37  ;;  %v2613_v10 = vsub.f32 %v2581_v19, %v2597_v29  ;;  %v2598_v46 = vmul.f32 %v2566_v3, %v2566_v3 }
 0x9cc   : > { %v2516_v34 = vpop.xlane.xlu0 %2515  ;;  %v2546_v24 = vpop.xlane.xlu1 %2545 }
 0x9cd   : > { %v2645_v44 = vadd.f32 1e-05, %v2613_v10  ;;  %v7325_v60 = vmul.f32 0.0078125, %v2516_v34  ;;  %v2582_v4 = vmul.f32 0.0078125, %v2546_v24 }
 0x9cf   : > { %5429 = vrsqrt.f32 %v2645_v44  ;;  %v2614_v31 = vsub.f32 %v2582_v4, %v2598_v46  ;;  %v2599_v9 = vmul.f32 %v7325_v60, %v7325_v60  ;;  %v2630_v46 = vsub.f32 %v7243_v51, %v2566_v3 }
 0x9d0   : > { %v2548_v25 = vpop.xlane.xlu0 %2547  ;;  %v2518_v28 = vpop.xlane.xlu1 %2517 }
 0x9d1   : > { %v2646_v1 = vadd.f32 1e-05, %v2614_v31  ;;  %v2583_v38 = vmul.f32 0.0078125, %v2548_v25  ;;  %v2568_v39 = vmul.f32 0.0078125, %v2518_v28 }
 0x9d3   : > { %5431 = vrsqrt.f32 %v2646_v1  ;;  %v2615_v41 = vsub.f32 %v2583_v38, %v2599_v9  ;;  %v2600_v58 = vmul.f32 %v2568_v39, %v2568_v39  ;;  %v2631_v1 = vsub.f32 %v7250_v43, %v7325_v60 }
 0x9d4   : > { %v5426_v63 = vpop.eup %5425  ;;  %v2520_v53 = vpop.xlane.xlu0 %2519 }
 0x9d5   : > { %v2550_v56 = vpop.xlane.xlu1 %2549  ;;  %v2647_v33 = vadd.f32 1e-05, %v2615_v41  ;;  %v2569_v0 = vmul.f32 0.0078125, %v2520_v53  ;;  %v2675_v6 = vmul.f32 %v5426_v63, %v2627_v16  ;;  %v2632_v53 = vsub.f32 %v7258_v17, %v2568_v39 }
 0x9d6   : > { %v2584_v8 = vmul.f32 0.0078125, %v2550_v56 }
 0x9d7   : > { %5433 = vrsqrt.f32 %v2647_v33  ;;  %v2601_v7 = vmul.f32 %v2569_v0, %v2569_v0  ;;  %v2697_v18 = vmul.f32 %v7287_v40, %v2675_v6 }
 0x9d8   : > { %v2616_v11 = vsub.f32 %v2584_v8, %v2600_v58  ;;  %v5428_v47 = vpop.eup %5427  ;;  %v2552_v15 = vpop.xlane.xlu0 %2551  ;;  %v2633_v8 = vsub.f32 %v7264_v20, %v2569_v0 }
 0x9d9   : > { %v2522_v57 = vpop.xlane.xlu1 %2521  ;;  %v2585_v12 = vmul.f32 0.0078125, %v2552_v15  ;;  %v2676_v59 = vmul.f32 %v5428_v47, %v2628_v2  ;;  %v2719_v24 = vadd.f32 %v7294_v45, %v2697_v18  ;;  %v7353_v15 = vld [vmem:[#allocation13 + $0xf8] sm:$0xff]  }
 0x9da   : > { %v2648_v32 = vadd.f32 1e-05, %v2616_v11  ;;  %v2570_v14 = vmul.f32 0.0078125, %v2522_v57  ;;  %v5217_v11 = vld [vmem:[#allocation13 + $0x78] sm:$0xff]   ;;  %4722 = vmatprep.subr.bf16.mxu0 %v7353_v15 }
 0x9db   : > { %v2617_v22 = vsub.f32 %v2585_v12, %v2601_v7  ;;  %v2698_v42 = vmul.f32 %v7287_v40, %v2676_v59  ;;  %4658 = vmatprep.subr.bf16.mxu1 %v5217_v11  ;;  %v5218_v57 = vld [vmem:[#allocation13 + $0x38] sm:$0xff]   ;;  %v8532_v11 = vsub.s32 2, %v6358_v50 }
 0x9dc   : > { %5435 = vrsqrt.f32 %v2648_v32  ;;  %v5430_v35 = vpop.eup %5429  ;;  %v2602_v19 = vmul.f32 %v2570_v14, %v2570_v14  ;;  %v7355_v32 = vld [vmem:[#allocation13 + $0xb8] sm:$0xff]   ;;  %v2634_v0 = vsub.f32 %v7271_v27, %v2570_v14  ;;  %4659 = vmatpush3.bf16.msra.mxu1 %v5218_v57 }
 0x9dd   : > { %v2554_v29 = vpop.xlane.xlu1 %2553  ;;  %v2649_v37 = vadd.f32 1e-05, %v2617_v22  ;;  %v2677_v34 = vmul.f32 %v5430_v35, %v2629_v55  ;;  %v2720_v44 = vadd.f32 %v7294_v45, %v2698_v42  ;;  %8515 = vst [vmem:[#allocation37_spill] sm:$0xff] %v7355_v32  ;;  %4723 = vmatpush3.bf16.msra.mxu0 %v7355_v32  ;;  %v5221_v22 = vld [vmem:[#allocation13 + $0x70] sm:$0xff]  }
 0x9de   : > { %v2586_v10 = vmul.f32 0.0078125, %v2554_v29  ;;  %v7361_v35 = vld [vmem:[#allocation13 + $0xf0] sm:$0xff]   ;;  %4660 = vmatprep.subr.bf16.mxu1 %v5221_v22 }
 0x9df   : > { %5437 = vrsqrt.f32 %v2649_v37  ;;  %v2731_v13 = vpack.c.bf16 %v2720_v44, %v2719_v24  ;;  %v2699_v9 = vmul.f32 %v7287_v40, %v2677_v34  ;;  %8516 = vst [vmem:[#allocation38_spill] sm:$0xff] %v7361_v35  ;;  %v5223_v29 = vld [vmem:[#allocation13 + $0x30] sm:$0xff]   ;;  %4724 = vmatprep.subr.bf16.mxu0 %v7361_v35  ;;  %v7372_v34 = vld [vmem:[#allocation13 + $0xe8] sm:$0xff]  }
 0x9e0   : > { %v2618_v4 = vsub.f32 %v2586_v10, %v2602_v19  ;;  %v5432_v31 = vpop.eup %5431  ;;  %v7366_v42 = vld [vmem:[#allocation13 + $0xb0] sm:$0xff]   ;;  %4661 = vmatpush3.bf16.msra.mxu1 %v5223_v29  ;;  %v5225_v10 = vld [vmem:[#allocation13 + $0x68] sm:$0xff]   ;;  %8518 = vst [vmem:[#allocation40_spill] sm:$0xff] %v7372_v34 }
 0x9e1   : > { %v2678_v28 = vmul.f32 %v5432_v31, %v2630_v46  ;;  %3022 = vmatmul.mubr.bf16.gmra.mxu1 %v2731_v13  ;;  %3135 = vmatmul.mubr.bf16.gmra.mxu0 %v2731_v13  ;;  %v2721_v41 = vadd.f32 %v7294_v45, %v2699_v9  ;;  %8517 = vst [vmem:[#allocation39_spill] sm:$0xff] %v7366_v42  ;;  %v7374_v44 = vld [vmem:[#allocation13 + $0xa8] sm:$0xff]   ;;  %v5231_v46 = vld [vmem:[#allocation13 + $0x20] sm:$0xff]   ;;  %v5233_v31 = vld [vmem:[#allocation13 + $0x58] sm:$0xff]  }
 0x9e2   : > { %v2650_v25 = vadd.f32 1e-05, %v2618_v4  ;;  %3031 = vmatprep.mubr.bf16.mxu1 %v8490_v62  ;;  %3144 = vmatprep.mubr.bf16.mxu0 %v8490_v62  ;;  %8519 = vst [vmem:[#allocation41_spill] sm:$0xff] %v7374_v44  ;;  %v7380_v4 = vld [vmem:[#allocation13 + $0xa0] sm:$0xff]   ;;  %v7384_v13 = vld [vmem:[#allocation13 + $0xd8] sm:$0xff]   ;;  %v5237_v9 = vld [vmem:[#allocation13 + $0x50] sm:$0xff]  }
 0x9e3   : > { %v2700_v3 = vmul.f32 %v7287_v40, %v2678_v28  ;;  %4725 = vmatpush3.bf16.msra.mxu0 %v7366_v42  ;;  %4662 = vmatprep.subr.bf16.mxu1 %v5225_v10  ;;  %8521 = vst [vmem:[#allocation43_spill] sm:$0xff] %v7380_v4  ;;  %8522 = vst [vmem:[#allocation44_spill] sm:$0xff] %v7384_v13  ;;  %v7386_v28 = vld [vmem:[#allocation13 + $0x98] sm:$0xff]  }
 0x9e4   : > { %5439 = vrsqrt.f32 %v2650_v25  ;;  %v5434_v38 = vpop.eup %5433  ;;  %4726 = vmatprep.subr.bf16.mxu0 %v7372_v34  ;;  %v5235_v25 = vld [vmem:[#allocation13 + $0x18] sm:$0xff]   ;;  %8523 = vst [vmem:[#allocation45_spill] sm:$0xff] %v7386_v28 }
 0x9e5   : > { %v2722_v63 = vadd.f32 %v7294_v45, %v2700_v3  ;;  %v2679_v16 = vmul.f32 %v5434_v38, %v2631_v1  ;;  %v7390_v1 = vld [vmem:[#allocation13 + $0xd0] sm:$0xff]  }
 0x9e6   : > { %8524 = vst [vmem:[#allocation46_spill] sm:$0xff] %v7390_v1  ;;  %v5239_v3 = vld [vmem:[#allocation13 + $0x10] sm:$0xff]  }
 0x9e7   : > { %v2732_v56 = vpack.c.bf16 %v2722_v63, %v2721_v41  ;;  %v2701_v60 = vmul.f32 %v7287_v40, %v2679_v16  ;;  %4727 = vmatpush3.bf16.msra.mxu0 %v7374_v44  ;;  %v7392_v38 = vld [vmem:[#allocation13 + $0x90] sm:$0xff]   ;;  %v5241_v41 = vld [vmem:[#allocation13 + $0x48] sm:$0xff]  }
 0x9e8   : > { %8525 = vst [vmem:[#allocation47_spill] sm:$0xff] %v7392_v38  ;;  %v7396_v63 = vld [vmem:[#allocation13 + $0xc8] sm:$0xff]  }
 0x9e9   : > { %v5436_v33 = vpop.eup %5435  ;;  %3032 = vmatmul.mubr.bf16.gmra.mxu1 %v2732_v56  ;;  %3145 = vmatmul.mubr.bf16.gmra.mxu0 %v2732_v56  ;;  %v2723_v47 = vadd.f32 %v7294_v45, %v2701_v60  ;;  %8526 = vst [vmem:[#allocation48_spill] sm:$0xff] %v7396_v63  ;;  %v5243_v16 = vld [vmem:[#allocation13 + $0x8] sm:$0xff]   ;;  %v5245_v56 = vld [vmem:[#allocation13 + $0x40] sm:$0xff]  }
 0x9ea   : > { %v2680_v58 = vmul.f32 %v5436_v33, %v2632_v53  ;;  %3041 = vmatprep.mubr.bf16.mxu1 %v8490_v62  ;;  %3154 = vmatprep.mubr.bf16.mxu0 %v8490_v62  ;;  %v7398_v53 = vld [vmem:[#allocation13 + $0x88] sm:$0xff]   ;;  %v7402_v33 = vld [vmem:[#allocation13 + $0xc0] sm:$0xff]  }
 0x9eb   : > { %8527 = vst [vmem:[#allocation49_spill] sm:$0xff] %v7398_v53  ;;  %8528 = vst [vmem:[#allocation50_spill] sm:$0xff] %v7402_v33  ;;  %v7404_v60 = vld [vmem:[#allocation13 + $0x80] sm:$0xff]  }
 0x9ec   : > { %v2702_v6 = vmul.f32 %v7287_v40, %v2680_v58  ;;  %v5438_v2 = vpop.eup %5437  ;;  %v5247_v58 = vld [vmem:[#allocation13] sm:$0xff]   ;;  %8529 = vst [vmem:[#allocation51_spill] sm:$0xff] %v7404_v60 }
 0x9ed   : > { %v2681_v7 = vmul.f32 %v5438_v2, %v2633_v8  ;;  %v2767_v8 = vld [vmem:[%s8388_s10] sm:$0xf] }
 0x9ee   : > { %v2724_v39 = vadd.f32 %v7294_v45, %v2702_v6  ;;  %v8530_v6 = vsub.s32 0, %v6358_v50 }
 0x9ef   : > { %v2703_v55 = vmul.f32 %v7287_v40, %v2681_v7 }
 0x9f0   : > { %v2733_v12 = vpack.c.bf16 %v2724_v39, %v2723_v47  ;;  %v7414_v2 = vrot.slane %v2767_v8, %v8530_v6  ;;  %v7418_v47 = vrot.slane %v2767_v8, %v8532_v11  ;;  %v2783_v39 = vsub.s32 3, %v6358_v50 }
 0x9f1   : > { %v5440_v59 = vpop.eup %5439  ;;  %v2725_v37 = vadd.f32 %v7294_v45, %v2703_v55 }
 0x9f2   : > { %v2682_v18 = vmul.f32 %v5440_v59, %v2634_v0  ;;  %3042 = vmatmul.mubr.bf16.gmra.mxu1 %v2733_v12  ;;  %3155 = vmatmul.mubr.bf16.gmra.mxu0 %v2733_v12  ;;  %8531 = vst [vmem:[#allocation52_spill] sm:$0xff] %v7414_v2  ;;  %8533 = vst [vmem:[#allocation53_spill] sm:$0xff] %v7418_v47  ;;  %v8534_v0 = vsub.s32 1, %v6358_v50  ;;  %v7427_v55 = vrot.slane %v2767_v8, %v2783_v39 }
 0x9f3   : > { %3051 = vmatprep.mubr.bf16.mxu1 %v8490_v62  ;;  %3164 = vmatprep.mubr.bf16.mxu0 %v8490_v62  ;;  %v5227_v62 = vld [vmem:[#allocation13 + $0x28] sm:$0xff]  }
 0x9f4   : > { %v2704_v14 = vmul.f32 %v7287_v40, %v2682_v18  ;;  %4663 = vmatpush3.bf16.msra.mxu1 %v5227_v62  ;;  %v5229_v40 = vld [vmem:[#allocation13 + $0x60] sm:$0xff]   ;;  %v7423_v12 = vrot.slane %v2767_v8, %v8534_v0 }
 0x9f5   : > { %4664 = vmatprep.subr.bf16.mxu1 %v5229_v40 }
 0x9f6   : > { %v2726_v19 = vadd.f32 %v7294_v45, %v2704_v14  ;;  %v7378_v45 = vld [vmem:[#allocation13 + $0xe0] sm:$0xff]  }
 0x9f7   : > { %8520 = vst [vmem:[#allocation42_spill] sm:$0xff] %v7378_v45  ;;  %4728 = vmatprep.subr.bf16.mxu0 %v7378_v45 }
 0x9f8   : > { %v2734_v24 = vpack.c.bf16 %v2726_v19, %v2725_v37  ;;  %4665 = vmatpush3.bf16.msra.mxu1 %v5231_v46  ;;  %4729 = vmatpush3.bf16.msra.mxu0 %v7380_v4 }
 0x9f9   : > { %4666 = vmatprep.subr.bf16.mxu1 %v5233_v31  ;;  %4730 = vmatprep.subr.bf16.mxu0 %v7384_v13 }
 0x9fa   : > { %3052 = vmatmul.mubr.bf16.gmra.mxu1 %v2734_v24  ;;  %3165 = vmatmul.mubr.bf16.gmra.mxu0 %v2734_v24 }
 0x9fc   : > { %4667 = vmatpush3.bf16.msra.mxu1 %v5235_v25  ;;  %4731 = vmatpush3.bf16.msra.mxu0 %v7386_v28 }
 0x9fd   : > { %4668 = vmatprep.subr.bf16.mxu1 %v5237_v9  ;;  %4732 = vmatprep.subr.bf16.mxu0 %v7390_v1 }
 0xa00   : > { %4669 = vmatpush3.bf16.msra.mxu1 %v5239_v3  ;;  %4733 = vmatpush3.bf16.msra.mxu0 %v7392_v38 }
 0xa01   : > { %4670 = vmatprep.subr.bf16.mxu1 %v5241_v41  ;;  %4734 = vmatprep.subr.bf16.mxu0 %v7396_v63 }
 0xa04   : > { %4671 = vmatpush3.bf16.msra.mxu1 %v5243_v16  ;;  %4735 = vmatpush3.bf16.msra.mxu0 %v7398_v53 }
 0xa05   : > { %4672 = vmatprep.subr.bf16.mxu1 %v5245_v56  ;;  %4736 = vmatprep.subr.bf16.mxu0 %v7402_v33 }
 0xa08   : > { %4673 = vmatpush3.bf16.msra.mxu1 %v5247_v58  ;;  %4737 = vmatpush3.bf16.msra.mxu0 %v7404_v60 }
 0xa09   : > { %4978 = vmatprep.subr.bf16.mxu1 %v7353_v15 }
 0xa62   : > { %v2983_v7 = vpop.f32.mrf.mxu1  ;;  %v3096_v57 = vpop.f32.mrf.mxu0 }
 0xa63   : > { %v2984_v15 = vadd.f32 %v2983_v7, %v7414_v2  ;;  %v3097_v59 = vadd.f32 %v3096_v57, %v7418_v47 }
 0xa64   : > { %v2985_v18 = vpop.f32.mrf.mxu1  ;;  %v3098_v22 = vpop.f32.mrf.mxu0 }
 0xa65   : > { %v3239_v14 = vmul.f32 0.044715, %v2984_v15  ;;  %v3241_v29 = vmul.f32 0.044715, %v3097_v59  ;;  %v7430_v37 = vadd.f32 %v2985_v18, %v7423_v12  ;;  %v7435_v46 = vadd.f32 %v3098_v22, %v7427_v55 }
 0xa66   : > { %v2987_v19 = vpop.f32.mrf.mxu1  ;;  %v3100_v10 = vpop.f32.mrf.mxu0 }
 0xa67   : > { %v3303_v24 = vmul.f32 %v3239_v14, %v2984_v15  ;;  %v3305_v62 = vmul.f32 %v3241_v29, %v3097_v59  ;;  %v2988_v50 = vadd.f32 %v2987_v19, %v7414_v2  ;;  %v3101_v40 = vadd.f32 %v3100_v10, %v7418_v47 }
 0xa68   : > { %v2989_v31 = vpop.f32.mrf.mxu1  ;;  %v3102_v25 = vpop.f32.mrf.mxu0  ;;  %v3240_v41 = vmul.f32 0.044715, %v7430_v37  ;;  %v3242_v39 = vmul.f32 0.044715, %v7435_v46  ;;  %v7445_v14 = vmul.f32 0.5, %v2984_v15  ;;  %v7447_v10 = vmul.f32 0.5, %v3097_v59 }
 0xa69   : > { %v3369_v9 = vmul.f32 %v3305_v62, %v3097_v59  ;;  %v3243_v3 = vmul.f32 0.044715, %v2988_v50  ;;  %v3245_v16 = vmul.f32 0.044715, %v3101_v40  ;;  %v3367_v8 = vmul.f32 %v3303_v24, %v2984_v15 }
 0xa6a   : > { %v2993_v56 = vpop.f32.mrf.mxu1  ;;  %v3106_v58 = vpop.f32.mrf.mxu0  ;;  %v7440_v57 = vadd.f32 %v2989_v31, %v7423_v12  ;;  %v7443_v0 = vadd.f32 %v3102_v25, %v7427_v55  ;;  %v3304_v24 = vmul.f32 %v3240_v41, %v7430_v37  ;;  %v7453_v27 = vmul.f32 0.5, %v2988_v50 }
 0xa6b   : > { %v3433_v6 = vadd.f32 %v3369_v9, %v3097_v59  ;;  %v3307_v11 = vmul.f32 %v3243_v3, %v2988_v50  ;;  %v3309_v7 = vmul.f32 %v3245_v16, %v3101_v40  ;;  %v7451_v9 = vadd.f32 %v3106_v58, %v7418_v47 }
 0xa6c   : > { %v2995_v18 = vpop.f32.mrf.mxu1  ;;  %v3108_v22 = vpop.f32.mrf.mxu0  ;;  %v3431_v16 = vadd.f32 %v3367_v8, %v2984_v15  ;;  %v7456_v25 = vmul.f32 0.5, %v7430_v37  ;;  %v7459_v20 = vmul.f32 0.5, %v7435_v46  ;;  %v3306_v59 = vmul.f32 %v3242_v39, %v7435_v46 }
 0xa6d   : > { %v3497_v29 = vmul.f32 0.7978846, %v3433_v6  ;;  %v3371_v19 = vmul.f32 %v3307_v11, %v2988_v50  ;;  %v3373_v62 = vmul.f32 %v3309_v7, %v3101_v40  ;;  %v3244_v41 = vmul.f32 0.044715, %v7440_v57 }
 0xa6e   : > { %v2997_v3 = vpop.f32.mrf.mxu1  ;;  %v3110_v31 = vpop.f32.mrf.mxu0  ;;  %8535 = vst [vmem:[#allocation54_spill] sm:$0xff] %v7456_v25  ;;  %8536 = vst [vmem:[#allocation55_spill] sm:$0xff] %v7459_v20  ;;  %v3246_v11 = vmul.f32 0.044715, %v7443_v0  ;;  %v7465_v15 = vadd.f32 %v2993_v56, %v7414_v2  ;;  %v3249_v8 = vmul.f32 0.044715, %v7451_v9  ;;  %v7469_v43 = vmul.f32 %v3304_v24, %v7430_v37 }
 0xa6f   : > { %v3437_v6 = vadd.f32 %v3373_v62, %v3101_v40  ;;  %5441 = vtanh.f32 %v3497_v29  ;;  %v3435_v17 = vadd.f32 %v3371_v19, %v2988_v50  ;;  %v7471_v51 = vmul.f32 0.5, %v3101_v40 }
 0xa70   : > { %v2999_v58 = vpop.f32.mrf.mxu1  ;;  %v3112_v7 = vpop.f32.mrf.mxu0  ;;  %v7474_v62 = vadd.f32 %v2995_v18, %v7423_v12  ;;  %v3495_v23 = vmul.f32 0.7978846, %v3431_v16  ;;  %v3313_v29 = vmul.f32 %v3249_v8, %v7451_v9  ;;  %v7478_v50 = vadd.f32 %v3108_v22, %v7427_v55 }
 0xa71   : > { %v3501_v39 = vmul.f32 0.7978846, %v3437_v6  ;;  %v7481_v56 = vadd.f32 %v2997_v3, %v7414_v2  ;;  %v3308_v19 = vmul.f32 %v3244_v41, %v7440_v57  ;;  %v3310_v40 = vmul.f32 %v3246_v11, %v7443_v0 }
 0xa72   : > { %v3003_v5 = vpop.f32.mrf.mxu1  ;;  %v3116_v61 = vpop.f32.mrf.mxu0  ;;  %v7486_v24 = vadd.f32 %v3110_v31, %v7418_v47  ;;  %v3499_v54 = vmul.f32 0.7978846, %v3435_v17  ;;  %v3247_v16 = vmul.f32 0.044715, %v7465_v15  ;;  %v3377_v8 = vmul.f32 %v3313_v29, %v7451_v9 }
 0xa73   : > { %5443 = vtanh.f32 %v3501_v39  ;;  %v7491_v22 = vadd.f32 %v2999_v58, %v7423_v12  ;;  %v3248_v3 = vmul.f32 0.044715, %v7474_v62  ;;  %v7496_v41 = vadd.f32 %v3112_v7, %v7427_v55 }
 0xa74   : > { %8537 = vst [vmem:[#allocation56_spill] sm:$0xff] %v7486_v24  ;;  %v3005_v18 = vpop.f32.mrf.mxu1  ;;  %v3118_v6 = vpop.f32.mrf.mxu0  ;;  %v3253_v39 = vmul.f32 0.044715, %v7486_v24  ;;  %v7499_v31 = vadd.f32 %v3003_v5, %v7414_v2  ;;  %v3441_v17 = vadd.f32 %v3377_v8, %v7451_v9  ;;  %v3250_v21 = vmul.f32 0.044715, %v7478_v50 }
 0xa75   : > { %v3251_v29 = vmul.f32 0.044715, %v7481_v56  ;;  %v7505_v58 = vadd.f32 %v3116_v61, %v7418_v47  ;;  %5445 = vtanh.f32 %v3495_v23  ;;  %v7508_v36 = vmul.f32 %v3306_v59, %v7435_v46 }
 0xa76   : > { %v3007_v11 = vpop.f32.mrf.mxu1  ;;  %v3120_v26 = vpop.f32.mrf.mxu0  ;;  %v3317_v7 = vmul.f32 %v3253_v39, %v7486_v24  ;;  %v3252_v5 = vmul.f32 0.044715, %v7491_v22  ;;  %v7513_v48 = vmul.f32 %v3308_v19, %v7440_v57  ;;  %v3311_v8 = vmul.f32 %v3247_v16, %v7465_v15 }
 0xa77   : > { %8538 = vst [vmem:[#allocation57_spill] sm:$0xff] %v7505_v58  ;;  %v3254_v52 = vmul.f32 0.044715, %v7496_v41  ;;  %v3257_v49 = vmul.f32 0.044715, %v7505_v58  ;;  %5447 = vtanh.f32 %v3499_v54  ;;  %v7519_v23 = vmul.f32 %v3310_v40, %v7443_v0 }
 0xa78   : > { %v3009_v30 = vpop.f32.mrf.mxu1  ;;  %v3122_v61 = vpop.f32.mrf.mxu0  ;;  %v3312_v59 = vmul.f32 %v3248_v3, %v7474_v62  ;;  %v3255_v39 = vmul.f32 0.044715, %v7499_v31  ;;  %v3505_v60 = vmul.f32 0.7978846, %v3441_v17  ;;  %v3314_v33 = vmul.f32 %v3250_v21, %v7478_v50 }
 0xa79   : > { %v3315_v19 = vmul.f32 %v3251_v29, %v7481_v56  ;;  %v3321_v16 = vmul.f32 %v3257_v49, %v7505_v58  ;;  %v3381_v53 = vmul.f32 %v3317_v7, %v7486_v24  ;;  %v3316_v63 = vmul.f32 %v3252_v5, %v7491_v22 }
 0xa7a   : > { %v7529_v54 = vadd.f32 %v3005_v18, %v7423_v12  ;;  %v7532_v40 = vadd.f32 %v3118_v6, %v7427_v55  ;;  %v3013_v3 = vpop.f32.mrf.mxu1  ;;  %v7535_v38 = vmul.f32 %v3311_v8, %v7465_v15  ;;  %v3318_v21 = vmul.f32 %v3254_v52, %v7496_v41  ;;  %v3126_v29 = vpop.f32.mrf.mxu0 }
 0xa7b   : > { %v3385_v17 = vmul.f32 %v3321_v16, %v7505_v58  ;;  %v7540_v49 = vadd.f32 %v3120_v26, %v7418_v47  ;;  %v7543_v5 = vmul.f32 %v3312_v59, %v7474_v62  ;;  %v3319_v18 = vmul.f32 %v3255_v39, %v7499_v31 }
 0xa7c   : > { %v5442_v7 = vpop.eup %5441  ;;  %v7547_v6 = vadd.f32 %v3007_v11, %v7414_v2  ;;  %v7550_v8 = vadd.f32 %v3009_v30, %v7423_v12  ;;  %5449 = vtanh.f32 %v3505_v60  ;;  %v7553_v52 = vmul.f32 %v3314_v33, %v7478_v50  ;;  %v3015_v30 = vpop.f32.mrf.mxu1 }
 0xa7d   : > { %8539 = vst [vmem:[#allocation58_spill] sm:$0xff] %v7540_v49  ;;  %v7556_v26 = vmul.f32 %v3315_v19, %v7481_v56  ;;  %v3261_v16 = vmul.f32 0.044715, %v7540_v49  ;;  %v3445_v59 = vadd.f32 %v3381_v53, %v7486_v24  ;;  %v7561_v1 = vmul.f32 %v3316_v63, %v7491_v22  ;;  %v3128_v4 = vpop.f32.mrf.mxu0 }
 0xa7e   : > { %v3256_v11 = vmul.f32 0.044715, %v7529_v54  ;;  %v3258_v39 = vmul.f32 0.044715, %v7532_v40  ;;  %v3625_v60 = vadd.f32 1.0, %v5442_v7  ;;  %v7566_v33 = vmul.f32 %v3318_v21, %v7496_v41 }
 0xa7f   : > { %v3449_v19 = vadd.f32 %v3385_v17, %v7505_v58  ;;  %v3325_v13 = vmul.f32 %v3261_v16, %v7540_v49  ;;  %v7571_v53 = vmul.f32 %v3319_v18, %v7499_v31  ;;  %v3259_v63 = vmul.f32 0.044715, %v7547_v6  ;;  %v3017_v58 = vpop.f32.mrf.mxu1 }
 0xa80   : > { %v5444_v28 = vpop.eup %5443  ;;  %v3260_v45 = vmul.f32 0.044715, %v7550_v8  ;;  %v7576_v44 = vadd.f32 %v3122_v61, %v7427_v55  ;;  %v7580_v21 = vadd.f32 %v3013_v3, %v7414_v2  ;;  %v7583_v17 = vadd.f32 %v3126_v29, %v7418_v47  ;;  %v3130_v29 = vpop.f32.mrf.mxu0 }
 0xa81   : > { %v3629_v34 = vadd.f32 1.0, %v5444_v28  ;;  %v3389_v7 = vmul.f32 %v3325_v13, %v7540_v49  ;;  %v3509_v16 = vmul.f32 0.7978846, %v3445_v59  ;;  %v3320_v18 = vmul.f32 %v3256_v11, %v7529_v54 }
 0xa82   : > { %8540 = vst [vmem:[#allocation59_spill] sm:$0xff] %v7583_v17  ;;  %v3322_v42 = vmul.f32 %v3258_v39, %v7532_v40  ;;  %v3262_v35 = vmul.f32 0.044715, %v7576_v44  ;;  %v7588_v32 = vpop.eup %5445  ;;  %v7591_v28 = vmul.f32 %v3625_v60, %v7447_v10  ;;  %v3513_v13 = vmul.f32 0.7978846, %v3449_v19 }
 0xa83   : > { %v3453_v61 = vadd.f32 %v3389_v7, %v7540_v49  ;;  %v3265_v3 = vmul.f32 0.044715, %v7583_v17  ;;  %v3323_v59 = vmul.f32 %v3259_v63, %v7547_v6  ;;  %v3324_v11 = vmul.f32 %v3260_v45, %v7550_v8 }
 0xa84   : > { %8541 = vst [vmem:[#allocation60_spill] sm:$0xff] %v7591_v28  ;;  %v7598_v39 = vadd.f32 %v3015_v30, %v7423_v12  ;;  %v7601_v20 = vadd.f32 %v3128_v4, %v7427_v55  ;;  %v5448_v25 = vpop.eup %5447  ;;  %v7604_v10 = vmul.f32 %v3629_v34, %v7471_v51  ;;  %v3263_v60 = vmul.f32 0.044715, %v7580_v21 }
 0xa85   : > { %v3329_v19 = vmul.f32 %v3265_v3, %v7583_v17  ;;  %v7609_v7 = vadd.f32 %v3017_v58, %v7414_v2  ;;  %5451 = vtanh.f32 %v3509_v16  ;;  %v7612_v45 = vmul.f32 %v3320_v18, %v7529_v54  ;;  %v3019_v3 = vpop.f32.mrf.mxu1  ;;  %v3132_v2 = vpop.f32.mrf.mxu0 }
 0xa86   : > { %v3326_v30 = vmul.f32 %v3262_v35, %v7576_v44  ;;  %v7616_v4 = vadd.f32 %v3130_v29, %v7418_v47  ;;  %5453 = vtanh.f32 %v3513_v13  ;;  %v7619_v51 = vmul.f32 %v3322_v42, %v7532_v40 }
 0xa87   : > { %v3517_v34 = vmul.f32 0.7978846, %v3453_v61  ;;  %v3393_v63 = vmul.f32 %v3329_v19, %v7583_v17  ;;  %v7623_v58 = vmul.f32 %v3323_v59, %v7547_v6  ;;  %v3264_v16 = vmul.f32 0.044715, %v7598_v39 }
 0xa88   : > { %v3266_v18 = vmul.f32 0.044715, %v7601_v20  ;;  %v3269_v35 = vmul.f32 0.044715, %v7616_v4  ;;  %v7631_v42 = vmul.f32 %v3324_v11, %v7550_v8  ;;  %v3327_v61 = vmul.f32 %v3263_v60, %v7580_v21 }
 0xa89   : > { %v3267_v29 = vmul.f32 0.044715, %v7609_v7  ;;  %v7635_v19 = vpop.eup %5449  ;;  %v7638_v59 = vmul.f32 %v3326_v30, %v7576_v44  ;;  %v3457_v49 = vadd.f32 %v3393_v63, %v7583_v17  ;;  %v7643_v24 = vadd.f32 %v3019_v3, %v7423_v12 }
 0xa8a   : > { %v3333_v47 = vmul.f32 %v3269_v35, %v7616_v4  ;;  %5455 = vtanh.f32 %v3517_v34  ;;  %v7646_v11 = vadd.f32 %v3132_v2, %v7427_v55  ;;  %v3432_v60 = vadd.f32 %v7469_v43, %v7430_v37 }
 0xa8b   : > { %v3436_v13 = vadd.f32 %v7513_v48, %v7440_v57  ;;  %v3328_v30 = vmul.f32 %v3264_v16, %v7598_v39  ;;  %v3330_v28 = vmul.f32 %v3266_v18, %v7601_v20  ;;  %v3434_v3 = vadd.f32 %v7508_v36, %v7435_v46 }
 0xa8c   : > { %v3397_v63 = vmul.f32 %v3333_v47, %v7616_v4  ;;  %v3331_v34 = vmul.f32 %v3267_v29, %v7609_v7  ;;  %v3496_v35 = vmul.f32 0.7978846, %v3432_v60  ;;  %v3438_v17 = vadd.f32 %v7519_v23, %v7443_v0 }
 0xa8d   : > { %v3500_v2 = vmul.f32 0.7978846, %v3436_v13  ;;  %v3521_v43 = vmul.f32 0.7978846, %v3457_v49  ;;  %v3268_v48 = vmul.f32 0.044715, %v7643_v24  ;;  %v7663_v18 = vmul.f32 %v3327_v61, %v7580_v21 }
 0xa8e   : > { %v3461_v37 = vadd.f32 %v3397_v63, %v7616_v4  ;;  %v3498_v16 = vmul.f32 0.7978846, %v3434_v3  ;;  %v3270_v47 = vmul.f32 0.044715, %v7646_v11  ;;  %5457 = vtanh.f32 %v3496_v35 }
 0xa8f   : > { %v3502_v36 = vmul.f32 0.7978846, %v3438_v17  ;;  %v7667_v46 = vmul.f32 %v3328_v30, %v7598_v39  ;;  %v7670_v13 = vmul.f32 %v3330_v28, %v7601_v20  ;;  %5459 = vtanh.f32 %v3500_v2 }
 0xa90   : > { %v3525_v23 = vmul.f32 0.7978846, %v3461_v37  ;;  %v7673_v49 = vmul.f32 %v3331_v34, %v7609_v7  ;;  %v7676_v29 = vmul.f32 0.5, %v7440_v57  ;;  %5461 = vtanh.f32 %v3498_v16 }
 0xa91   : > { %v3440_v61 = vadd.f32 %v7543_v5, %v7474_v62  ;;  %5463 = vtanh.f32 %v3521_v43  ;;  %v3332_v17 = vmul.f32 %v3268_v48, %v7643_v24  ;;  %v3627_v60 = vadd.f32 1.0, %v5448_v25 }
 0xa92   : > { %v3444_v28 = vadd.f32 %v7561_v1, %v7491_v22  ;;  %v5452_v30 = vpop.eup %5451  ;;  %v3334_v63 = vmul.f32 %v3270_v47, %v7646_v11  ;;  %5465 = vtanh.f32 %v3502_v36  ;;  %v3442_v57 = vadd.f32 %v7553_v52, %v7478_v50 }
 0xa93   : > { %v3504_v3 = vmul.f32 0.7978846, %v3440_v61  ;;  %v7686_v34 = vpop.eup %5453  ;;  %5467 = vtanh.f32 %v3525_v23  ;;  %v3623_v5 = vadd.f32 1.0, %v7588_v32  ;;  %v3446_v25 = vadd.f32 %v7566_v33, %v7496_v41 }
 0xa94   : > { %v3508_v35 = vmul.f32 0.7978846, %v3444_v28  ;;  %v3506_v2 = vmul.f32 0.7978846, %v3442_v57  ;;  %v3439_v1 = vadd.f32 %v7535_v38, %v7465_v15  ;;  %v3443_v43 = vadd.f32 %v7556_v26, %v7481_v56 }
 0xa95   : > { %5469 = vtanh.f32 %v3504_v3  ;;  %v7696_v37 = vmul.f32 0.5, %v7443_v0  ;;  %v7699_v52 = vmul.f32 %v3627_v60, %v7453_v27  ;;  %v3510_v32 = vmul.f32 0.7978846, %v3446_v25 }
 0xa96   : > { %5471 = vtanh.f32 %v3508_v35  ;;  %v7702_v48 = vmul.f32 %v3332_v17, %v7643_v24  ;;  %v3503_v33 = vmul.f32 0.7978846, %v3439_v1  ;;  %v3507_v16 = vmul.f32 0.7978846, %v3443_v43 }
 0xa97   : > { %5473 = vtanh.f32 %v3506_v2  ;;  %v7704_v47 = vpop.eup %5455  ;;  %v7707_v38 = vmul.f32 %v3334_v63, %v7646_v11  ;;  %v7710_v26 = vmul.f32 %v3623_v5, %v7445_v14  ;;  %v7713_v0 = vmul.f32 0.5, %v7474_v62 }
 0xa98   : > { %5475 = vtanh.f32 %v3510_v32  ;;  %v7716_v27 = vmul.f32 0.5, %v7491_v22  ;;  %v3448_v36 = vadd.f32 %v7612_v45, %v7529_v54  ;;  %v3452_v23 = vadd.f32 %v7631_v42, %v7550_v8 }
 0xa99   : > { %5477 = vtanh.f32 %v3503_v33  ;;  %v3751_v61 = vpack.c.bf16 %v7699_v52, %v7710_v26  ;;  %v7725_v14 = vmul.f32 0.5, %v7478_v50  ;;  %v7728_v62 = vmul.f32 0.5, %v7496_v41  ;;  %v8543_v33 = vld [vmem:[#allocation54_spill] sm:$0xff] }
 0xa9a   : > { %5479 = vtanh.f32 %v3507_v16  ;;  %v3512_v17 = vmul.f32 0.7978846, %v3448_v36  ;;  %v3516_v22 = vmul.f32 0.7978846, %v3452_v23  ;;  %v3450_v60 = vadd.f32 %v7619_v51, %v7532_v40 }
 0xa9b   : > { %v3454_v45 = vadd.f32 %v7638_v59, %v7576_v44  ;;  %v5458_v28 = vpop.eup %5457  ;;  %v7735_v42 = vmul.f32 0.5, %v7465_v15  ;;  %v3633_v63 = vadd.f32 1.0, %v7635_v19  ;;  %v3637_v50 = vadd.f32 1.0, %v5452_v30  ;;  %v8542_v30 = vld [vmem:[#allocation56_spill] sm:$0xff] }
 0xa9c   : > { %v3447_v41 = vadd.f32 %v7571_v53, %v7499_v31  ;;  %v5460_v3 = vpop.eup %5459  ;;  %v3624_v57 = vadd.f32 1.0, %v5458_v28  ;;  %5481 = vtanh.f32 %v3512_v17  ;;  %v3514_v5 = vmul.f32 0.7978846, %v3450_v60 }
 0xa9d   : > { %v3518_v35 = vmul.f32 0.7978846, %v3454_v45  ;;  %v5462_v25 = vpop.eup %5461  ;;  %v3628_v51 = vadd.f32 1.0, %v5460_v3  ;;  %5483 = vtanh.f32 %v3516_v22  ;;  %v3451_v59 = vadd.f32 %v7623_v58, %v7547_v6 }
 0xa9e   : > { %v3511_v2 = vmul.f32 0.7978846, %v3447_v41  ;;  %v7742_v15 = vpop.eup %5463  ;;  %v3626_v1 = vadd.f32 1.0, %v5462_v25  ;;  %v3185_v19 = vmul.f32 0.5, %v7451_v9  ;;  %v3189_v43 = vmul.f32 0.5, %v8542_v30 }
 0xa9f   : > { %5485 = vtanh.f32 %v3514_v5  ;;  %v5466_v32 = vpop.eup %5465  ;;  %v3688_v16 = vmul.f32 %v3624_v57, %v8543_v33  ;;  %v3692_v26 = vmul.f32 %v3628_v51, %v7676_v29  ;;  %v3515_v36 = vmul.f32 0.7978846, %v3451_v59  ;;  %v8544_v57 = vld [vmem:[#allocation55_spill] sm:$0xff] }
 0xaa0   : > { %5487 = vtanh.f32 %v3518_v35  ;;  %v7750_v58 = vpop.eup %5467  ;;  %v3630_v23 = vadd.f32 1.0, %v5466_v32  ;;  %v3187_v17 = vmul.f32 0.5, %v7481_v56  ;;  %v7753_v22 = vmul.f32 %v3637_v50, %v3189_v43  ;;  %v8545_v35 = vld [vmem:[#allocation53_spill] sm:$0xff] }
 0xaa1   : > { %v7746_v53 = vpop.f32.mrf.mxu1  ;;  %v3136_v52 = vpop.f32.mrf.mxu0  ;;  %5489 = vtanh.f32 %v3511_v2  ;;  %v3752_v28 = vpack.c.bf16 %v3692_v26, %v3688_v16  ;;  %v7759_v41 = vmul.f32 %v3633_v63, %v3185_v19  ;;  %v7762_v29 = vmul.f32 0.5, %v7529_v54 }
 0xaa2   : > { %v5470_v45 = vpop.eup %5469  ;;  %5491 = vtanh.f32 %v3515_v36  ;;  %v3690_v5 = vmul.f32 %v3626_v1, %v8544_v57  ;;  %v3694_v56 = vmul.f32 %v3630_v23, %v7696_v37  ;;  %v7767_v25 = vadd.f32 %v3136_v52, %v8545_v35 }
 0xaa3   : > { %v7755_v9 = vpop.f32.mrf.mxu1  ;;  %v7757_v60 = vpop.f32.mrf.mxu0  ;;  %v3632_v50 = vadd.f32 1.0, %v5470_v45  ;;  %4078 = vmatprep.mubr.bf16.mxu1 %v3752_v28  ;;  %v3196_v54 = vmul.f32 0.5, %v7550_v8  ;;  %v7775_v19 = vmul.f32 0.5, %v7532_v40  ;;  %v7778_v1 = vmul.f32 0.5, %v7576_v44  ;;  %v8546_v44 = vld [vmem:[#allocation37_spill] sm:$0xff] }
 0xaa4   : > { %v5472_v3 = vpop.eup %5471  ;;  %v3754_v30 = vpack.c.bf16 %v3694_v56, %v3690_v5  ;;  %4079 = vmatmul.mubr.bf16.vlgmr.msra.gmra.mxu1 %v3751_v61  ;;  %v3757_v52 = vpack.c.bf16 %v7753_v22, %v7759_v41  ;;  %v3273_v32 = vmul.f32 0.044715, %v7767_v25  ;;  %v7786_v40 = vmul.f32 0.5, %v7499_v31  ;;  %v8547_v45 = vld [vmem:[#allocation57_spill] sm:$0xff]  ;;  %v8549_v5 = vld [vmem:[#allocation38_spill] sm:$0xff]  ;;  %v8550_v31 = vld [vmem:[#allocation60_spill] sm:$0xff] }
 0xaa5   : > { %v7769_v51 = vpop.f32.mrf.mxu1  ;;  %v7771_v59 = vpop.f32.mrf.mxu0  ;;  %v3636_v63 = vadd.f32 1.0, %v5472_v3  ;;  %v3696_v16 = vmul.f32 %v3632_v50, %v7713_v0  ;;  %4986 = vmatpush3.bf16.msra.mxu1 %v8546_v44  ;;  %v7790_v23 = vmul.f32 0.5, %v7547_v6  ;;  %v7793_v28 = vmul.f32 0.5, %v8547_v45  ;;  %v8548_v3 = vld [vmem:[#allocation58_spill] sm:$0xff] }
 0xaa6   : > { %v5474_v2 = vpop.eup %5473  ;;  %4175 = vmatprep.mubr.bf16.mxu0 %v3754_v30  ;;  %v3197_v57 = vmul.f32 0.5, %v8548_v3  ;;  %4979 = vmatprep.subr.bf16.mxu1 %v8549_v5  ;;  %v8551_v56 = vpack.c.bf16 %v7604_v10, %v8550_v31  ;;  %v3337_v30 = vmul.f32 %v3273_v32, %v7767_v25  ;;  %v3460_v44 = vadd.f32 %v7702_v48, %v7643_v24  ;;  %v8554_v5 = vld [vmem:[#allocation40_spill] sm:$0xff] }
 0xaa7   : > { %v5476_v37 = vpop.eup %5475  ;;  %v3634_v43 = vadd.f32 1.0, %v5474_v2  ;;  %v3700_v8 = vmul.f32 %v3636_v63, %v7716_v27  ;;  %v7796_v0 = vpop.f32.mrf.mxu1  ;;  %v3462_v31 = vadd.f32 %v7707_v38, %v7646_v11  ;;  %v3455_v22 = vadd.f32 %v7663_v18, %v7580_v21 }
 0xaa8   : > { %v5478_v33 = vpop.eup %5477  ;;  %v3638_v26 = vadd.f32 1.0, %v5476_v37  ;;  %v7798_v27 = vpop.f32.mrf.mxu0  ;;  %4176 = vmatmul.mubr.bf16.vlgmr.msra.gmra.mxu0 %v8551_v56  ;;  %v7807_v37 = vadd.f32 1.0, %v7686_v34  ;;  %v3459_v41 = vadd.f32 %v7673_v49, %v7609_v7 }
 0xaa9   : > { %v5480_v36 = vpop.eup %5479  ;;  %v3631_v61 = vadd.f32 1.0, %v5478_v33  ;;  %v3756_v50 = vpack.c.bf16 %v3700_v8, %v3696_v16  ;;  %v3698_v2 = vmul.f32 %v3634_v43, %v7725_v14  ;;  %v3456_v33 = vadd.f32 %v7667_v46, %v7598_v39  ;;  %v8552_v43 = vld [vmem:[#allocation39_spill] sm:$0xff]  ;;  %v7821_v3 = vpop.f32.mrf.mxu1 }
 0xaaa   : > { %v3702_v6 = vmul.f32 %v3638_v26, %v7728_v62  ;;  %v3635_v63 = vadd.f32 1.0, %v5480_v36  ;;  %v5482_v45 = vpop.eup %5481  ;;  %v3645_v62 = vadd.f32 1.0, %v7704_v47  ;;  %4987 = vmatpush3.bf16.msra.mxu1 %v8552_v43  ;;  %v8553_v26 = vld [vmem:[#allocation52_spill] sm:$0xff]  ;;  %v3524_v36 = vmul.f32 0.7978846, %v3460_v44  ;;  %v7823_v48 = vpop.f32.mrf.mxu0 }
 0xaab   : > { %4086 = vmatprep.mubr.bf16.mxu1 %v3756_v50  ;;  %v3695_v16 = vmul.f32 %v3631_v61, %v7735_v42  ;;  %v5484_v34 = vpop.eup %5483  ;;  %v3640_v8 = vadd.f32 1.0, %v5482_v45  ;;  %v7819_v32 = vadd.f32 %v7746_v53, %v8553_v26  ;;  %v3520_v46 = vmul.f32 0.7978846, %v3456_v33  ;;  %4980 = vmatprep.subr.bf16.mxu1 %v8554_v5  ;;  %v7833_v38 = vpop.f32.mrf.mxu1 }
 0xaac   : > { %v3758_v10 = vpack.c.bf16 %v3702_v6, %v3698_v2  ;;  %v3699_v14 = vmul.f32 %v3635_v63, %v3187_v17  ;;  %v5486_v42 = vpop.eup %5485  ;;  %v3644_v47 = vadd.f32 1.0, %v5484_v34  ;;  %v3458_v61 = vadd.f32 %v7670_v13, %v7601_v20  ;;  %v7835_v43 = vpop.f32.mrf.mxu0 }
 0xaad   : > { %v5488_v53 = vpop.eup %5487  ;;  %v3704_v56 = vmul.f32 %v3640_v8, %v7762_v29  ;;  %v3642_v50 = vadd.f32 1.0, %v5486_v42  ;;  %v3401_v2 = vmul.f32 %v3337_v30, %v7767_v25  ;;  %5493 = vtanh.f32 %v3520_v46  ;;  %v8555_v29 = vld [vmem:[#allocation41_spill] sm:$0xff]  ;;  %v8556_v8 = vld [vmem:[#allocation42_spill] sm:$0xff] }
 0xaae   : > { %4183 = vmatprep.mubr.bf16.mxu0 %v3758_v10  ;;  %v3755_v17 = vpack.c.bf16 %v3699_v14, %v3695_v16  ;;  %v5490_v6 = vpop.eup %5489  ;;  %v3708_v63 = vmul.f32 %v3644_v47, %v3196_v54  ;;  %v3646_v33 = vadd.f32 1.0, %v5488_v53  ;;  %5495 = vtanh.f32 %v3524_v36  ;;  %4988 = vmatpush3.bf16.msra.mxu1 %v8555_v29 }
 0xaaf   : > { %v3522_v44 = vmul.f32 0.7978846, %v3458_v61  ;;  %v5492_v45 = vpop.eup %5491  ;;  %v3706_v10 = vmul.f32 %v3642_v50, %v7775_v19  ;;  %v3639_v13 = vadd.f32 1.0, %v5490_v6  ;;  %v3709_v16 = vmul.f32 %v3645_v62, %v3197_v57  ;;  %4981 = vmatprep.subr.bf16.mxu1 %v8556_v8 }
 0xab0   : > { %4087 = vmatmul.mubr.bf16.gmra.mxu1 %v3755_v17  ;;  %v3526_v14 = vmul.f32 0.7978846, %v3462_v31  ;;  %4184 = vmatmul.mubr.bf16.gmra.mxu0 %v3757_v52  ;;  %v3760_v54 = vpack.c.bf16 %v3708_v63, %v3704_v56  ;;  %v3710_v30 = vmul.f32 %v3646_v33, %v7778_v1  ;;  %v3643_v34 = vadd.f32 1.0, %v5492_v45  ;;  %v7851_v1 = vpop.f32.mrf.mxu1  ;;  %v7853_v52 = vpop.f32.mrf.mxu0 }
 0xab1   : > { %5497 = vtanh.f32 %v3522_v44  ;;  %v3703_v19 = vmul.f32 %v3639_v13, %v7786_v40  ;;  %v3271_v57 = vmul.f32 0.044715, %v7819_v32  ;;  %v3465_v62 = vadd.f32 %v3401_v2, %v7767_v25  ;;  %v8557_v40 = vld [vmem:[#allocation43_spill] sm:$0xff]  ;;  %v8560_v2 = vld [vmem:[#allocation46_spill] sm:$0xff] }
 0xab2   : > { %5499 = vtanh.f32 %v3526_v14  ;;  %4094 = vmatprep.mubr.bf16.mxu1 %v3760_v54  ;;  %v3762_v46 = vpack.c.bf16 %v3710_v30, %v3706_v10  ;;  %v3707_v36 = vmul.f32 %v3643_v34, %v7790_v23  ;;  %4989 = vmatpush3.bf16.msra.mxu1 %v8557_v40  ;;  %v3705_v42 = vmul.f32 %v7807_v37, %v7793_v28  ;;  %v8558_v23 = vld [vmem:[#allocation44_spill] sm:$0xff]  ;;  %v7864_v53 = vpop.f32.mrf.mxu1  ;;  %v7866_v56 = vpop.f32.mrf.mxu0  ;;  %v8559_v28 = vld [vmem:[#allocation45_spill] sm:$0xff] }
 0xab3   : > { %v3519_v17 = vmul.f32 0.7978846, %v3455_v22  ;;  %v3523_v47 = vmul.f32 0.7978846, %v3459_v41  ;;  %4982 = vmatprep.subr.bf16.mxu1 %v8558_v23  ;;  %v3335_v18 = vmul.f32 %v3271_v57, %v7819_v32  ;;  %v3529_v49 = vmul.f32 0.7978846, %v3465_v62 }
 0xab4   : > { %4191 = vmatprep.mubr.bf16.mxu0 %v3762_v46  ;;  %v3759_v5 = vpack.c.bf16 %v3707_v36, %v3703_v19  ;;  %v3761_v61 = vpack.c.bf16 %v3709_v16, %v3705_v42  ;;  %v7862_v31 = vadd.f32 %v7771_v59, %v8545_v35  ;;  %v3200_v37 = vmul.f32 0.5, %v7598_v39  ;;  %v7898_v14 = vpop.f32.mrf.mxu1  ;;  %v8564_v34 = vld [vmem:[#allocation48_spill] sm:$0xff] }
 0xab5   : > { %5501 = vtanh.f32 %v3519_v17  ;;  %v7872_v50 = vadd.f32 %v7755_v9, %v7423_v12  ;;  %v7876_v6 = vmul.f32 %v3335_v18, %v7819_v32  ;;  %v3204_v59 = vmul.f32 0.5, %v7643_v24 }
 0xab6   : > { %5503 = vtanh.f32 %v3523_v47  ;;  %4990 = vmatpush3.bf16.msra.mxu1 %v8559_v28  ;;  %v7881_v63 = vadd.f32 %v7757_v60, %v7427_v55  ;;  %v3277_v33 = vmul.f32 0.044715, %v7862_v31  ;;  %v3202_v39 = vmul.f32 0.5, %v7601_v20  ;;  %v7900_v20 = vpop.f32.mrf.mxu0  ;;  %v7920_v42 = vpop.f32.mrf.mxu1 }
 0xab7   : > { %4983 = vmatprep.subr.bf16.mxu1 %v8560_v2  ;;  %5505 = vtanh.f32 %v3529_v49  ;;  %v3206_v9 = vmul.f32 0.5, %v7646_v11  ;;  %v7888_v45 = vadd.f32 %v7823_v48, %v8545_v35  ;;  %v7891_v24 = vmul.f32 0.5, %v7580_v21  ;;  %v8562_v11 = vld [vmem:[#allocation47_spill] sm:$0xff]  ;;  %v8566_v49 = vld [vmem:[#allocation50_spill] sm:$0xff] }
 0xab8   : > { %4095 = vmatmul.mubr.bf16.gmra.mxu1 %v3759_v5  ;;  %4192 = vmatmul.mubr.bf16.gmra.mxu0 %v3761_v61  ;;  %v3653_v60 = vadd.f32 1.0, %v7750_v58  ;;  %v7896_v16 = vadd.f32 %v7769_v51, %v8553_v26  ;;  %v8563_v48 = vld [vmem:[#allocation59_spill] sm:$0xff]  ;;  %v3649_v30 = vadd.f32 1.0, %v7742_v15  ;;  %v3272_v21 = vmul.f32 0.044715, %v7872_v50  ;;  %v7922_v17 = vpop.f32.mrf.mxu0 }
 0xab9   : > { %8561 = vst [vmem:[#allocation56_spill] sm:$0xff] %v7888_v45  ;;  %v3201_v54 = vmul.f32 0.5, %v8563_v48  ;;  %v3205_v8 = vmul.f32 0.5, %v7616_v4  ;;  %v3274_v51 = vmul.f32 0.044715, %v7881_v63  ;;  %v3341_v19 = vmul.f32 %v3277_v33, %v7862_v31 }
 0xaba   : > { %v5494_v44 = vpop.eup %5493  ;;  %4991 = vmatpush3.bf16.msra.mxu1 %v8562_v11  ;;  %v7912_v57 = vadd.f32 %v7796_v0, %v7423_v12  ;;  %v3281_v15 = vmul.f32 0.044715, %v7888_v45  ;;  %v3275_v5 = vmul.f32 0.044715, %v7896_v16  ;;  %v7918_v4 = vadd.f32 %v7798_v27, %v7427_v55  ;;  %v8565_v0 = vld [vmem:[#allocation49_spill] sm:$0xff]  ;;  %v3160_v11 = vpop.f32.mrf.mxu0 }
 0xabb   : > { %v5496_v10 = vpop.eup %5495  ;;  %v3648_v13 = vadd.f32 1.0, %v5494_v44  ;;  %4984 = vmatprep.subr.bf16.mxu1 %v8564_v34  ;;  %v3717_v40 = vmul.f32 %v3653_v60, %v3205_v8  ;;  %v3203_v23 = vmul.f32 0.5, %v7609_v7  ;;  %v3713_v18 = vmul.f32 %v3649_v30, %v3201_v54 }
 0xabc   : > { %v3652_v29 = vadd.f32 1.0, %v5496_v10  ;;  %v3336_v61 = vmul.f32 %v3272_v21, %v7872_v50  ;;  %v3276_v2 = vmul.f32 0.044715, %v7912_v57  ;;  %v7931_v27 = vadd.f32 %v7821_v3, %v8553_v26  ;;  %v3047_v3 = vpop.f32.mrf.mxu1 }
 0xabd   : > { %v3712_v46 = vmul.f32 %v3648_v13, %v3200_v37  ;;  %v3405_v33 = vmul.f32 %v3341_v19, %v7862_v31  ;;  %v3345_v7 = vmul.f32 %v3281_v15, %v7888_v45  ;;  %v7938_v44 = vadd.f32 %v7853_v52, %v8545_v35 }
 0xabe   : > { %v5498_v58 = vpop.eup %5497  ;;  %v3716_v36 = vmul.f32 %v3652_v29, %v3204_v59  ;;  %4992 = vmatpush3.bf16.msra.mxu1 %v8565_v0  ;;  %v3338_v59 = vmul.f32 %v3274_v51, %v7881_v63  ;;  %v3339_v13 = vmul.f32 %v3275_v5, %v7896_v16  ;;  %v3278_v60 = vmul.f32 0.044715, %v7918_v4  ;;  %v8568_v29 = vld [vmem:[#allocation51_spill] sm:$0xff]  ;;  %v3162_v5 = vpop.f32.mrf.mxu0 }
 0xabf   : > { %v5500_v62 = vpop.eup %5499  ;;  %v3650_v22 = vadd.f32 1.0, %v5498_v58  ;;  %4985 = vmatprep.subr.bf16.mxu1 %v8566_v49  ;;  %8567 = vst [vmem:[#allocation54_spill] sm:$0xff] %v7938_v44  ;;  %v7945_v30 = vadd.f32 %v7833_v38, %v7423_v12  ;;  %v7949_v52 = vadd.f32 %v7835_v43, %v7427_v55  ;;  %v3285_v21 = vmul.f32 0.044715, %v7938_v44 }
 0xac0   : > { %v3654_v41 = vadd.f32 1.0, %v5500_v62  ;;  %v3764_v47 = vpack.c.bf16 %v3716_v36, %v3712_v46  ;;  %v7953_v58 = vmul.f32 %v3336_v61, %v7872_v50  ;;  %v3340_v8 = vmul.f32 %v3276_v2, %v7912_v57 }
 0xac1   : > { %v3714_v28 = vmul.f32 %v3650_v22, %v3202_v39  ;;  %v3279_v51 = vmul.f32 0.044715, %v7931_v27  ;;  %v7958_v19 = vmul.f32 %v3338_v59, %v7881_v63  ;;  %v3469_v38 = vadd.f32 %v3405_v33, %v7862_v31 }
 0xac2   : > { %v3718_v37 = vmul.f32 %v3654_v41, %v3206_v9  ;;  %4102 = vmatprep.mubr.bf16.mxu1 %v3764_v47  ;;  %v5502_v10 = vpop.eup %5501  ;;  %v3765_v9 = vpack.c.bf16 %v3717_v40, %v3713_v18  ;;  %4993 = vmatpush3.bf16.msra.mxu1 %v8568_v29  ;;  %v3409_v43 = vmul.f32 %v3345_v7, %v7888_v45  ;;  %v3049_v40 = vpop.f32.mrf.mxu1  ;;  %v3280_v0 = vmul.f32 0.044715, %v7945_v30 }
 0xac3   : > { %v5504_v48 = vpop.eup %5503  ;;  %v3647_v54 = vadd.f32 1.0, %v5502_v10  ;;  %v3349_v62 = vmul.f32 %v3285_v21, %v7938_v44  ;;  %v7967_v15 = vmul.f32 %v3339_v13, %v7896_v16  ;;  %v3342_v41 = vmul.f32 %v3278_v60, %v7918_v4 }
 0xac4   : > { %v3766_v39 = vpack.c.bf16 %v3718_v37, %v3714_v28  ;;  %v3651_v34 = vadd.f32 1.0, %v5504_v48  ;;  %v7963_v46 = vpop.eup %5505  ;;  %v3282_v47 = vmul.f32 0.044715, %v7949_v52  ;;  %v7974_v18 = vadd.f32 %v7851_v1, %v8553_v26  ;;  %v3053_v10 = vpop.f32.mrf.mxu1 }
 0xac5   : > { %v3711_v36 = vmul.f32 %v3647_v54, %v7891_v24  ;;  %v7978_v61 = vadd.f32 %v7900_v20, %v8545_v35  ;;  %v3343_v49 = vmul.f32 %v3279_v51, %v7931_v27  ;;  %v7986_v28 = vadd.f32 %v7864_v53, %v7423_v12 }
 0xac6   : > { %4199 = vmatprep.mubr.bf16.mxu0 %v3766_v39  ;;  %v3715_v22 = vmul.f32 %v3651_v34, %v3203_v23  ;;  %v7981_v23 = vmul.f32 %v3340_v8, %v7912_v57  ;;  %v3533_v37 = vmul.f32 0.7978846, %v3469_v38  ;;  %v3473_v2 = vadd.f32 %v3409_v43, %v7888_v45  ;;  %v3166_v39 = vpop.f32.mrf.mxu0  ;;  %v3055_v43 = vpop.f32.mrf.mxu1 }
 0xac7   : > { %4200 = vmatmul.mubr.bf16.gmra.mxu0 %v3765_v9  ;;  %8569 = vst [vmem:[#allocation55_spill] sm:$0xff] %v7978_v61  ;;  %v3413_v1 = vmul.f32 %v3349_v62, %v7938_v44  ;;  %v7992_v59 = vadd.f32 %v7866_v56, %v7427_v55  ;;  %v7995_v20 = vmul.f32 %v3342_v41, %v7918_v4  ;;  %v3289_v53 = vmul.f32 0.044715, %v7978_v61 }
 0xac8   : > { %v3763_v24 = vpack.c.bf16 %v3715_v22, %v3711_v36  ;;  %v7999_v33 = vadd.f32 %v7898_v14, %v8553_v26  ;;  %v8004_v7 = vadd.f32 %v7920_v42, %v7423_v12  ;;  %v3344_v9 = vmul.f32 %v3280_v0, %v7945_v30 }
 0xac9   : > { %v3346_v56 = vmul.f32 %v3282_v47, %v7949_v52  ;;  %v3283_v13 = vmul.f32 0.044715, %v7974_v18  ;;  %v8010_v60 = vadd.f32 %v3160_v11, %v8545_v35  ;;  %v8013_v14 = vmul.f32 %v3343_v49, %v7931_v27 }
 0xaca   : > { %4103 = vmatmul.mubr.bf16.gmra.mxu1 %v3763_v24  ;;  %v3284_v29 = vmul.f32 0.044715, %v7986_v28  ;;  %v8018_v42 = vadd.f32 %v7922_v17, %v7427_v55  ;;  %v8021_v48 = vadd.f32 %v3047_v3, %v8553_v26  ;;  %5507 = vtanh.f32 %v3533_v37  ;;  %v3168_v17 = vpop.f32.mrf.mxu0 }
 0xacb   : > { %8570 = vst [vmem:[#allocation53_spill] sm:$0xff] %v8010_v60  ;;  %v3537_v54 = vmul.f32 0.7978846, %v3473_v2  ;;  %v3477_v21 = vadd.f32 %v3413_v1, %v7938_v44  ;;  %v3286_v34 = vmul.f32 0.044715, %v7992_v59  ;;  %v3353_v8 = vmul.f32 %v3289_v53, %v7978_v61 }
 0xacc   : > { %v3287_v11 = vmul.f32 0.044715, %v7999_v33  ;;  %v3288_v51 = vmul.f32 0.044715, %v8004_v7  ;;  %v3293_v38 = vmul.f32 0.044715, %v8010_v60  ;;  %v8030_v62 = vmul.f32 %v3344_v9, %v7945_v30 }
 0xacd   : > { %v8033_v3 = vmul.f32 %v3346_v56, %v7949_v52  ;;  %v3347_v36 = vmul.f32 %v3283_v13, %v7974_v18  ;;  %v8037_v22 = vadd.f32 %v3049_v40, %v7423_v12  ;;  %v3348_v41 = vmul.f32 %v3284_v29, %v7986_v28  ;;  %v3057_v56 = vpop.f32.mrf.mxu1  ;;  %v3170_v13 = vpop.f32.mrf.mxu0 }
 0xace   : > { %v3290_v0 = vmul.f32 0.044715, %v8018_v42  ;;  %v3291_v47 = vmul.f32 0.044715, %v8021_v48  ;;  %v8043_v24 = vadd.f32 %v3162_v5, %v7427_v55  ;;  %5509 = vtanh.f32 %v3537_v54 }
 0xacf   : > { %v3350_v49 = vmul.f32 %v3286_v34, %v7992_v59  ;;  %v3357_v37 = vmul.f32 %v3293_v38, %v8010_v60  ;;  %v8048_v2 = vadd.f32 %v3053_v10, %v8553_v26  ;;  %v3541_v1 = vmul.f32 0.7978846, %v3477_v21 }
 0xad0   : > { %v3351_v40 = vmul.f32 %v3287_v11, %v7999_v33  ;;  %v3417_v53 = vmul.f32 %v3353_v8, %v7978_v61  ;;  %v3352_v9 = vmul.f32 %v3288_v51, %v8004_v7  ;;  %v8054_v5 = vmul.f32 %v3347_v36, %v7974_v18 }
 0xad1   : > { %v3292_v29 = vmul.f32 0.044715, %v8037_v22  ;;  %v8058_v54 = vadd.f32 %v3166_v39, %v8545_v35  ;;  %v8061_v10 = vadd.f32 %v3055_v43, %v7423_v12  ;;  %v8064_v21 = vmul.f32 %v3348_v41, %v7986_v28 }
 0xad2   : > { %v3354_v34 = vmul.f32 %v3290_v0, %v8018_v42  ;;  %v3355_v11 = vmul.f32 %v3291_v47, %v8021_v48  ;;  %v3294_v8 = vmul.f32 0.044715, %v8043_v24  ;;  %v8070_v51 = vmul.f32 %v3350_v49, %v7992_v59  ;;  %v3059_v47 = vpop.f32.mrf.mxu1 }
 0xad3   : > { %v3421_v38 = vmul.f32 %v3357_v37, %v8010_v60  ;;  %v3295_v39 = vmul.f32 0.044715, %v8048_v2  ;;  %v8075_v36 = vadd.f32 %v3170_v13, %v8545_v35  ;;  %5511 = vtanh.f32 %v3541_v1  ;;  %v3172_v35 = vpop.f32.mrf.mxu0 }
 0xad4   : > { %v8078_v43 = vmul.f32 %v3351_v40, %v7999_v33  ;;  %v3481_v41 = vadd.f32 %v3417_v53, %v7978_v61  ;;  %v8082_v0 = vmul.f32 %v3352_v9, %v8004_v7  ;;  %v3356_v49 = vmul.f32 %v3292_v29, %v8037_v22 }
 0xad5   : > { %v3297_v44 = vmul.f32 0.044715, %v8058_v54  ;;  %v3296_v37 = vmul.f32 0.044715, %v8061_v10  ;;  %v8088_v45 = vadd.f32 %v3168_v17, %v7427_v55  ;;  %v8091_v1 = vmul.f32 %v3354_v34, %v8018_v42 }
 0xad6   : > { %8571 = vst [vmem:[#allocation37_spill] sm:$0xff] %v8078_v43  ;;  %v8094_v40 = vmul.f32 %v3355_v11, %v8021_v48  ;;  %v3358_v53 = vmul.f32 %v3294_v8, %v8043_v24  ;;  %v8098_v9 = vadd.f32 %v3057_v56, %v8553_v26  ;;  %v3485_v13 = vadd.f32 %v3421_v38, %v8010_v60 }
 0xad7   : > { %v3359_v29 = vmul.f32 %v3295_v39, %v8048_v2  ;;  %v3301_v61 = vmul.f32 0.044715, %v8075_v36  ;;  %v8104_v17 = vadd.f32 %v3059_v47, %v7423_v12  ;;  %v5508_v43 = vpop.eup %5507  ;;  %v8106_v34 = vmul.f32 0.7978846, %v3481_v41 }
 0xad8   : > { %v8109_v11 = vadd.f32 %v3172_v35, %v7427_v55  ;;  %v3464_v8 = vadd.f32 %v7953_v58, %v7872_v50  ;;  %v3468_v26 = vadd.f32 %v7981_v23, %v7912_v57  ;;  %v8116_v56 = vmul.f32 %v3356_v49, %v8037_v22 }
 0xad9   : > { %8572 = vst [vmem:[#allocation57_spill] sm:$0xff] %v8106_v34  ;;  %v3361_v38 = vmul.f32 %v3297_v44, %v8058_v54  ;;  %v3360_v12 = vmul.f32 %v3296_v37, %v8061_v10  ;;  %v3298_v39 = vmul.f32 0.044715, %v8088_v45  ;;  %v8122_v41 = vmul.f32 %v3358_v53, %v8043_v24 }
 0xada   : > { %v3299_v55 = vmul.f32 0.044715, %v8098_v9  ;;  %v3528_v47 = vmul.f32 0.7978846, %v3464_v8  ;;  %v3532_v35 = vmul.f32 0.7978846, %v3468_v26  ;;  %v8126_v60 = vmul.f32 %v3359_v29, %v8048_v2 }
 0xadb   : > { %8573 = vst [vmem:[#allocation58_spill] sm:$0xff] %v8122_v41  ;;  %v3549_v58 = vmul.f32 0.7978846, %v3485_v13  ;;  %v3365_v23 = vmul.f32 %v3301_v61, %v8075_v36  ;;  %v3300_v49 = vmul.f32 0.044715, %v8104_v17  ;;  %v8130_v44 = vpop.eup %5509  ;;  %v3466_v53 = vadd.f32 %v7958_v19, %v7881_v63 }
 0xadc   : > { %v3302_v37 = vmul.f32 0.044715, %v8109_v11  ;;  %5513 = vtanh.f32 %v3528_v47  ;;  %v3470_v8 = vadd.f32 %v7995_v20, %v7918_v4  ;;  %v8138_v13 = vmul.f32 %v3361_v38, %v8058_v54 }
 0xadd   : > { %v3362_v29 = vmul.f32 %v3298_v39, %v8088_v45  ;;  %5515 = vtanh.f32 %v3532_v35  ;;  %v3463_v61 = vadd.f32 %v7876_v6, %v7819_v32  ;;  %v3363_v26 = vmul.f32 %v3299_v55, %v8098_v9 }
 0xade   : > { %8574 = vst [vmem:[#allocation38_spill] sm:$0xff] %v8138_v13  ;;  %v3530_v34 = vmul.f32 0.7978846, %v3466_v53  ;;  %v3534_v41 = vmul.f32 0.7978846, %v3470_v8  ;;  %v3467_v47 = vadd.f32 %v7967_v15, %v7896_v16  ;;  %5517 = vtanh.f32 %v3549_v58 }
 0xadf   : > { %v3429_v19 = vmul.f32 %v3365_v23, %v8075_v36  ;;  %v3364_v20 = vmul.f32 %v3300_v49, %v8104_v17  ;;  %v3527_v38 = vmul.f32 0.7978846, %v3463_v61  ;;  %v8149_v13 = vmul.f32 %v3360_v12, %v8061_v10 }
 0xae0   : > { %v3366_v39 = vmul.f32 %v3302_v37, %v8109_v11  ;;  %5519 = vtanh.f32 %v3530_v34  ;;  %v3531_v6 = vmul.f32 0.7978846, %v3467_v47  ;;  %v8152_v35 = vpop.eup %5511  ;;  %v8155_v55 = vmul.f32 %v3362_v29, %v8088_v45 }
 0xae1   : > { %v3208_v15 = vmul.f32 0.5, %v7872_v50  ;;  %v3212_v58 = vmul.f32 0.5, %v7912_v57  ;;  %5521 = vtanh.f32 %v3534_v41  ;;  %v8160_v23 = vmul.f32 %v3363_v26, %v8098_v9 }
 0xae2   : > { %v8163_v12 = vmul.f32 0.5, %v7881_v63  ;;  %5523 = vtanh.f32 %v3527_v38  ;;  %v3472_v34 = vadd.f32 %v8030_v62, %v7945_v30  ;;  %v8168_v49 = vadd.f32 %v3429_v19, %v8075_v36 }
 0xae3   : > { %v8171_v37 = vmul.f32 %v3364_v20, %v8104_v17  ;;  %5525 = vtanh.f32 %v3531_v6  ;;  %v3476_v50 = vadd.f32 %v8064_v21, %v7986_v28  ;;  %v8176_v57 = vmul.f32 %v3366_v39, %v8109_v11 }
 0xae4   : > { %v3661_v41 = vadd.f32 1.0, %v5508_v43  ;;  %v3536_v63 = vmul.f32 0.7978846, %v3472_v34  ;;  %v3474_v53 = vadd.f32 %v8033_v3, %v7949_v52  ;;  %v3214_v62 = vmul.f32 0.5, %v7918_v4 }
 0xae5   : > { %v3213_v8 = vmul.f32 0.5, %v7862_v31  ;;  %v3540_v29 = vmul.f32 0.7978846, %v3476_v50  ;;  %v3478_v61 = vadd.f32 %v8070_v51, %v7992_v59  ;;  %v3657_v26 = vadd.f32 1.0, %v7963_v46 }
 0xae6   : > { %5527 = vtanh.f32 %v3536_v63  ;;  %v3538_v21 = vmul.f32 0.7978846, %v3474_v53  ;;  %v3471_v47 = vadd.f32 %v8013_v14, %v7931_v27  ;;  %v3207_v43 = vmul.f32 0.5, %v7819_v32 }
 0xae7   : > { %5529 = vtanh.f32 %v3540_v29  ;;  %v3542_v19 = vmul.f32 0.7978846, %v3478_v61  ;;  %v3475_v4 = vadd.f32 %v8054_v5, %v7974_v18  ;;  %v3209_v31 = vmul.f32 0.5, %v7767_v25  ;;  %v8575_v29 = vld [vmem:[#allocation37_spill] sm:$0xff] }
 0xae8   : > { %v8191_v3 = vmul.f32 %v3661_v41, %v3213_v8  ;;  %5531 = vtanh.f32 %v3538_v21  ;;  %v3535_v51 = vmul.f32 0.7978846, %v3471_v47  ;;  %v3211_v46 = vmul.f32 0.5, %v7896_v16 }
 0xae9   : > { %v5514_v20 = vpop.eup %5513  ;;  %v8195_v38 = vmul.f32 0.5, %v7945_v30  ;;  %5533 = vtanh.f32 %v3542_v19  ;;  %v3539_v14 = vmul.f32 0.7978846, %v3475_v4  ;;  %v3721_v6 = vmul.f32 %v3657_v26, %v3209_v31 }
 0xaea   : > { %v5516_v32 = vpop.eup %5515  ;;  %v3656_v39 = vadd.f32 1.0, %v5514_v20  ;;  %v8198_v34 = vmul.f32 0.5, %v7986_v28  ;;  %5535 = vtanh.f32 %v3535_v51  ;;  %v8201_v5 = vmul.f32 0.5, %v7949_v52 }
 0xaeb   : > { %v3660_v25 = vadd.f32 1.0, %v5516_v32  ;;  %v8204_v50 = vmul.f32 0.5, %v7992_v59  ;;  %5537 = vtanh.f32 %v3539_v14  ;;  %v8206_v16 = vpop.eup %5517  ;;  %v3769_v30 = vpack.c.bf16 %v8191_v3, %v3721_v6 }
 0xaec   : > { %v8210_v41 = vmul.f32 0.5, %v7931_v27  ;;  %v3480_v28 = vadd.f32 %v8082_v0, %v8004_v7  ;;  %v3484_v63 = vadd.f32 %v8116_v56, %v8037_v22  ;;  %v3720_v52 = vmul.f32 %v3656_v39, %v3208_v15  ;;  %v8576_v56 = vld [vmem:[#allocation56_spill] sm:$0xff] }
 0xaed   : > { %v5520_v53 = vpop.eup %5519  ;;  %v3724_v8 = vmul.f32 %v3660_v25, %v3212_v58  ;;  %v8217_v59 = vmul.f32 0.5, %v7974_v18  ;;  %v3479_v61 = vadd.f32 %v8575_v29, %v7999_v33  ;;  %v3483_v19 = vadd.f32 %v8094_v40, %v8021_v48  ;;  %v8577_v18 = vld [vmem:[#allocation54_spill] sm:$0xff] }
 0xaee   : > { %v5522_v26 = vpop.eup %5521  ;;  %v3658_v21 = vadd.f32 1.0, %v5520_v53  ;;  %v3544_v47 = vmul.f32 0.7978846, %v3480_v28  ;;  %v3548_v27 = vmul.f32 0.7978846, %v3484_v63  ;;  %v3217_v3 = vmul.f32 0.5, %v8576_v56 }
 0xaef   : > { %v5524_v0 = vpop.eup %5523  ;;  %v3768_v4 = vpack.c.bf16 %v3724_v8, %v3720_v52  ;;  %v3662_v31 = vadd.f32 1.0, %v5522_v26  ;;  %v3543_v15 = vmul.f32 0.7978846, %v3479_v61  ;;  %v3221_v20 = vmul.f32 0.5, %v8577_v18 }
 0xaf0   : > { %v5526_v58 = vpop.eup %5525  ;;  %v3655_v51 = vadd.f32 1.0, %v5524_v0  ;;  %5539 = vtanh.f32 %v3544_v47  ;;  %v3547_v14 = vmul.f32 0.7978846, %v3483_v19  ;;  %v3722_v32 = vmul.f32 %v3658_v21, %v8163_v12 }
 0xaf1   : > { %4110 = vmatprep.mubr.bf16.mxu1 %v3768_v4  ;;  %v3726_v39 = vmul.f32 %v3662_v31, %v3214_v62  ;;  %v3659_v6 = vadd.f32 1.0, %v5526_v58  ;;  %5541 = vtanh.f32 %v3548_v27  ;;  %v3669_v40 = vadd.f32 1.0, %v8152_v35 }
 0xaf2   : > { %5543 = vtanh.f32 %v3543_v15  ;;  %v3488_v25 = vadd.f32 %v8149_v13, %v8061_v10  ;;  %v3492_v28 = vadd.f32 %v8171_v37, %v8104_v17  ;;  %v3719_v52 = vmul.f32 %v3655_v51, %v3207_v43 }
 0xaf3   : > { %v5528_v63 = vpop.eup %5527  ;;  %v3770_v53 = vpack.c.bf16 %v3726_v39, %v3722_v32  ;;  %v3723_v8 = vmul.f32 %v3659_v6, %v3211_v46  ;;  %5545 = vtanh.f32 %v3547_v14  ;;  %v3665_v12 = vadd.f32 1.0, %v8130_v44 }
 0xaf4   : > { %v5530_v29 = vpop.eup %5529  ;;  %v3664_v61 = vadd.f32 1.0, %v5528_v63  ;;  %v3552_v62 = vmul.f32 0.7978846, %v3488_v25  ;;  %v3556_v26 = vmul.f32 0.7978846, %v3492_v28  ;;  %v3487_v13 = vadd.f32 %v8126_v60, %v8048_v2  ;;  %v8580_v28 = vld [vmem:[#allocation38_spill] sm:$0xff] }
 0xaf5   : > { %v5532_v21 = vpop.eup %5531  ;;  %4207 = vmatprep.mubr.bf16.mxu0 %v3770_v53  ;;  %v3767_v35 = vpack.c.bf16 %v3723_v8, %v3719_v52  ;;  %v3668_v47 = vadd.f32 1.0, %v5530_v29  ;;  %v3491_v37 = vadd.f32 %v8160_v23, %v8098_v9  ;;  %v3733_v19 = vmul.f32 %v3669_v40, %v3221_v20 }
 0xaf6   : > { %v5534_v27 = vpop.eup %5533  ;;  %4208 = vmatmul.mubr.bf16.gmra.mxu0 %v3769_v30  ;;  %v3728_v43 = vmul.f32 %v3664_v61, %v8195_v38  ;;  %v3666_v46 = vadd.f32 1.0, %v5532_v21  ;;  %5547 = vtanh.f32 %v3552_v62  ;;  %v3551_v31 = vmul.f32 0.7978846, %v3487_v13 }
 0xaf7   : > { %v5536_v44 = vpop.eup %5535  ;;  %4111 = vmatmul.mubr.bf16.gmra.mxu1 %v3767_v35  ;;  %v3732_v0 = vmul.f32 %v3668_v47, %v8198_v34  ;;  %v3670_v4 = vadd.f32 1.0, %v5534_v27  ;;  %5549 = vtanh.f32 %v3556_v26  ;;  %v3729_v58 = vmul.f32 %v3665_v12, %v3217_v3  ;;  %v8578_v34 = vld [vmem:[#allocation58_spill] sm:$0xff] }
 0xaf8   : > { %v5538_v56 = vpop.eup %5537  ;;  %v3730_v60 = vmul.f32 %v3666_v46, %v8201_v5  ;;  %v3663_v15 = vadd.f32 1.0, %v5536_v44  ;;  %v3555_v23 = vmul.f32 0.7978846, %v3491_v37  ;;  %5551 = vtanh.f32 %v3551_v31 }
 0xaf9   : > { %v3772_v51 = vpack.c.bf16 %v3732_v0, %v3728_v43  ;;  %v3734_v30 = vmul.f32 %v3670_v4, %v8204_v50  ;;  %v3667_v38 = vadd.f32 1.0, %v5538_v56  ;;  %v3482_v18 = vadd.f32 %v8091_v1, %v8018_v42  ;;  %v8579_v1 = vld [vmem:[#allocation57_spill] sm:$0xff] }
 0xafa   : > { %5553 = vtanh.f32 %v3555_v23  ;;  %v3486_v20 = vadd.f32 %v8578_v34, %v8043_v24  ;;  %v3727_v32 = vmul.f32 %v3663_v15, %v8210_v41  ;;  %v3773_v3 = vpack.c.bf16 %v3733_v19, %v3729_v58 }
 0xafb   : > { %4118 = vmatprep.mubr.bf16.mxu1 %v3772_v51  ;;  %v3774_v14 = vpack.c.bf16 %v3734_v30, %v3730_v60  ;;  %v3731_v5 = vmul.f32 %v3667_v38, %v8217_v59  ;;  %v3546_v39 = vmul.f32 0.7978846, %v3482_v18  ;;  %v3490_v50 = vadd.f32 %v8155_v55, %v8088_v45 }
 0xafc   : > { %v3550_v6 = vmul.f32 0.7978846, %v3486_v20  ;;  %v3494_v40 = vadd.f32 %v8176_v57, %v8109_v11  ;;  %5555 = vtanh.f32 %v8579_v1  ;;  %v3489_v63 = vadd.f32 %v8580_v28, %v8058_v54 }
 0xafd   : > { %v5540_v25 = vpop.eup %5539  ;;  %v3557_v53 = vmul.f32 0.7978846, %v8168_v49  ;;  %4215 = vmatprep.mubr.bf16.mxu0 %v3774_v14  ;;  %v3771_v41 = vpack.c.bf16 %v3731_v5, %v3727_v32  ;;  %5557 = vtanh.f32 %v3546_v39  ;;  %v3554_v8 = vmul.f32 0.7978846, %v3490_v50  ;;  %v8581_v50 = vld [vmem:[#allocation53_spill] sm:$0xff] }
 0xafe   : > { %v5542_v59 = vpop.eup %5541  ;;  %4216 = vmatmul.mubr.bf16.gmra.mxu0 %v3773_v3  ;;  %v3672_v52 = vadd.f32 1.0, %v5540_v25  ;;  %v3558_v29 = vmul.f32 0.7978846, %v3494_v40  ;;  %v3224_v57 = vmul.f32 0.5, %v8004_v7  ;;  %v3228_v61 = vmul.f32 0.5, %v8037_v22 }
 0xaff   : > { %v5544_v55 = vpop.eup %5543  ;;  %4119 = vmatmul.mubr.bf16.gmra.mxu1 %v3771_v41  ;;  %v3676_v12 = vadd.f32 1.0, %v5542_v59  ;;  %5559 = vtanh.f32 %v3550_v6  ;;  %v3223_v26 = vmul.f32 0.5, %v7999_v33  ;;  %v3227_v49 = vmul.f32 0.5, %v8021_v48  ;;  %v8582_v41 = vld [vmem:[#allocation55_spill] sm:$0xff] }
 0xb00   : > { %v5546_v62 = vpop.eup %5545  ;;  %v3671_v21 = vadd.f32 1.0, %v5544_v55  ;;  %5561 = vtanh.f32 %v3554_v8  ;;  %v3736_v35 = vmul.f32 %v3672_v52, %v3224_v57  ;;  %v3553_v27 = vmul.f32 0.7978846, %v3489_v63 }
 0xb01   : > { %v3740_v47 = vmul.f32 %v3676_v12, %v3228_v61  ;;  %v3675_v13 = vadd.f32 1.0, %v5546_v62  ;;  %5563 = vtanh.f32 %v3558_v29  ;;  %v3232_v33 = vmul.f32 0.5, %v8061_v10 }
 0xb02   : > { %v3735_v46 = vmul.f32 %v3671_v21, %v3223_v26  ;;  %5565 = vtanh.f32 %v3557_v53  ;;  %v3236_v48 = vmul.f32 0.5, %v8104_v17  ;;  %v3235_v58 = vmul.f32 0.5, %v8098_v9 }
 0xb03   : > { %v5548_v37 = vpop.eup %5547  ;;  %v3776_v43 = vpack.c.bf16 %v3740_v47, %v3736_v35  ;;  %v3739_v7 = vmul.f32 %v3675_v13, %v3227_v49  ;;  %5567 = vtanh.f32 %v3553_v27  ;;  %v3231_v30 = vmul.f32 0.5, %v8048_v2  ;;  %v8274_v13 = vld [vmem:[%s8390_s12] ss:$0 sm:$0xff] }
 0xb04   : > { %v5550_v19 = vpop.eup %5549  ;;  %v3680_v22 = vadd.f32 1.0, %v5548_v37  ;;  %v3677_v20 = vadd.f32 1.0, %v8206_v16  ;;  %v3226_v3 = vmul.f32 0.5, %v8018_v42  ;;  %v3230_v39 = vmul.f32 0.5, %v8043_v24 }
 0xb05   : > { %4126 = vmatprep.mubr.bf16.mxu1 %v3776_v43  ;;  %v3775_v44 = vpack.c.bf16 %v3739_v7, %v3735_v46  ;;  %v3684_v0 = vadd.f32 1.0, %v5550_v19  ;;  %v5552_v4 = vpop.eup %5551  ;;  %v3229_v40 = vmul.f32 0.5, %v8581_v50  ;;  %v3238_v63 = vmul.f32 0.5, %v8109_v11 }
 0xb06   : > { %v3744_v56 = vmul.f32 %v3680_v22, %v3232_v33  ;;  %v3679_v15 = vadd.f32 1.0, %v5552_v4  ;;  %v3225_v59 = vmul.f32 0.5, %v8582_v41  ;;  %v3234_v42 = vmul.f32 0.5, %v8088_v45 }
 0xb07   : > { %v5554_v31 = vpop.eup %5553  ;;  %4127 = vmatmul.mubr.bf16.gmra.mxu1 %v3775_v44  ;;  %v3748_v60 = vmul.f32 %v3684_v0, %v3236_v48  ;;  %v3741_v52 = vmul.f32 %v3677_v20, %v3229_v40  ;;  %v3237_v26 = vmul.f32 0.5, %v8075_v36  ;;  %v3233_v49 = vmul.f32 0.5, %v8058_v54 }
 0xb08   : > { %v3683_v23 = vadd.f32 1.0, %v5554_v31  ;;  %v3743_v10 = vmul.f32 %v3679_v15, %v3231_v30  ;;  %v8583_v31 = vld [vmem:[#allocation25_spill] sm:$0xff] }
 0xb09   : > { %v3780_v51 = vpack.c.bf16 %v3748_v60, %v3744_v56  ;;  %v5556_v38 = vpop.eup %5555 }
 0xb0a   : > { %v3747_v18 = vmul.f32 %v3683_v23, %v3235_v58  ;;  %v5558_v34 = vpop.eup %5557  ;;  %v3673_v2 = vadd.f32 1.0, %v5556_v38 }
 0xb0b   : > { %4134 = vmatprep.mubr.bf16.mxu1 %v3780_v51  ;;  %v3674_v14 = vadd.f32 1.0, %v5558_v34 }
 0xb0c   : > { %v5560_v17 = vpop.eup %5559  ;;  %v3779_v5 = vpack.c.bf16 %v3747_v18, %v3743_v10  ;;  %v3737_v29 = vmul.f32 %v3673_v2, %v3225_v59  ;;  %v8584_v18 = vld [vmem:[#allocation22_spill] sm:$0xff] }
 0xb0d   : > { %v5562_v32 = vpop.eup %5561  ;;  %v3678_v9 = vadd.f32 1.0, %v5560_v17  ;;  %v3738_v25 = vmul.f32 %v3674_v14, %v3226_v3 }
 0xb0e   : > { %v5564_v6 = vpop.eup %5563  ;;  %v3682_v53 = vadd.f32 1.0, %v5562_v32  ;;  %v3777_v61 = vpack.c.bf16 %v3741_v52, %v3737_v29 }
 0xb0f   : > { %4135 = vmatmul.mubr.bf16.gmra.mxu1 %v3779_v5  ;;  %v3742_v1 = vmul.f32 %v3678_v9, %v3230_v39  ;;  %v3686_v28 = vadd.f32 1.0, %v5564_v6  ;;  %v5566_v16 = vpop.eup %5565  ;;  %v8585_v9 = vld [vmem:[#allocation26_spill] sm:$0xff] }
 0xb10   : > { %v5568_v55 = vpop.eup %5567  ;;  %v3746_v57 = vmul.f32 %v3682_v53, %v3234_v42  ;;  %v3685_v12 = vadd.f32 1.0, %v5566_v16  ;;  %v8586_v16 = vld [vmem:[#allocation21_spill] sm:$0xff] }
 0xb11   : > { %v3778_v8 = vpack.c.bf16 %v3742_v1, %v3738_v25  ;;  %v3750_v24 = vmul.f32 %v3686_v28, %v3238_v63  ;;  %v3681_v11 = vadd.f32 1.0, %v5568_v55 }
 0xb12   : > { %v3749_v21 = vmul.f32 %v3685_v12, %v3237_v26 }
 0xb13   : > { %4223 = vmatprep.mubr.bf16.mxu1 %v3778_v8  ;;  %v3782_v62 = vpack.c.bf16 %v3750_v24, %v3746_v57  ;;  %v3745_v35 = vmul.f32 %v3681_v11, %v3233_v49  ;;  %v8587_v57 = vld [vmem:[#allocation24_spill] sm:$0xff]  ;;  %v8588_v11 = vld [vmem:[#allocation27_spill] sm:$0xff] }
 0xb15   : > { %v3781_v47 = vpack.c.bf16 %v3749_v21, %v3745_v35 }
 0xb17   : > { %4224 = vmatmul.mubr.bf16.vlgmr.msra.gmra.mxu1 %v3777_v61 }
 0xb18   : > { %4231 = vmatprep.mubr.bf16.mxu1 %v3782_v62 }
 0xb1f   : > { %4232 = vmatmul.mubr.bf16.gmra.mxu1 %v3781_v47 }
 0xb64   : > { %v4674_v45 = vpop.f32.mrf.mxu1 }
 0xb66   : > { %v4675_v37 = vpop.f32.mrf.mxu1 }
 0xb67   : > { %v4676_v43 = vadd.f32 %v4675_v37, %v4674_v45 }
 0xb68   : > { %v4738_v27 = vpop.f32.mrf.mxu0  ;;  %v4677_v46 = vpop.f32.mrf.mxu1 }
 0xb69   : > { %v4081_v36 = vadd.f32 %v4676_v43, %v8274_v13 }
 0xb6a   : > { %v4739_v7 = vpop.f32.mrf.mxu0  ;;  %v4678_v54 = vpop.f32.mrf.mxu1 }
 0xb6b   : > { %v4740_v19 = vadd.f32 %v4739_v7, %v4738_v27  ;;  %v4679_v44 = vadd.f32 %v4678_v54, %v4677_v46 }
 0xb6c   : > { %v4741_v22 = vpop.f32.mrf.mxu0 }
 0xb6d   : > { %v4178_v33 = vadd.f32 %v4740_v19, %v4081_v36  ;;  %v4084_v48 = vadd.f32 %v4679_v44, %v8274_v13  ;;  %v8589_v44 = vld [vmem:[#allocation28_spill] sm:$0xff] }
 0xb6e   : > { %v4742_v0 = vpop.f32.mrf.mxu0 }
 0xb6f   : > { %v4240_v56 = vadd.f32 %v4178_v33, %v8583_v31  ;;  %v4743_v60 = vadd.f32 %v4742_v0, %v4741_v22  ;;  %v8590_v31 = vld [vmem:[#allocation23_spill] sm:$0xff] }
 0xb70   : > { %v4680_v4 = vpop.f32.mrf.mxu1  ;;  %v4744_v15 = vpop.f32.mrf.mxu0 }
 0xb71   : > { %4256 = vst [vmem:[%s8281_s2] sm:$0xff] %v4240_v56  ;;  %v4181_v23 = vadd.f32 %v4743_v60, %v4084_v48 }
 0xb72   : > { %v4681_v58 = vpop.f32.mrf.mxu1  ;;  %v4745_v30 = vpop.f32.mrf.mxu0 }
 0xb73   : > { %v4682_v51 = vadd.f32 %v4681_v58, %v4680_v4  ;;  %v4241_v34 = vadd.f32 %v4181_v23, %v8584_v18  ;;  %v4746_v17 = vadd.f32 %v4745_v30, %v4744_v15 }
 0xb74   : > { %v4683_v38 = vpop.f32.mrf.mxu1  ;;  %v4747_v20 = vpop.f32.mrf.mxu0 }
 0xb75   : > { %v4089_v10 = vadd.f32 %v4682_v51, %v8274_v13  ;;  %4257 = vst [vmem:[%s8281_s2 + $0x8] sm:$0xff] %v4241_v34 }
 0xb76   : > { %v4684_v14 = vpop.f32.mrf.mxu1  ;;  %v4748_v3 = vpop.f32.mrf.mxu0 }
 0xb77   : > { %v4186_v32 = vadd.f32 %v4746_v17, %v4089_v10  ;;  %v4685_v5 = vadd.f32 %v4684_v14, %v4683_v38  ;;  %v4749_v40 = vadd.f32 %v4748_v3, %v4747_v20  ;;  %v8591_v3 = vld [vmem:[#allocation29_spill] sm:$0xff] }
 0xb78   : > { %v4686_v39 = vpop.f32.mrf.mxu1  ;;  %v4750_v2 = vpop.f32.mrf.mxu0 }
 0xb79   : > { %v4242_v6 = vadd.f32 %v4186_v32, %v8585_v9  ;;  %v4092_v50 = vadd.f32 %v4685_v5, %v8274_v13 }
 0xb7a   : > { %v4687_v25 = vpop.f32.mrf.mxu1  ;;  %v4751_v63 = vpop.f32.mrf.mxu0 }
 0xb7b   : > { %4258 = vst [vmem:[%s8281_s2 + $0x10] sm:$0xff] %v4242_v6  ;;  %v4189_v1 = vadd.f32 %v4749_v40, %v4092_v50  ;;  %v4688_v28 = vadd.f32 %v4687_v25, %v4686_v39  ;;  %v4752_v52 = vadd.f32 %v4751_v63, %v4750_v2  ;;  %v8592_v63 = vld [vmem:[#allocation30_spill] sm:$0xff] }
 0xb7c   : > { %v4689_v53 = vpop.f32.mrf.mxu1  ;;  %v4753_v8 = vpop.f32.mrf.mxu0 }
 0xb7d   : > { %v4243_v41 = vadd.f32 %v4189_v1, %v8586_v16  ;;  %v4097_v59 = vadd.f32 %v4688_v28, %v8274_v13 }
 0xb7e   : > { %v4690_v42 = vpop.f32.mrf.mxu1  ;;  %v4754_v55 = vpop.f32.mrf.mxu0 }
 0xb7f   : > { %4259 = vst [vmem:[%s8281_s2 + $0x18] sm:$0xff] %v4243_v41  ;;  %v4194_v24 = vadd.f32 %v4752_v52, %v4097_v59  ;;  %v4691_v29 = vadd.f32 %v4690_v42, %v4689_v53  ;;  %v4755_v62 = vadd.f32 %v4754_v55, %v4753_v8 }
 0xb81   : > { %v4244_v61 = vadd.f32 %v4194_v24, %v8587_v57  ;;  %v4100_v12 = vadd.f32 %v4691_v29, %v8274_v13  ;;  %v8593_v29 = vld [vmem:[#allocation31_spill] sm:$0xff] }
 0xb83   : > { %4260 = vst [vmem:[%s8281_s2 + $0x20] sm:$0xff] %v4244_v61  ;;  %v4197_v26 = vadd.f32 %v4755_v62, %v4100_v12 }
 0xb85   : > { %v4245_v49 = vadd.f32 %v4197_v26, %v8588_v11  ;;  %v8594_v11 = vld [vmem:[#allocation32_spill] sm:$0xff] }
 0xb87   : > { %4261 = vst [vmem:[%s8281_s2 + $0x28] sm:$0xff] %v4245_v49  ;;  %v4756_v21 = vpop.f32.mrf.mxu0 }
 0xb89   : > { %v4757_v35 = vpop.f32.mrf.mxu0 }
 0xb8a   : > { %v4692_v47 = vpop.f32.mrf.mxu1  ;;  %v4758_v36 = vadd.f32 %v4757_v35, %v4756_v21 }
 0xb8b   : > { %v4759_v37 = vpop.f32.mrf.mxu0 }
 0xb8c   : > { %v4693_v45 = vpop.f32.mrf.mxu1 }
 0xb8d   : > { %v4694_v27 = vadd.f32 %v4693_v45, %v4692_v47  ;;  %v4760_v19 = vpop.f32.mrf.mxu0 }
 0xb8e   : > { %v4695_v43 = vpop.f32.mrf.mxu1  ;;  %v4761_v0 = vadd.f32 %v4760_v19, %v4759_v37 }
 0xb8f   : > { %v4105_v46 = vadd.f32 %v4694_v27, %v8274_v13 }
 0xb90   : > { %v4696_v7 = vpop.f32.mrf.mxu1 }
 0xb91   : > { %v4202_v54 = vadd.f32 %v4758_v36, %v4105_v46  ;;  %v4697_v22 = vadd.f32 %v4696_v7, %v4695_v43 }
 0xb93   : > { %v4246_v33 = vadd.f32 %v4202_v54, %v8589_v44  ;;  %v4108_v48 = vadd.f32 %v4697_v22, %v8274_v13 }
 0xb95   : > { %4262 = vst [vmem:[%s8281_s2 + $0x30] sm:$0xff] %v4246_v33  ;;  %v4205_v4 = vadd.f32 %v4761_v0, %v4108_v48  ;;  %v8595_v0 = vld [vmem:[#allocation33_spill] sm:$0xff] }
 0xb97   : > { %v4247_v56 = vadd.f32 %v4205_v4, %v8590_v31 }
 0xb99   : > { %4263 = vst [vmem:[%s8281_s2 + $0x38] sm:$0xff] %v4247_v56 }
 0xbb6   : > { %v4762_v60 = vpop.f32.mrf.mxu0 }
 0xbb7   : > { %v4698_v15 = vpop.f32.mrf.mxu1 }
 0xbb8   : > { %v4763_v58 = vpop.f32.mrf.mxu0 }
 0xbb9   : > { %v4699_v23 = vpop.f32.mrf.mxu1  ;;  %v4764_v34 = vadd.f32 %v4763_v58, %v4762_v60 }
 0xbba   : > { %v4700_v51 = vadd.f32 %v4699_v23, %v4698_v15  ;;  %v4765_v30 = vpop.f32.mrf.mxu0 }
 0xbbb   : > { %v4701_v38 = vpop.f32.mrf.mxu1 }
 0xbbc   : > { %v4113_v18 = vadd.f32 %v4700_v51, %v8274_v13  ;;  %v4766_v10 = vpop.f32.mrf.mxu0  ;;  %v8596_v51 = vld [vmem:[#allocation34_spill] sm:$0xff] }
 0xbbd   : > { %v4702_v17 = vpop.f32.mrf.mxu1  ;;  %v4767_v6 = vadd.f32 %v4766_v10, %v4765_v30 }
 0xbbe   : > { %v4210_v20 = vadd.f32 %v4764_v34, %v4113_v18  ;;  %v4703_v14 = vadd.f32 %v4702_v17, %v4701_v38  ;;  %v4768_v32 = vpop.f32.mrf.mxu0 }
 0xbbf   : > { %v4704_v5 = vpop.f32.mrf.mxu1 }
 0xbc0   : > { %v4248_v39 = vadd.f32 %v4210_v20, %v8591_v3  ;;  %v4116_v9 = vadd.f32 %v4703_v14, %v8274_v13  ;;  %v4769_v50 = vpop.f32.mrf.mxu0  ;;  %v8597_v20 = vld [vmem:[#allocation35_spill] sm:$0xff]  ;;  %v8598_v3 = vld [vmem:[#allocation36_spill] sm:$0xff] }
 0xbc1   : > { %v4705_v40 = vpop.f32.mrf.mxu1  ;;  %v4770_v41 = vadd.f32 %v4769_v50, %v4768_v32 }
 0xbc2   : > { %4264 = vst [vmem:[%s8281_s2 + $0x40] sm:$0xff] %v4248_v39  ;;  %v4213_v2 = vadd.f32 %v4767_v6, %v4116_v9  ;;  %v4706_v25 = vadd.f32 %v4705_v40, %v4704_v5  ;;  %v4771_v1 = vpop.f32.mrf.mxu0 }
 0xbc3   : > { %v4707_v28 = vpop.f32.mrf.mxu1 }
 0xbc4   : > { %v4249_v53 = vadd.f32 %v4213_v2, %v8592_v63  ;;  %v4121_v16 = vadd.f32 %v4706_v25, %v8274_v13  ;;  %v4772_v52 = vpop.f32.mrf.mxu0 }
 0xbc5   : > { %v4708_v59 = vpop.f32.mrf.mxu1  ;;  %v4773_v61 = vadd.f32 %v4772_v52, %v4771_v1 }
 0xbc6   : > { %4265 = vst [vmem:[%s8281_s2 + $0x48] sm:$0xff] %v4249_v53  ;;  %v4218_v8 = vadd.f32 %v4770_v41, %v4121_v16  ;;  %v4709_v42 = vadd.f32 %v4708_v59, %v4707_v28 }
 0xbc7   : > { %v4710_v24 = vpop.f32.mrf.mxu1 }
 0xbc8   : > { %v4250_v55 = vadd.f32 %v4218_v8, %v8593_v29  ;;  %v4124_v57 = vadd.f32 %v4709_v42, %v8274_v13 }
 0xbc9   : > { %v4711_v12 = vpop.f32.mrf.mxu1 }
 0xbca   : > { %4266 = vst [vmem:[%s8281_s2 + $0x50] sm:$0xff] %v4250_v55  ;;  %v4221_v62 = vadd.f32 %v4773_v61, %v4124_v57  ;;  %v4712_v27 = vadd.f32 %v4711_v12, %v4710_v24 }
 0xbcb   : > { %v4713_v26 = vpop.f32.mrf.mxu1 }
 0xbcc   : > { %v4251_v49 = vadd.f32 %v4221_v62, %v8594_v11  ;;  %v4129_v36 = vadd.f32 %v4712_v27, %v8274_v13 }
 0xbcd   : > { %v4714_v21 = vpop.f32.mrf.mxu1 }
 0xbce   : > { %4267 = vst [vmem:[%s8281_s2 + $0x58] sm:$0xff] %v4251_v49  ;;  %v4715_v7 = vadd.f32 %v4714_v21, %v4713_v26 }
 0xbcf   : > { %v4716_v35 = vpop.f32.mrf.mxu1 }
 0xbd0   : > { %v4132_v33 = vadd.f32 %v4715_v7, %v8274_v13 }
 0xbd1   : > { %v4717_v47 = vpop.f32.mrf.mxu1 }
 0xbd2   : > { %v4718_v48 = vadd.f32 %v4717_v47, %v4716_v35 }
 0xbd3   : > { %v4719_v45 = vpop.f32.mrf.mxu1 }
 0xbd4   : > { %v4137_v58 = vadd.f32 %v4718_v48, %v8274_v13 }
 0xbd5   : > { %v4720_v37 = vpop.f32.mrf.mxu1 }
 0xbd6   : > { %v4721_v23 = vadd.f32 %v4720_v37, %v4719_v45 }
 0xbd7   : > { %v4774_v43 = vpop.f32.mrf.mxu1 }
 0xbd8   : > { %v4140_v17 = vadd.f32 %v4721_v23, %v8274_v13 }
 0xbd9   : > { %v4775_v46 = vpop.f32.mrf.mxu1 }
 0xbda   : > { %v4776_v19 = vadd.f32 %v4775_v46, %v4774_v43 }
 0xbdb   : > { %v4777_v54 = vpop.f32.mrf.mxu1 }
 0xbdc   : > { %v4226_v22 = vadd.f32 %v4776_v19, %v4129_v36 }
 0xbdd   : > { %v4778_v44 = vpop.f32.mrf.mxu1 }
 0xbde   : > { %v4252_v4 = vadd.f32 %v4226_v22, %v8595_v0  ;;  %v4779_v31 = vadd.f32 %v4778_v44, %v4777_v54 }
 0xbdf   : > { %v4780_v56 = vpop.f32.mrf.mxu1 }
 0xbe0   : > { %4268 = vst [vmem:[%s8281_s2 + $0x60] sm:$0xff] %v4252_v4  ;;  %v4229_v60 = vadd.f32 %v4779_v31, %v4132_v33 }
 0xbe1   : > { %v4781_v15 = vpop.f32.mrf.mxu1 }
 0xbe2   : > { %v4253_v30 = vadd.f32 %v4229_v60, %v8596_v51  ;;  %v4782_v38 = vadd.f32 %v4781_v15, %v4780_v56 }
 0xbe3   : > { %v4783_v18 = vpop.f32.mrf.mxu1 }
 0xbe4   : > { %4269 = vst [vmem:[%s8281_s2 + $0x68] sm:$0xff] %v4253_v30  ;;  %v4234_v34 = vadd.f32 %v4782_v38, %v4137_v58 }
 0xbe5   : > { %v4784_v10 = vpop.f32.mrf.mxu1 }
 0xbe6   : > { %v4254_v14 = vadd.f32 %v4234_v34, %v8597_v20  ;;  %v4785_v32 = vadd.f32 %v4784_v10, %v4783_v18 }
 0xbe8   : > { %4270 = vst [vmem:[%s8281_s2 + $0x70] sm:$0xff] %v4254_v14  ;;  %v4237_v5 = vadd.f32 %v4785_v32, %v4140_v17 }
 0xbea   : > { %v4255_v39 = vadd.f32 %v4237_v5, %v8598_v3 }
 0xbec   : > { %4271 = vst [vmem:[%s8281_s2 + $0x78] sm:$0xff] %v4255_v39 }
 0xbed   : > { %5782 = shalt.err (!%p5779_p6)
}
 0xbee   : > { %s5783_s11 = scalar_lea.hbm %s8331_s3, 2048  ;;  %s5787_s21 = scalar_lea.hbm %s8391_s13, 4096 }
 0xbef   : > { %p5784_p4 = scmp.ne.s32.totalorder %s8331_s3, %s5783_s11  ;;  %p5788_p9 = scmp.lt.s32.totalorder %s8331_s3, %s8391_s13 }
 0xbf0   : > { %p5789_p11 = scmp.lt.s32.totalorder %s5787_s21, %s5783_s11 }
 0xbf1   : > { %p5785_p1 = pnand %p5784_p4, %p8599_p13 }
 0xbf2   : > { %p5790_p10 = por %p5789_p11, %p5788_p9 }
 0xbf3   : > { %p5786_p3 = pneg %p5785_p1 }
 0xbf5   : > { %p5791_p12 = pnand %p5790_p10, %p5786_p3 }
 0xbf7   : > { %5794 = shalt.err (!%p5791_p12)
}
 0xbf8   : > { %s5865_s9 = smov 128   ;;  %s5866_s15 = smov 8  }
 0xbf9   : > { %5036 = dma.vmem_to_hbm [thread:$0]  (%p8599_p13), %s8333_s5, 2048, %s8331_s3, %s4273_s29, %s5865_s9, %s5865_s9, %s5866_s15  }
 0xbfa PF: > { %s4301_s17 = sand.u32 1, %s5833_s25   ;;  %p8600_p0 = scmp.ne.s32.totalorder %s8473_s22, 0 }
 0xbfb   : > { %p8601_p2 = scmp.ge.s32.totalorder %s5845_s28, 2  ;;  %s4302_s14 = scalar_lea.sflag [#allocation4], %s4301_s17 }
 0xbfd   : > { %p5062_p5 = pnand %p8601_p2, %p8600_p0 }
 0xbff   : > { %p5063_p8 = pneg %p5062_p5 }
 0xc01   : > { %5828 = dma.done.wait (%p5063_p8), %s4302_s14, 2048  }
 0xc02   : > { %5830 = vsyncadd (%p5063_p8), %s4302_s14, 4294965248  ;;  %s8602_s16 = sld [smem:[#allocation20_spill]]  ;;  %p29_p7 = scmp.ge.s32.totalorder %s6040_s18, 4  }
 0xc03   : > { %s8603_s25 = smov %s5837_s26  ;;  %s8604_s26 = smov %s5841_s27 }
 0xc04   : > { %s8606_s28 = smov %s6040_s18  ;;  %31 = sbr.rel (!%p29_p7) target bundleno = 15 (0xf), region = 141 }
 0xc08   : > { %s8605_s27 = smov %s8602_s16 }
 0xc09   :  { %4307 = vsyncpa [#allocation3], 1 }
 0xc0a   :  { %4309 = vsyncpa [#allocation3 + $0x1], 1 }
 0xc0b   :  { %4310 = vsyncpa [#allocation6], 1 }
 0xc0c   :  { %4311 = vsyncpa [#allocation9], 1 }
 0xc0d   :  { %4312 = vsyncpa [#allocation12], 1 }
 0xc0e   :  { %4313 = vsyncpa [#allocation4], 1 }
 0xc0f   :  { %4315 = vsyncpa [#allocation4 + $0x1], 1 }

</bundles_post_ra>
